<compile_context>
chip_gen: v5e
topology: v5e:2x2
jax: 0.10.0
libtpu: 0.0.40
codegen_flags: <defaults>
</compile_context>

<pallas_src>
import functools

import numpy as np
import jax
import jax.numpy as jnp
from jax.experimental import pallas as pl
from jax.experimental.pallas import tpu as pltpu


def _scatter_kernel(start_ref, count_ref, idx_ref, vox_ref, out_ref, acc_ref, *, kc):
    """One (batch b, canvas tile j) step.

    start_ref, count_ref : SMEM (B * n_tiles,) int32 -- per (batch, tile) pillar-chunk range
    idx_ref : (1, 1, Pp)  int32    -- linear canvas index per sorted pillar (lane-major; padded
                                      slots hold sentinel == NXY_pad, which never matches)
    vox_ref : (1, C, Pp)  float    -- pillar features, pillar axis sorted to match idx_ref
    out_ref : (1, C, T)            -- one lane-dense canvas tile
    acc_ref : (C, T) f32 scratch accumulator
    """
    b = pl.program_id(0)
    j = pl.program_id(1)
    n_tiles = pl.num_programs(1)
    t = out_ref.shape[2]

    flat = b * n_tiles + j
    c0 = start_ref[flat]
    n_chunks = count_ref[flat]

    # Absolute canvas-column id for every (row, lane) of the transposed one-hot, hoisted out of
    # the chunk loop (constant within a tile).
    cols_abs = jax.lax.broadcasted_iota(jnp.int32, (t, kc), 0) + j * t

    def chunk_dot(kk):
        off = pl.multiple_of((c0 + kk) * kc, kc)
        vox = vox_ref[0, :, pl.ds(off, kc)]               # (C, kc)  lane-dense, no transpose
        idx = idx_ref[0, :, pl.ds(off, kc)]               # (1, kc)
        onehot_t = (cols_abs == idx).astype(vox.dtype)    # (t, kc); sentinel / out-of-tile -> 0
        # (C, kc) contracted with (t, kc) over kc -> (C, t): NT matmul (q @ k.T form).
        # NOTE: Mosaic's default f32 matmul path is multi-pass (validated exact to 1e-5 vs the
        # numpy reference below); pin precision=jax.lax.Precision.HIGHEST if tolerances tighten.
        return jax.lax.dot_general(vox, onehot_t, (((1,), (1,)), ((), ())),
                                   preferred_element_type=jnp.float32)

    @pl.when(n_chunks == 0)
    def _():
        # Empty tile: just store zeros (no one-hot build, no f32-scratch round-trip).
        out_ref[...] = jnp.zeros(out_ref.shape, out_ref.dtype)

    @pl.when(n_chunks > 0)
    def _():
        acc_ref[...] = chunk_dot(0)                       # first chunk writes, no zero-init

        def body(kk, carry):
            acc_ref[...] += chunk_dot(kk)
            return carry

        jax.lax.fori_loop(1, n_chunks, body, 0)
        out_ref[0] = acc_ref[...].astype(out_ref.dtype)


def pointpillars_scatter(voxel_features, coords, batch_size, ny, nx, *,
                         tile_cols=1024, pillar_chunk=128, out_dtype=None):
    """Pallas equivalent of PointPillarsScatterForCudaImpmentation.forward.

    out_dtype lets callers request e.g. a bf16 canvas (halves the dominant HBM writeback,
    largest relative win on v5e) while keeping f32 accumulation inside the kernel.
    """
    B, C, P = voxel_features.shape
    assert B == batch_size
    N = coords.shape[0]
    NXY = ny * nx
    out_dtype = voxel_features.dtype if out_dtype is None else jnp.dtype(out_dtype)

    T = int(tile_cols)                      # lane-dense output tile width
    KC = int(pillar_chunk)                  # pillar (K) chunk size
    assert T % 128 == 0, "tile_cols must be a multiple of 128 (lane width)"
    assert KC % 128 == 0, "pillar_chunk must be a multiple of 128 (aligned lane slices)"
    n_tiles = -(-NXY // T)
    NXY_pad = n_tiles * T
    Pp = -(-P // KC) * KC
    n_chunks_total = Pp // KC

    coords = coords.astype(jnp.int32)
    bidx = coords[:, 0]
    lin = coords[:, 2] * nx + coords[:, 3]

    # ---- glue: one stable sort instead of per-batch nonzero loops ----
    # original within-batch rank of each coords row == its feature column in voxel_features
    order0 = jnp.argsort(bidx, stable=True)
    sb0 = bidx[order0]
    seg_start = jnp.searchsorted(sb0, jnp.arange(batch_size, dtype=jnp.int32))   # (B,)
    local0 = jnp.arange(N, dtype=jnp.int32) - seg_start[sb0]
    orig_rank = jnp.zeros((N,), jnp.int32).at[order0].set(local0)

    # sort pillars by (batch, canvas index) so every canvas tile sees a contiguous pillar range
    assert batch_size * (NXY_pad + 1) < 2**31, "int32 sort key would overflow"
    key = bidx * jnp.int32(NXY_pad + 1) + lin
    order1 = jnp.argsort(key)
    sb1 = bidx[order1]
    sl1 = lin[order1]
    rank1 = orig_rank[order1]
    pos1 = jnp.arange(N, dtype=jnp.int32) - seg_start[sb1]

    sentinel = jnp.int32(NXY_pad)           # never equals any canvas column
    idx_sorted = jnp.full((batch_size, Pp), sentinel, jnp.int32).at[sb1, pos1].set(sl1)
    perm = jnp.zeros((batch_size, Pp), jnp.int32).at[sb1, pos1].set(rank1)

    # gather along the pillar axis -> (B, C, Pp): lane-dense, no (B, P, C) transpose materialized
    vox_sorted = jnp.take_along_axis(voxel_features, perm[:, None, :], axis=2)
    idx_arr = idx_sorted.reshape(batch_size, 1, Pp)      # lane-major int32

    # per-(batch, tile) range of KC-sized pillar chunks that can hit the tile
    bounds = jnp.arange(n_tiles + 1, dtype=jnp.int32) * T
    ss = jax.vmap(lambda row: jnp.searchsorted(row, bounds, side='left'))(idx_sorted)
    lo, hi = ss[:, :-1], ss[:, 1:]                                        # (B, n_tiles)
    c_lo = lo // KC
    c_hi = (hi + KC - 1) // KC
    count = jnp.where(hi > lo, c_hi - c_lo, 0).astype(jnp.int32).reshape(-1)
    start = jnp.minimum(c_lo, n_chunks_total - 1).astype(jnp.int32).reshape(-1)

    # ---- VMEM budget (derived from block sizes so the tiling also fits v7x's 64 MiB/TC) ----
    c_pad = -(-C // 8) * 8
    vf_bytes = jnp.dtype(voxel_features.dtype).itemsize
    out_bytes = jnp.dtype(out_dtype).itemsize
    vmem_need = (
        2 * c_pad * Pp * vf_bytes        # vox block (double-buffered, resident per batch)
        + 2 * 8 * Pp * 4                 # idx block (sublane dim 1 pads to 8, double-buffered)
        + 2 * c_pad * T * out_bytes      # output tile (double-buffered)
        + c_pad * T * 4                  # f32 accumulator scratch
        + T * KC * (8 + vf_bytes)        # column-iota + compare + one-hot temporaries
    )
    vmem_limit = int(min(max(vmem_need * 5 // 4 + (4 << 20), 48 << 20), 96 << 20))

    # TODO(synk): for very large P (>~32K pillars) keep vox/idx in HBM (memory_space=pl.ANY) and
    # manually DMA only each tile's [c0, c0+count)*KC pillar range into a small double-buffered
    # scratch; optionally single-buffer the batch-resident vox/idx blocks (pl.Buffered(1)) on v7x.
    kernel = functools.partial(_scatter_kernel, kc=KC)
    canvas = pl.pallas_call(
        kernel,
        out_shape=jax.ShapeDtypeStruct((batch_size, C, NXY_pad), out_dtype),
        grid_spec=pltpu.PrefetchScalarGridSpec(
            num_scalar_prefetch=2,
            grid=(batch_size, n_tiles),                       # b outer -> vox/idx stay resident
            in_specs=[
                pl.BlockSpec((1, 1, Pp), lambda b, j, s_ref, c_ref: (b, 0, 0)),   # idx (lane-major)
                pl.BlockSpec((1, C, Pp), lambda b, j, s_ref, c_ref: (b, 0, 0)),   # vox (C, Pp)
            ],
            out_specs=pl.BlockSpec((1, C, T), lambda b, j, s_ref, c_ref: (b, 0, j)),
            scratch_shapes=[pltpu.VMEM((C, T), jnp.float32)],
        ),
        compiler_params=pltpu.CompilerParams(
            dimension_semantics=("parallel", "parallel"),     # j-axis shards across v7x's 2 TCs
            vmem_limit_bytes=vmem_limit,
        ),
    )(start, count, idx_arr, vox_sorted)

    # TODO(synk): duplicate (y, x) coords within a batch are summed (torch scatter is
    # last-write-wins); standard PointPillars coords are unique per batch.
    return canvas[:, :, :NXY].reshape(batch_size, C, ny, nx)


def _reference_scatter(voxel_features, coords, batch_size, ny, nx):
    """Pure-numpy transliteration of the PyTorch forward (for verification)."""
    vf = np.asarray(voxel_features)        # (B, C, P)
    co = np.asarray(coords)
    B, C, _ = vf.shape
    out = []
    for b in range(batch_size):
        canvas = np.zeros((C, ny * nx), dtype=vf.dtype)
        this = co[co[:, 0] == b]
        n = this.shape[0]
        ind = this[:, 2] * nx + this[:, 3]
        canvas[:, ind] = vf[b, :, :n]
        out.append(canvas)
    return np.stack(out, 0).reshape(batch_size, C, ny, nx)


def _make_inputs(key, batch_size, C, P, ny, nx, n_per_batch, lin_limits, shuffle_rows):
    kv, kc_, kp = jax.random.split(key, 3)
    voxel_features = jax.random.normal(kv, (batch_size, C, P), dtype=jnp.float32)
    bkeys = jax.random.split(kc_, batch_size)
    rows = []
    for b in range(batch_size):
        n = n_per_batch[b]
        lin = jax.random.permutation(bkeys[b], lin_limits[b])[:n]   # unique (y, x) per batch
        y = (lin // nx).astype(jnp.int32)
        x = (lin % nx).astype(jnp.int32)
        rows.append(jnp.stack([jnp.full((n,), b, jnp.int32),
                               jnp.zeros((n,), jnp.int32), y, x], axis=1))
    coords = jnp.concatenate(rows, axis=0)
    if shuffle_rows:   # interleave batches (torch's boolean-mask path allows this too)
        coords = coords[jax.random.permutation(kp, coords.shape[0])]
    return voxel_features, coords


if __name__ == "__main__":
    key = jax.random.PRNGKey(0)
    k1, k2 = jax.random.split(key)

    # Case 1: default tiling (single canvas tile, single pillar chunk).
    bs, C, P, ny, nx = 2, 64, 64, 32, 32
    vf, coords = _make_inputs(k1, bs, C, P, ny, nx, [40, 56], [ny * nx, ny * nx], False)
    out = jax.block_until_ready(pointpillars_scatter(vf, coords, bs, ny, nx))
    ref = _reference_scatter(vf, coords, bs, ny, nx)
    assert out.shape == (bs, C, ny, nx)
    assert np.allclose(np.asarray(out), ref, atol=1e-5, rtol=1e-5)

    # Case 2: multiple canvas tiles + multiple pillar chunks + empty tiles + interleaved batches.
    bs, C, P, ny, nx = 2, 32, 160, 24, 40
    vf, coords = _make_inputs(k2, bs, C, P, ny, nx, [100, 150], [256, ny * nx], True)
    out = jax.block_until_ready(
        pointpillars_scatter(vf, coords, bs, ny, nx, tile_cols=256, pillar_chunk=128))
    ref = _reference_scatter(vf, coords, bs, ny, nx)
    assert out.shape == (bs, C, ny, nx)
    assert np.allclose(np.asarray(out), ref, atol=1e-5, rtol=1e-5)

    print("KERNEL_OK")
</pallas_src>

<mosaic_0001>
module attributes {stable_mosaic.version = 11 : i64} {
  func.func @_scatter_kernel(%arg0: i32, %arg1: i32, %arg2: memref<2xi32, #tpu.memory_space<smem>>, %arg3: memref<2xi32, #tpu.memory_space<smem>>, %arg4: memref<1x1x128xi32, #tpu.memory_space<vmem>>, %arg5: memref<1x64x128xf32, #tpu.memory_space<vmem>>, %arg6: memref<1x64x1024xf32, #tpu.memory_space<vmem>>, %arg7: memref<64x1024xf32, #tpu.memory_space<vmem>>) attributes {dimension_semantics = [#tpu.dimension_semantics<parallel>, #tpu.dimension_semantics<parallel>], iteration_bounds = array<i64: 2, 1>, scalar_prefetch = 2 : i64, scratch_operands = 1 : i64, tpu.core_type = #tpu.core_type<tc>, window_params = [{transform_indices = @transform_0, window_bounds = array<i64: 1, 1, 128>}, {transform_indices = @transform_1, window_bounds = array<i64: 1, 64, 128>}, {transform_indices = @transform_2, window_bounds = array<i64: 1, 64, 1024>}]} {
    %c1_i32 = arith.constant 1 : i32
    %0 = arith.muli %arg0, %c1_i32 : i32
    %1 = arith.addi %0, %arg1 : i32
    %2 = arith.index_cast %1 : i32 to index
    %3 = memref.load %arg2[%2] : memref<2xi32, #tpu.memory_space<smem>>
    %4 = arith.index_cast %1 : i32 to index
    %5 = memref.load %arg3[%4] : memref<2xi32, #tpu.memory_space<smem>>
    %6 = tpu.iota {dimensions = array<i32: 0>} : vector<1024x128xi32>
    %c1024_i32 = arith.constant 1024 : i32
    %7 = arith.muli %arg1, %c1024_i32 : i32
    %8 = vector.broadcast %7 : i32 to vector<1024x128xi32>
    %9 = arith.addi %6, %8 : vector<1024x128xi32>
    %c0_i32 = arith.constant 0 : i32
    %10 = arith.cmpi eq, %5, %c0_i32 : i32
    %11 = arith.extui %10 : i1 to i32
    %c0_i32_0 = arith.constant 0 : i32
    %12 = arith.cmpi ne, %11, %c0_i32_0 : i32
    scf.if %12 {
      %cst = arith.constant 0.000000e+00 : f32
      %16 = vector.broadcast %cst : f32 to vector<1x64x1024xf32>
      %c0 = arith.constant 0 : index
      %c0_3 = arith.constant 0 : index
      %c0_4 = arith.constant 0 : index
      %17 = vector.load %arg6[%c0, %c0_3, %c0_4] : memref<1x64x1024xf32, #tpu.memory_space<vmem>>, vector<1x64x1024xf32>
      tpu.vector_store %arg6[%c0, %c0_3, %c0_4], %16 {strides = array<i32>} : memref<1x64x1024xf32, #tpu.memory_space<vmem>>, vector<1x64x1024xf32>,
    } else {
    }
    %c0_i32_1 = arith.constant 0 : i32
    %13 = arith.cmpi sgt, %5, %c0_i32_1 : i32
    %14 = arith.extui %13 : i1 to i32
    %c0_i32_2 = arith.constant 0 : i32
    %15 = arith.cmpi ne, %14, %c0_i32_2 : i32
    scf.if %15 {
      %c0_i32_3 = arith.constant 0 : i32
      %16 = arith.addi %3, %c0_i32_3 : i32
      %c128_i32 = arith.constant 128 : i32
      %17 = arith.muli %16, %c128_i32 : i32
      %18 = tpu.assume_multiple %17, 128 : i32
      %c0 = arith.constant 0 : index
      %c0_4 = arith.constant 0 : index
      %19 = arith.index_cast %18 : i32 to index
      %20 = vector.load %arg5[%c0, %c0_4, %19] : memref<1x64x128xf32, #tpu.memory_space<vmem>>, vector<1x64x128xf32>
      %21 = vector.shape_cast %20 : vector<1x64x128xf32> to vector<64x128xf32>
      %c0_5 = arith.constant 0 : index
      %c0_6 = arith.constant 0 : index
      %22 = arith.index_cast %18 : i32 to index
      %23 = vector.load %arg4[%c0_5, %c0_6, %22] : memref<1x1x128xi32, #tpu.memory_space<vmem>>, vector<1x1x128xi32>
      %24 = vector.shape_cast %23 : vector<1x1x128xi32> to vector<1x128xi32>
      %25 = vector.broadcast %24 : vector<1x128xi32> to vector<1024x128xi32>
      %26 = arith.cmpi eq, %9, %25 : vector<1024x128xi32>
      %27 = arith.extui %26 : vector<1024x128xi1> to vector<1024x128xi32>
      %28 = arith.sitofp %27 : vector<1024x128xi32> to vector<1024x128xf32>
      %cst = arith.constant dense<0.000000e+00> : vector<64x1024xf32>
      %29 = tpu.matmul %21, %28, %cst {dimension_numbers = #tpu.dot_dimension_numbers<[1], [1], [0], [0], [0, 0, 1, 0], [], []>} : vector<64x128xf32>, vector<1024x128xf32>, vector<64x1024xf32> -> vector<64x1024xf32>
      %c0_7 = arith.constant 0 : index
      %c0_8 = arith.constant 0 : index
      %30 = vector.load %arg7[%c0_7, %c0_8] : memref<64x1024xf32, #tpu.memory_space<vmem>>, vector<64x1024xf32>
      tpu.vector_store %arg7[%c0_7, %c0_8], %29 {strides = array<i32>} : memref<64x1024xf32, #tpu.memory_space<vmem>>, vector<64x1024xf32>,
      %c0_i32_9 = arith.constant 0 : i32
      %c1_i32_10 = arith.constant 1 : i32
      %31 = arith.subi %5, %c1_i32_10 : i32
      %32 = arith.addi %c1_i32_10, %31 : i32
      %c1_i32_11 = arith.constant 1 : i32
      scf.for %arg8 = %c1_i32_10 to %32 step %c1_i32_11  : i32 {
        %c0_17 = arith.constant 0 : index
        %c0_18 = arith.constant 0 : index
        %37 = vector.load %arg7[%c0_17, %c0_18] : memref<64x1024xf32, #tpu.memory_space<vmem>>, vector<64x1024xf32>
        %38 = arith.addi %3, %arg8 : i32
        %c128_i32_19 = arith.constant 128 : i32
        %39 = arith.muli %38, %c128_i32_19 : i32
        %40 = tpu.assume_multiple %39, 128 : i32
        %c0_20 = arith.constant 0 : index
        %c0_21 = arith.constant 0 : index
        %41 = arith.index_cast %40 : i32 to index
        %42 = vector.load %arg5[%c0_20, %c0_21, %41] : memref<1x64x128xf32, #tpu.memory_space<vmem>>, vector<1x64x128xf32>
        %43 = vector.shape_cast %42 : vector<1x64x128xf32> to vector<64x128xf32>
        %c0_22 = arith.constant 0 : index
        %c0_23 = arith.constant 0 : index
        %44 = arith.index_cast %40 : i32 to index
        %45 = vector.load %arg4[%c0_22, %c0_23, %44] : memref<1x1x128xi32, #tpu.memory_space<vmem>>, vector<1x1x128xi32>
        %46 = vector.shape_cast %45 : vector<1x1x128xi32> to vector<1x128xi32>
        %47 = vector.broadcast %46 : vector<1x128xi32> to vector<1024x128xi32>
        %48 = arith.cmpi eq, %9, %47 : vector<1024x128xi32>
        %49 = arith.extui %48 : vector<1024x128xi1> to vector<1024x128xi32>
        %50 = arith.sitofp %49 : vector<1024x128xi32> to vector<1024x128xf32>
        %cst_24 = arith.constant dense<0.000000e+00> : vector<64x1024xf32>
        %51 = tpu.matmul %43, %50, %cst_24 {dimension_numbers = #tpu.dot_dimension_numbers<[1], [1], [0], [0], [0, 0, 1, 0], [], []>} : vector<64x128xf32>, vector<1024x128xf32>, vector<64x1024xf32> -> vector<64x1024xf32>
        %52 = arith.addf %37, %51 : vector<64x1024xf32>
        %c0_25 = arith.constant 0 : index
        %c0_26 = arith.constant 0 : index
        %53 = vector.load %arg7[%c0_25, %c0_26] : memref<64x1024xf32, #tpu.memory_space<vmem>>, vector<64x1024xf32>
        tpu.vector_store %arg7[%c0_25, %c0_26], %52 {strides = array<i32>} : memref<64x1024xf32, #tpu.memory_space<vmem>>, vector<64x1024xf32>,
      }
      %c0_12 = arith.constant 0 : index
      %c0_13 = arith.constant 0 : index
      %33 = vector.load %arg7[%c0_12, %c0_13] : memref<64x1024xf32, #tpu.memory_space<vmem>>, vector<64x1024xf32>
      %c0_14 = arith.constant 0 : index
      %c0_15 = arith.constant 0 : index
      %c0_16 = arith.constant 0 : index
      %34 = vector.load %arg6[%c0_14, %c0_15, %c0_16] : memref<1x64x1024xf32, #tpu.memory_space<vmem>>, vector<1x64x1024xf32>
      %35 = vector.shape_cast %34 : vector<1x64x1024xf32> to vector<64x1024xf32>
      %36 = vector.shape_cast %33 : vector<64x1024xf32> to vector<1x64x1024xf32>
      tpu.vector_store %arg6[%c0_14, %c0_15, %c0_16], %36 {strides = array<i32>} : memref<1x64x1024xf32, #tpu.memory_space<vmem>>, vector<1x64x1024xf32>,
    } else {
    }
    return
  }
  func.func @transform_0(%arg0: i32, %arg1: i32, %arg2: memref<2xi32, #tpu.memory_space<smem>>, %arg3: memref<2xi32, #tpu.memory_space<smem>>) -> (i32, i32, i32) {
    %c0_i32 = arith.constant 0 : i32
    %c0_i32_0 = arith.constant 0 : i32
    %c0_i32_1 = arith.constant 0 : i32
    return %arg0, %c0_i32, %c0_i32_0 : i32, i32, i32
  }
  func.func @transform_1(%arg0: i32, %arg1: i32, %arg2: memref<2xi32, #tpu.memory_space<smem>>, %arg3: memref<2xi32, #tpu.memory_space<smem>>) -> (i32, i32, i32) {
    %c0_i32 = arith.constant 0 : i32
    %c0_i32_0 = arith.constant 0 : i32
    %c0_i32_1 = arith.constant 0 : i32
    return %arg0, %c0_i32, %c0_i32_0 : i32, i32, i32
  }
  func.func @transform_2(%arg0: i32, %arg1: i32, %arg2: memref<2xi32, #tpu.memory_space<smem>>, %arg3: memref<2xi32, #tpu.memory_space<smem>>) -> (i32, i32, i32) {
    %c0_i32 = arith.constant 0 : i32
    %c0_i32_0 = arith.constant 0 : i32
    return %arg0, %c0_i32, %arg1 : i32, i32, i32
  }
}

</mosaic_0001>

<bundles_post_ra>
// kernel: tpu_custom_call.1
= control target key start
LH: loop header
LB: loop body
LE: loop exit
PB: predicated region body
PF: predicated region fallthrough
CT: control target
= control target key end

     0   :  { %s3340_s21 = smov [#allocation4]   ;;  %s3341_s22 = smov [#allocation5]   ;;  %s5077_s0 = inlined_call_operand.hbm [shape: s32[2], index: 0, kind: input, shape index: {}]   ;;  %s5078_s2 = inlined_call_operand.hbm [shape: s32[2,1,128], index: 2, kind: input, shape index: {}]   ;;  %s5079_s3 = inlined_call_operand.hbm [shape: f32[2,64,128], index: 3, kind: input, shape index: {}]   ;;  %s5080_s4 = inlined_call_operand.hbm [shape: f32[2,64,1024], index: 4, kind: output, shape index: {}]   ;;  %s5081_s1 = inlined_call_operand.hbm [shape: s32[2], index: 1, kind: input, shape index: {}]  }
   0x1   :  { %s10_s17 = sshll.u32 %s5077_s0, 4  ;;  %s15_s20 = sshll.u32 %s5081_s1, 4  ;;  %s11_s17 = int_to_ptr.hbm [resolvable:$true] %s10_s17  ;;  %s16_s20 = int_to_ptr.hbm [resolvable:$true] %s15_s20 }
   0x2   :  { %13 = dma.hbm_to_smem %s11_s17, 16, %s3340_s21, [#allocation3] }
   0x3   :  { %18 = dma.hbm_to_smem %s16_s20, 16, %s3341_s22, [#allocation3] }
   0x4   :  { %3298 = dma.done.wait [#allocation3], 32 }
   0x5   :  { %3299 = vsyncadd [#allocation3], 4294967264 }
   0x6   :  { %21 = sfence }
   0x7   :  { %22 = vsyncpa [#allocation7], 0 }
   0x8   :  { %24 = vsyncpa [#allocation7 + $0x1], 0 }
   0x9   :  { %25 = vsyncpa [#allocation10], 0 }
   0xa   :  { %27 = vsyncpa [#allocation10 + $0x1], 0 }
   0xb   :  { %28 = vsyncpa [#allocation8], 0 }
   0xc   :  { %30 = vsyncpa [#allocation8 + $0x1], 0  ;;  %s3380_s0 = smov 0   ;;  %s3382_s23 = smov 0  }
   0xd   :  { %s3384_s1 = smov 0   ;;  %s3386_s24 = smov 0  }
   0xe   :  { %s3388_s25 = smov 0   ;;  %s3390_s26 = smov 0  }
   0xf LB: > { %s2538_s27 = sadd.s32 4294967295, %s3334_s26   ;;  %s2539_s28 = sadd.s32 4294967294, %s3334_s26   ;;  %s3334_s26 = sphi %s3390_s26, %s36_s26   ;;  %s3330_s25 = sphi %s3388_s25, %s5343_s25   ;;  %s3326_s24 = sphi %s3386_s24, %s5342_s24   ;;  %s3322_s1 = sphi %s3384_s1, %s5341_s1   ;;  %s3318_s23 = sphi %s3382_s23, %s5340_s23   ;;  %s3314_s0 = sphi %s3380_s0, %s5339_s0  }
  0x10   : > { %s48_s29 = sadd.s32 1, %s3330_s25  ;;  %s55_s30 = sadd.s32 1, %s3322_s1 }
  0x11   : > { %p50_p0 = scmp.ge.s32.totalorder %s48_s29, 2  ;;  %p62_p1 = scmp.ne.s32.totalorder %s3322_s1, %s3318_s23 }
  0x12   : > { %p63_p2 = scmp.eq.s32.totalorder %s3334_s26, 0  ;;  %p68_p3 = scmp.ne.s32.totalorder %s3318_s23, %s3314_s0 }
  0x13   : > { %s5345_s29 = smov (%p50_p0, %s48_s29), 0  ;;  %p69_p5 = scmp.eq.s32.totalorder %s2538_s27, 0 }
  0x14   : > { %p3421_p4 = por %p63_p2, %p62_p1  ;;  %s52_s6 = ssub.s32 %s3330_s25, %s5345_s29 }
  0x15   : > { %p120_p6 = scmp.eq.s32.totalorder %s2538_s27, 1  ;;  %p53_p7 = scmp.eq.s32.totalorder %s52_s6, 0 }
  0x16   : > { %p3427_p8 = por %p69_p5, %p68_p3  ;;  %p126_p10 = scmp.eq.s32.totalorder %s2539_s28, 1 }
  0x17   : > { %p3431_p9 = por %p120_p6, %p62_p1  ;;  %p2541_p12 = scmp.ge.s32.totalorder %s3334_s26, 2 }
  0x18   : > { %s3436_s9 = scalar_select %p53_p7, %s3322_s1, %s55_s30  }
  0x19   : > { %p3438_p11 = por %p126_p10, %p68_p3  ;;  %p3089_p13 = scmp.lt.s32.totalorder %s3334_s26, 2 }
  0x1a   : > { %s3445_s11 = sand.u32 1, %s3322_s1   ;;  %s152_s14 = scalar_lea.hbm %s5078_s2, %s3330_s25 }
  0x1b   : > { %s149_s15 = scalar_lea.vmem [#allocation6], %s3445_s11  ;;  %s154_s17 = sshll.u32 %s152_s14, 4  ;;  %s155_s17 = int_to_ptr.hbm [resolvable:$true] %s154_s17 }
  0x1c   : > { %s156_s16 = sshll.u32 %s149_s15, 4  ;;  %p3454_p0 = pnand %p3089_p13, %p3421_p4  ;;  %s157_s16 = int_to_ptr.vmem [resolvable:$true] %s156_s16 }
  0x1d   : > { %p2545_p1 = scmp.ge.s32.totalorder %s3334_s26, 1  ;;  %p183_p2 = scmp.lt.s32.totalorder %s3334_s26, 3 }
  0x1e   : > { %s147_s19 = scalar_lea.sflag [#allocation7], %s3445_s11  ;;  %s2542_s20 = sshll.u32 %s3445_s11, 6 }
  0x1f   : > { %3081 = dma.hbm_to_vmem [thread:$0]  (!%p3454_p0), %s155_s17, 16, %s157_s16, %s147_s19  }
  0x20   : > { %p184_p3 = pnand %p2545_p1, %p183_p2  ;;  %s3070_s21 = sshll.u32 %s3330_s25, 6 }
  0x21   : > { %s172_s28 = scalar_lea.hbm %s5079_s3, %s3070_s21  ;;  %s167_s30 = scalar_lea.vmem [#allocation9], %s2542_s20 }
  0x22   : > { %s175_s5 = sshll.u32 %s167_s30, 4  ;;  %s173_s6 = sshll.u32 %s172_s28, 4  ;;  %s176_s5 = int_to_ptr.vmem [resolvable:$true] %s175_s5  ;;  %s174_s6 = int_to_ptr.hbm [resolvable:$true] %s173_s6 }
  0x23   : > { %s164_s12 = scalar_lea.sflag [#allocation10], %s3445_s11  ;;  %s3342_s13 = smov 128  }
  0x24   : > { %s3343_s14 = smov 8   ;;  %187 = sbr.rel (%p184_p3) target bundleno = 933 (0x3a5), region = 28 }
  0x25   : > { %3084 = dma.hbm_to_vmem [thread:$0]  (!%p3454_p0), %s174_s6, 1024, %s176_s5, %s164_s12, %s3342_s13, %s3342_s13, %s3343_s14  }
  0x29   : > { %s3472_s15 = sand.u32 1, %s3318_s23  }
  0x2a   : > { %s190_s16 = scalar_lea.sflag [#allocation7], %s3472_s15  ;;  %s192_s17 = scalar_lea.vmem [#allocation6], %s3472_s15 }
  0x2b   : > { %3301 = dma.done.wait (%p3427_p8), %s190_s16, 16  }
  0x2c   : > { %3303 = vsyncadd (%p3427_p8), %s190_s16, 4294967280  ;;  %s2546_s11 = sshll.u32 %s3472_s15, 6  ;;  %s199_s18 = scalar_lea.sflag [#allocation10], %s3472_s15 }
  0x2d   : > { %s3482_s19 = scalar_lea.vmem [#allocation9], %s2546_s11 }
  0x2e   : > { %3305 = dma.done.wait (%p3427_p8), %s199_s18, 1024  }
  0x2f   : > { %3307 = vsyncadd (%p3427_p8), %s199_s18, 4294966272  ;;  %s2547_s20 = sshll.u32 %s3472_s15, 9  ;;  %v232_v0 = vlaneseq  ;;  %s3490_s21 = sld [smem:[#allocation4 + %s3326_s24]] }
  0x30   : > { %s3493_s22 = sld [smem:[#allocation5 + %s3326_s24]]  ;;  %s3880_s7 = scalar_lea.vmem [#allocation11], %s2547_s20 }
  0x31   : > { %v3495_v1 = vshrl.u32 %v232_v0, 7 }
  0x33   : > { %5105 = vst [vmem:[#allocation16_spill] sm:$0xff] %v3495_v1  ;;  %v3498_v2 = vadd.s32 8, %v3495_v1  ;;  %v3501_v3 = vadd.s32 16, %v3495_v1  ;;  %v3504_v4 = vadd.s32 24, %v3495_v1  ;;  %v3507_v5 = vadd.s32 32, %v3495_v1 }
  0x34   : > { %v3510_v6 = vadd.s32 40, %v3495_v1  ;;  %v3513_v7 = vadd.s32 48, %v3495_v1  ;;  %v3516_v8 = vadd.s32 56, %v3495_v1  ;;  %v3519_v9 = vadd.s32 64, %v3495_v1 }
  0x35   : > { %5106 = vst [vmem:[#allocation17_spill] sm:$0xff] %v3498_v2  ;;  %v3522_v10 = vadd.s32 72, %v3495_v1  ;;  %v3525_v11 = vadd.s32 80, %v3495_v1  ;;  %v3528_v12 = vadd.s32 88, %v3495_v1  ;;  %v3531_v13 = vadd.s32 96, %v3495_v1 }
  0x36   : > { %5107 = vst [vmem:[#allocation18_spill] sm:$0xff] %v3501_v3  ;;  %v3534_v14 = vadd.s32 104, %v3495_v1  ;;  %v3537_v15 = vadd.s32 112, %v3495_v1  ;;  %v3540_v16 = vadd.s32 120, %v3495_v1  ;;  %v3543_v17 = vadd.s32 128, %v3495_v1  ;;  %p2548_p4 = scmp.ne.s32.totalorder %s3493_s22, 0 }
  0x37   : > { %5108 = vst [vmem:[#allocation19_spill] sm:$0xff] %v3504_v4  ;;  %v3546_v18 = vadd.s32 136, %v3495_v1  ;;  %v3549_v19 = vadd.s32 144, %v3495_v1  ;;  %v3552_v20 = vadd.s32 152, %v3495_v1  ;;  %v3555_v21 = vadd.s32 160, %v3495_v1 }
  0x38   : > { %5109 = vst [vmem:[#allocation20_spill] sm:$0xff] %v3507_v5  ;;  %v3558_v22 = vadd.s32 168, %v3495_v1  ;;  %v3561_v23 = vadd.s32 176, %v3495_v1  ;;  %v3564_v24 = vadd.s32 184, %v3495_v1  ;;  %v3567_v25 = vadd.s32 192, %v3495_v1 }
  0x39   : > { %5110 = vst [vmem:[#allocation21_spill] sm:$0xff] %v3510_v6  ;;  %v3570_v26 = vadd.s32 200, %v3495_v1  ;;  %v3573_v27 = vadd.s32 208, %v3495_v1  ;;  %v3576_v28 = vadd.s32 216, %v3495_v1  ;;  %v3579_v29 = vadd.s32 224, %v3495_v1 }
  0x3a   : > { %5111 = vst [vmem:[#allocation22_spill] sm:$0xff] %v3513_v7  ;;  %v3582_v30 = vadd.s32 232, %v3495_v1  ;;  %v3585_v31 = vadd.s32 240, %v3495_v1  ;;  %v3588_v32 = vadd.s32 248, %v3495_v1  ;;  %v3591_v33 = vadd.s32 256, %v3495_v1 }
  0x3b   : > { %5112 = vst [vmem:[#allocation23_spill] sm:$0xff] %v3516_v8  ;;  %v3594_v34 = vadd.s32 264, %v3495_v1  ;;  %v3597_v35 = vadd.s32 272, %v3495_v1  ;;  %v3600_v36 = vadd.s32 280, %v3495_v1  ;;  %v3603_v37 = vadd.s32 288, %v3495_v1 }
  0x3c   : > { %5113 = vst [vmem:[#allocation24_spill] sm:$0xff] %v3519_v9  ;;  %v3606_v38 = vadd.s32 296, %v3495_v1  ;;  %v3609_v39 = vadd.s32 304, %v3495_v1  ;;  %v3612_v40 = vadd.s32 312, %v3495_v1  ;;  %v3615_v41 = vadd.s32 320, %v3495_v1 }
  0x3d   : > { %5114 = vst [vmem:[#allocation25_spill] sm:$0xff] %v3543_v17  ;;  %v3618_v42 = vadd.s32 328, %v3495_v1  ;;  %v3621_v43 = vadd.s32 336, %v3495_v1  ;;  %v3624_v44 = vadd.s32 344, %v3495_v1  ;;  %v3627_v45 = vadd.s32 352, %v3495_v1 }
  0x3e   : > { %5115 = vst [vmem:[#allocation26_spill] sm:$0xff] %v3546_v18  ;;  %v3630_v46 = vadd.s32 360, %v3495_v1  ;;  %v3633_v47 = vadd.s32 368, %v3495_v1  ;;  %v3636_v48 = vadd.s32 376, %v3495_v1  ;;  %v3639_v49 = vadd.s32 384, %v3495_v1 }
  0x3f   : > { %5116 = vst [vmem:[#allocation27_spill] sm:$0xff] %v3549_v19  ;;  %v3642_v50 = vadd.s32 392, %v3495_v1  ;;  %v3645_v51 = vadd.s32 400, %v3495_v1  ;;  %v3648_v52 = vadd.s32 408, %v3495_v1  ;;  %v3651_v53 = vadd.s32 416, %v3495_v1 }
  0x40   : > { %5117 = vst [vmem:[#allocation28_spill] sm:$0xff] %v3552_v20  ;;  %v3654_v54 = vadd.s32 424, %v3495_v1  ;;  %v3657_v55 = vadd.s32 432, %v3495_v1  ;;  %v3660_v56 = vadd.s32 440, %v3495_v1  ;;  %v3663_v57 = vadd.s32 448, %v3495_v1 }
  0x41   : > { %5118 = vst [vmem:[#allocation29_spill] sm:$0xff] %v3591_v33  ;;  %v3666_v58 = vadd.s32 456, %v3495_v1  ;;  %v3669_v59 = vadd.s32 464, %v3495_v1  ;;  %v3672_v60 = vadd.s32 472, %v3495_v1  ;;  %v3675_v61 = vadd.s32 480, %v3495_v1 }
  0x42   : > { %5119 = vst [vmem:[#allocation30_spill] sm:$0xff] %v3594_v34  ;;  %v3678_v62 = vadd.s32 488, %v3495_v1  ;;  %v3681_v63 = vadd.s32 496, %v3495_v1  ;;  %v3684_v0 = vadd.s32 504, %v3495_v1  ;;  %v3687_v17 = vadd.s32 512, %v3495_v1 }
  0x43   : > { %5120 = vst [vmem:[#allocation31_spill] sm:$0xff] %v3597_v35  ;;  %v3693_v33 = vadd.s32 528, %v3495_v1  ;;  %v3696_v18 = vadd.s32 536, %v3495_v1  ;;  %v3699_v2 = vadd.s32 544, %v3495_v1  ;;  %v3705_v34 = vadd.s32 560, %v3495_v1 }
  0x44   : > { %5121 = vst [vmem:[#allocation32_spill] sm:$0xff] %v3639_v49  ;;  %v3690_v49 = vadd.s32 520, %v3495_v1 }
  0x45   : > { %5122 = vst [vmem:[#allocation33_spill] sm:$0xff] %v3642_v50  ;;  %v3702_v50 = vadd.s32 552, %v3495_v1 }
  0x46   : > { %5123 = vst [vmem:[#allocation34_spill] sm:$0xff] %v3645_v51 }
  0x47   : > { %5124 = vst [vmem:[#allocation35_spill] sm:$0xff] %v3684_v0 }
  0x48   : > { %5125 = vst [vmem:[#allocation36_spill] sm:$0xff] %v3687_v17  ;;  %v3708_v17 = vadd.s32 568, %v3495_v1 }
  0x49   : > { %5126 = vst [vmem:[#allocation37_spill] sm:$0xff] %v3690_v49  ;;  %v3711_v49 = vadd.s32 576, %v3495_v1 }
  0x4a   : > { %5127 = vst [vmem:[#allocation38_spill] sm:$0xff] %v3693_v33  ;;  %v3714_v33 = vadd.s32 584, %v3495_v1 }
  0x4b   : > { %5128 = vst [vmem:[#allocation39_spill] sm:$0xff] %v3696_v18  ;;  %v3717_v18 = vadd.s32 592, %v3495_v1 }
  0x4c   : > { %5129 = vst [vmem:[#allocation40_spill] sm:$0xff] %v3699_v2  ;;  %v3720_v2 = vadd.s32 600, %v3495_v1 }
  0x4d   : > { %5130 = vst [vmem:[#allocation41_spill] sm:$0xff] %v3702_v50  ;;  %v3723_v50 = vadd.s32 608, %v3495_v1 }
  0x4e   : > { %5131 = vst [vmem:[#allocation42_spill] sm:$0xff] %v3705_v34  ;;  %v3726_v34 = vadd.s32 616, %v3495_v1 }
  0x4f   : > { %5132 = vst [vmem:[#allocation43_spill] sm:$0xff] %v3708_v17  ;;  %v3729_v17 = vadd.s32 624, %v3495_v1 }
  0x50   : > { %5133 = vst [vmem:[#allocation44_spill] sm:$0xff] %v3711_v49  ;;  %v3732_v49 = vadd.s32 632, %v3495_v1 }
  0x51   : > { %5134 = vst [vmem:[#allocation45_spill] sm:$0xff] %v3714_v33  ;;  %v3735_v33 = vadd.s32 640, %v3495_v1 }
  0x52   : > { %5135 = vst [vmem:[#allocation46_spill] sm:$0xff] %v3717_v18  ;;  %v3738_v18 = vadd.s32 648, %v3495_v1 }
  0x53   : > { %5136 = vst [vmem:[#allocation47_spill] sm:$0xff] %v3720_v2  ;;  %v3741_v2 = vadd.s32 656, %v3495_v1 }
  0x54   : > { %5137 = vst [vmem:[#allocation48_spill] sm:$0xff] %v3723_v50  ;;  %v3744_v50 = vadd.s32 664, %v3495_v1 }
  0x55   : > { %5138 = vst [vmem:[#allocation49_spill] sm:$0xff] %v3726_v34  ;;  %v3747_v34 = vadd.s32 672, %v3495_v1 }
  0x56   : > { %5139 = vst [vmem:[#allocation50_spill] sm:$0xff] %v3729_v17  ;;  %v3750_v17 = vadd.s32 680, %v3495_v1 }
  0x57   : > { %5140 = vst [vmem:[#allocation51_spill] sm:$0xff] %v3732_v49  ;;  %v3753_v49 = vadd.s32 688, %v3495_v1 }
  0x58   : > { %5141 = vst [vmem:[#allocation52_spill] sm:$0xff] %v3735_v33  ;;  %v3756_v33 = vadd.s32 696, %v3495_v1 }
  0x59   : > { %5142 = vst [vmem:[#allocation53_spill] sm:$0xff] %v3738_v18  ;;  %v3759_v18 = vadd.s32 704, %v3495_v1 }
  0x5a   : > { %5143 = vst [vmem:[#allocation54_spill] sm:$0xff] %v3741_v2  ;;  %v3762_v2 = vadd.s32 712, %v3495_v1 }
  0x5b   : > { %5144 = vst [vmem:[#allocation55_spill] sm:$0xff] %v3744_v50  ;;  %v3765_v50 = vadd.s32 720, %v3495_v1 }
  0x5c   : > { %5145 = vst [vmem:[#allocation56_spill] sm:$0xff] %v3747_v34  ;;  %v3768_v34 = vadd.s32 728, %v3495_v1 }
  0x5d   : > { %5146 = vst [vmem:[#allocation57_spill] sm:$0xff] %v3750_v17  ;;  %v3771_v17 = vadd.s32 736, %v3495_v1 }
  0x5e   : > { %5147 = vst [vmem:[#allocation58_spill] sm:$0xff] %v3753_v49  ;;  %v3774_v49 = vadd.s32 744, %v3495_v1 }
  0x5f   : > { %5148 = vst [vmem:[#allocation59_spill] sm:$0xff] %v3756_v33  ;;  %v3777_v33 = vadd.s32 752, %v3495_v1 }
  0x60   : > { %5149 = vst [vmem:[#allocation60_spill] sm:$0xff] %v3759_v18  ;;  %v3780_v18 = vadd.s32 760, %v3495_v1 }
  0x61   : > { %5150 = vst [vmem:[#allocation61_spill] sm:$0xff] %v3762_v2  ;;  %v3783_v2 = vadd.s32 768, %v3495_v1 }
  0x62   : > { %5151 = vst [vmem:[#allocation62_spill] sm:$0xff] %v3765_v50  ;;  %v3786_v50 = vadd.s32 776, %v3495_v1 }
  0x63   : > { %5152 = vst [vmem:[#allocation63_spill] sm:$0xff] %v3768_v34  ;;  %v3789_v34 = vadd.s32 784, %v3495_v1 }
  0x64   : > { %5153 = vst [vmem:[#allocation64_spill] sm:$0xff] %v3771_v17  ;;  %v3792_v17 = vadd.s32 792, %v3495_v1 }
  0x65   : > { %5154 = vst [vmem:[#allocation65_spill] sm:$0xff] %v3774_v49  ;;  %v3795_v49 = vadd.s32 800, %v3495_v1 }
  0x66   : > { %5155 = vst [vmem:[#allocation66_spill] sm:$0xff] %v3777_v33  ;;  %v3798_v33 = vadd.s32 808, %v3495_v1 }
  0x67   : > { %5156 = vst [vmem:[#allocation67_spill] sm:$0xff] %v3780_v18  ;;  %v3801_v18 = vadd.s32 816, %v3495_v1 }
  0x68   : > { %5157 = vst [vmem:[#allocation68_spill] sm:$0xff] %v3783_v2  ;;  %v3804_v2 = vadd.s32 824, %v3495_v1 }
  0x69   : > { %5158 = vst [vmem:[#allocation69_spill] sm:$0xff] %v3786_v50  ;;  %v3807_v50 = vadd.s32 832, %v3495_v1 }
  0x6a   : > { %5159 = vst [vmem:[#allocation70_spill] sm:$0xff] %v3789_v34  ;;  %v3810_v34 = vadd.s32 840, %v3495_v1 }
  0x6b   : > { %5160 = vst [vmem:[#allocation71_spill] sm:$0xff] %v3792_v17  ;;  %v3813_v17 = vadd.s32 848, %v3495_v1 }
  0x6c   : > { %5161 = vst [vmem:[#allocation72_spill] sm:$0xff] %v3795_v49  ;;  %v3816_v49 = vadd.s32 856, %v3495_v1 }
  0x6d   : > { %5162 = vst [vmem:[#allocation73_spill] sm:$0xff] %v3798_v33  ;;  %v3819_v33 = vadd.s32 864, %v3495_v1 }
  0x6e   : > { %5163 = vst [vmem:[#allocation74_spill] sm:$0xff] %v3801_v18  ;;  %v3822_v18 = vadd.s32 872, %v3495_v1 }
  0x6f   : > { %5164 = vst [vmem:[#allocation75_spill] sm:$0xff] %v3804_v2  ;;  %v3825_v2 = vadd.s32 880, %v3495_v1 }
  0x70   : > { %5165 = vst [vmem:[#allocation76_spill] sm:$0xff] %v3807_v50  ;;  %v3828_v50 = vadd.s32 888, %v3495_v1 }
  0x71   : > { %5166 = vst [vmem:[#allocation77_spill] sm:$0xff] %v3810_v34  ;;  %v3831_v34 = vadd.s32 896, %v3495_v1 }
  0x72   : > { %5167 = vst [vmem:[#allocation78_spill] sm:$0xff] %v3813_v17  ;;  %v3834_v17 = vadd.s32 904, %v3495_v1 }
  0x73   : > { %5168 = vst [vmem:[#allocation79_spill] sm:$0xff] %v3816_v49  ;;  %v3837_v49 = vadd.s32 912, %v3495_v1 }
  0x74   : > { %5169 = vst [vmem:[#allocation80_spill] sm:$0xff] %v3819_v33  ;;  %v3840_v33 = vadd.s32 920, %v3495_v1 }
  0x75   : > { %5170 = vst [vmem:[#allocation81_spill] sm:$0xff] %v3822_v18  ;;  %v3843_v18 = vadd.s32 928, %v3495_v1 }
  0x76   : > { %5171 = vst [vmem:[#allocation82_spill] sm:$0xff] %v3825_v2  ;;  %v3846_v2 = vadd.s32 936, %v3495_v1 }
  0x77   : > { %5172 = vst [vmem:[#allocation83_spill] sm:$0xff] %v3828_v50  ;;  %v3849_v50 = vadd.s32 944, %v3495_v1 }
  0x78   : > { %5173 = vst [vmem:[#allocation84_spill] sm:$0xff] %v3831_v34  ;;  %v3852_v34 = vadd.s32 952, %v3495_v1 }
  0x79   : > { %5174 = vst [vmem:[#allocation85_spill] sm:$0xff] %v3834_v17  ;;  %v3855_v17 = vadd.s32 960, %v3495_v1 }
  0x7a   : > { %5175 = vst [vmem:[#allocation86_spill] sm:$0xff] %v3837_v49  ;;  %v3858_v49 = vadd.s32 968, %v3495_v1 }
  0x7b   : > { %5176 = vst [vmem:[#allocation87_spill] sm:$0xff] %v3840_v33  ;;  %v3861_v33 = vadd.s32 976, %v3495_v1 }
  0x7c   : > { %5177 = vst [vmem:[#allocation88_spill] sm:$0xff] %v3843_v18  ;;  %v3864_v18 = vadd.s32 984, %v3495_v1 }
  0x7d   : > { %5178 = vst [vmem:[#allocation89_spill] sm:$0xff] %v3846_v2  ;;  %v3867_v2 = vadd.s32 992, %v3495_v1 }
  0x7e   : > { %5179 = vst [vmem:[#allocation90_spill] sm:$0xff] %v3849_v50  ;;  %v3870_v50 = vadd.s32 1000, %v3495_v1 }
  0x7f   : > { %5180 = vst [vmem:[#allocation91_spill] sm:$0xff] %v3852_v34  ;;  %v3873_v34 = vadd.s32 1008, %v3495_v1 }
  0x80   : > { %5181 = vst [vmem:[#allocation92_spill] sm:$0xff] %v3855_v17  ;;  %v3876_v17 = vadd.s32 1016, %v3495_v1 }
  0x81   : > { %5182 = vst [vmem:[#allocation93_spill] sm:$0xff] %v3858_v49 }
  0x82   : > { %5183 = vst [vmem:[#allocation94_spill] sm:$0xff] %v3861_v33 }
  0x83   : > { %5184 = vst [vmem:[#allocation95_spill] sm:$0xff] %v3864_v18  ;;  %494 = sbr.rel (%p2548_p4) target bundleno = 201 (0xc9), region = 40 }
  0x84   : > { %5185 = vst [vmem:[#allocation96_spill] sm:$0xff] %v3867_v2 }
  0x85   : > { %5186 = vst [vmem:[#allocation97_spill] sm:$0xff] %v3870_v50 }
  0x86   : > { %5187 = vst [vmem:[#allocation98_spill] sm:$0xff] %v3873_v34 }
  0x87   : > { %5188 = vst [vmem:[#allocation99_spill] sm:$0xff] %v3876_v17 }
  0x88   : > { %v3344_v49 = vmov 0.0  }
  0x89   : > { %495 = vst [vmem:[%s3880_s7] sm:$0xff] %v3344_v49 }
  0x8a   : > { %496 = vst [vmem:[%s3880_s7 + $0x8] sm:$0xff] %v3344_v49 }
  0x8b   : > { %497 = vst [vmem:[%s3880_s7 + $0x10] sm:$0xff] %v3344_v49 }
  0x8c   : > { %498 = vst [vmem:[%s3880_s7 + $0x18] sm:$0xff] %v3344_v49 }
  0x8d   : > { %499 = vst [vmem:[%s3880_s7 + $0x20] sm:$0xff] %v3344_v49 }
  0x8e   : > { %500 = vst [vmem:[%s3880_s7 + $0x28] sm:$0xff] %v3344_v49 }
  0x8f   : > { %501 = vst [vmem:[%s3880_s7 + $0x30] sm:$0xff] %v3344_v49 }
  0x90   : > { %502 = vst [vmem:[%s3880_s7 + $0x38] sm:$0xff] %v3344_v49 }
  0x91   : > { %503 = vst [vmem:[%s3880_s7 + $0x40] sm:$0xff] %v3344_v49 }
  0x92   : > { %504 = vst [vmem:[%s3880_s7 + $0x48] sm:$0xff] %v3344_v49 }
  0x93   : > { %505 = vst [vmem:[%s3880_s7 + $0x50] sm:$0xff] %v3344_v49 }
  0x94   : > { %506 = vst [vmem:[%s3880_s7 + $0x58] sm:$0xff] %v3344_v49 }
  0x95   : > { %507 = vst [vmem:[%s3880_s7 + $0x60] sm:$0xff] %v3344_v49 }
  0x96   : > { %508 = vst [vmem:[%s3880_s7 + $0x68] sm:$0xff] %v3344_v49 }
  0x97   : > { %509 = vst [vmem:[%s3880_s7 + $0x70] sm:$0xff] %v3344_v49 }
  0x98   : > { %510 = vst [vmem:[%s3880_s7 + $0x78] sm:$0xff] %v3344_v49 }
  0x99   : > { %511 = vst [vmem:[%s3880_s7 + $0x80] sm:$0xff] %v3344_v49 }
  0x9a   : > { %512 = vst [vmem:[%s3880_s7 + $0x88] sm:$0xff] %v3344_v49 }
  0x9b   : > { %513 = vst [vmem:[%s3880_s7 + $0x90] sm:$0xff] %v3344_v49 }
  0x9c   : > { %514 = vst [vmem:[%s3880_s7 + $0x98] sm:$0xff] %v3344_v49 }
  0x9d   : > { %515 = vst [vmem:[%s3880_s7 + $0xa0] sm:$0xff] %v3344_v49 }
  0x9e   : > { %516 = vst [vmem:[%s3880_s7 + $0xa8] sm:$0xff] %v3344_v49 }
  0x9f   : > { %517 = vst [vmem:[%s3880_s7 + $0xb0] sm:$0xff] %v3344_v49 }
  0xa0   : > { %518 = vst [vmem:[%s3880_s7 + $0xb8] sm:$0xff] %v3344_v49 }
  0xa1   : > { %519 = vst [vmem:[%s3880_s7 + $0xc0] sm:$0xff] %v3344_v49 }
  0xa2   : > { %520 = vst [vmem:[%s3880_s7 + $0xc8] sm:$0xff] %v3344_v49 }
  0xa3   : > { %521 = vst [vmem:[%s3880_s7 + $0xd0] sm:$0xff] %v3344_v49 }
  0xa4   : > { %522 = vst [vmem:[%s3880_s7 + $0xd8] sm:$0xff] %v3344_v49 }
  0xa5   : > { %523 = vst [vmem:[%s3880_s7 + $0xe0] sm:$0xff] %v3344_v49 }
  0xa6   : > { %524 = vst [vmem:[%s3880_s7 + $0xe8] sm:$0xff] %v3344_v49 }
  0xa7   : > { %525 = vst [vmem:[%s3880_s7 + $0xf0] sm:$0xff] %v3344_v49 }
  0xa8   : > { %526 = vst [vmem:[%s3880_s7 + $0xf8] sm:$0xff] %v3344_v49 }
  0xa9   : > { %527 = vst [vmem:[%s3880_s7 + $0x100] sm:$0xff] %v3344_v49 }
  0xaa   : > { %528 = vst [vmem:[%s3880_s7 + $0x108] sm:$0xff] %v3344_v49 }
  0xab   : > { %529 = vst [vmem:[%s3880_s7 + $0x110] sm:$0xff] %v3344_v49 }
  0xac   : > { %530 = vst [vmem:[%s3880_s7 + $0x118] sm:$0xff] %v3344_v49 }
  0xad   : > { %531 = vst [vmem:[%s3880_s7 + $0x120] sm:$0xff] %v3344_v49 }
  0xae   : > { %532 = vst [vmem:[%s3880_s7 + $0x128] sm:$0xff] %v3344_v49 }
  0xaf   : > { %533 = vst [vmem:[%s3880_s7 + $0x130] sm:$0xff] %v3344_v49 }
  0xb0   : > { %534 = vst [vmem:[%s3880_s7 + $0x138] sm:$0xff] %v3344_v49 }
  0xb1   : > { %535 = vst [vmem:[%s3880_s7 + $0x140] sm:$0xff] %v3344_v49 }
  0xb2   : > { %536 = vst [vmem:[%s3880_s7 + $0x148] sm:$0xff] %v3344_v49 }
  0xb3   : > { %537 = vst [vmem:[%s3880_s7 + $0x150] sm:$0xff] %v3344_v49 }
  0xb4   : > { %538 = vst [vmem:[%s3880_s7 + $0x158] sm:$0xff] %v3344_v49 }
  0xb5   : > { %539 = vst [vmem:[%s3880_s7 + $0x160] sm:$0xff] %v3344_v49 }
  0xb6   : > { %540 = vst [vmem:[%s3880_s7 + $0x168] sm:$0xff] %v3344_v49 }
  0xb7   : > { %541 = vst [vmem:[%s3880_s7 + $0x170] sm:$0xff] %v3344_v49 }
  0xb8   : > { %542 = vst [vmem:[%s3880_s7 + $0x178] sm:$0xff] %v3344_v49 }
  0xb9   : > { %543 = vst [vmem:[%s3880_s7 + $0x180] sm:$0xff] %v3344_v49 }
  0xba   : > { %544 = vst [vmem:[%s3880_s7 + $0x188] sm:$0xff] %v3344_v49 }
  0xbb   : > { %545 = vst [vmem:[%s3880_s7 + $0x190] sm:$0xff] %v3344_v49 }
  0xbc   : > { %546 = vst [vmem:[%s3880_s7 + $0x198] sm:$0xff] %v3344_v49 }
  0xbd   : > { %547 = vst [vmem:[%s3880_s7 + $0x1a0] sm:$0xff] %v3344_v49 }
  0xbe   : > { %548 = vst [vmem:[%s3880_s7 + $0x1a8] sm:$0xff] %v3344_v49 }
  0xbf   : > { %549 = vst [vmem:[%s3880_s7 + $0x1b0] sm:$0xff] %v3344_v49 }
  0xc0   : > { %550 = vst [vmem:[%s3880_s7 + $0x1b8] sm:$0xff] %v3344_v49 }
  0xc1   : > { %551 = vst [vmem:[%s3880_s7 + $0x1c0] sm:$0xff] %v3344_v49 }
  0xc2   : > { %552 = vst [vmem:[%s3880_s7 + $0x1c8] sm:$0xff] %v3344_v49 }
  0xc3   : > { %553 = vst [vmem:[%s3880_s7 + $0x1d0] sm:$0xff] %v3344_v49 }
  0xc4   : > { %554 = vst [vmem:[%s3880_s7 + $0x1d8] sm:$0xff] %v3344_v49 }
  0xc5   : > { %555 = vst [vmem:[%s3880_s7 + $0x1e0] sm:$0xff] %v3344_v49 }
  0xc6   : > { %556 = vst [vmem:[%s3880_s7 + $0x1e8] sm:$0xff] %v3344_v49 }
  0xc7   : > { %557 = vst [vmem:[%s3880_s7 + $0x1f0] sm:$0xff] %v3344_v49 }
  0xc8   : > { %558 = vst [vmem:[%s3880_s7 + $0x1f8] sm:$0xff] %v3344_v49 }
  0xc9 PF: > { %p2549_p5 = scmp.le.s32.totalorder %s3493_s22, 0 }
  0xca   : > { %s2550_s27 = sshll.u32 (!%p2549_p5), %s3490_s21, 7  ;;  %p2807_p6 = scmp.le.s32.totalorder (!%p2549_p5), %s3493_s22, 1 }
  0xcb   : > { %562 = sbr.rel (%p2549_p5) target bundleno = 917 (0x395), region = 44  ;;  %s4013_s28 = sshra.s32 (!%p2549_p5), %s2550_s27, 7 }
  0xcc   : > { %s575_s30 = scalar_lea.vmem (!%p2549_p5), %s192_s17, %s4013_s28 [#allocation6]  ;;  %s4206_s5 = scalar_lea.vmem (!%p2549_p5), %s3482_s19, %s4013_s28 [#allocation9] }
  0xd0   : > { %v4018_v33 = vld [vmem:[%s575_s30] ss:$0 sm:$0xff]  ;;  %v3345_v49 = vmov 1.0   ;;  %s4487_s6 = smov (!%p2807_p6), 1  }
  0xd1   : > { %vm625_vm0 = vcmp.eq.s32.totalorder %v3636_v48, %v4018_v33  ;;  %vm641_vm1 = vcmp.eq.s32.totalorder %v3684_v0, %v4018_v33  ;;  %vm593_vm2 = vcmp.eq.s32.totalorder %v3540_v16, %v4018_v33  ;;  %vm609_vm3 = vcmp.eq.s32.totalorder %v3588_v32, %v4018_v33 }
  0xd2   : > { %2711 = vmatpush.xpose.msk.msra.mxu2 %vm625_vm0, %v3345_v49  ;;  %2727 = vmatpush.xpose.msk.msra.mxu3 %vm641_vm1, %v3345_v49  ;;  %vm624_vm4 = vcmp.eq.s32.totalorder %v3633_v47, %v4018_v33  ;;  %vm640_vm5 = vcmp.eq.s32.totalorder %v3681_v63, %v4018_v33  ;;  %vm592_vm6 = vcmp.eq.s32.totalorder %v3537_v15, %v4018_v33 }
  0xd3   : > { %2679 = vmatpush.xpose.msk.msra.mxu0 %vm593_vm2, %v3345_v49  ;;  %2695 = vmatpush.xpose.msk.msra.mxu1 %vm609_vm3, %v3345_v49  ;;  %vm608_vm7 = vcmp.eq.s32.totalorder %v3585_v31, %v4018_v33  ;;  %vm623_vm8 = vcmp.eq.s32.totalorder %v3630_v46, %v4018_v33  ;;  %vm639_vm9 = vcmp.eq.s32.totalorder %v3678_v62, %v4018_v33 }
  0xd4   : > { %vm591_vm10 = vcmp.eq.s32.totalorder %v3534_v14, %v4018_v33  ;;  %vm607_vm11 = vcmp.eq.s32.totalorder %v3582_v30, %v4018_v33  ;;  %vm622_vm12 = vcmp.eq.s32.totalorder %v3627_v45, %v4018_v33  ;;  %vm638_vm13 = vcmp.eq.s32.totalorder %v3675_v61, %v4018_v33 }
  0xd5   : > { %vm590_vm14 = vcmp.eq.s32.totalorder %v3531_v13, %v4018_v33  ;;  %vm606_vm15 = vcmp.eq.s32.totalorder %v3579_v29, %v4018_v33  ;;  %vm621_vm0 = vcmp.eq.s32.totalorder %v3624_v44, %v4018_v33  ;;  %vm637_vm1 = vcmp.eq.s32.totalorder %v3672_v60, %v4018_v33 }
  0xd6   : > { %2712 = vmatpush.xpose.msk.msra.mxu2 %vm624_vm4, %v3345_v49  ;;  %2728 = vmatpush.xpose.msk.msra.mxu3 %vm640_vm5, %v3345_v49  ;;  %vm589_vm2 = vcmp.eq.s32.totalorder %v3528_v12, %v4018_v33  ;;  %vm605_vm3 = vcmp.eq.s32.totalorder %v3576_v28, %v4018_v33  ;;  %vm620_vm4 = vcmp.eq.s32.totalorder %v3621_v43, %v4018_v33 }
  0xd7   : > { %2680 = vmatpush.xpose.msk.msra.mxu0 %vm592_vm6, %v3345_v49  ;;  %2696 = vmatpush.xpose.msk.msra.mxu1 %vm608_vm7, %v3345_v49  ;;  %vm636_vm5 = vcmp.eq.s32.totalorder %v3669_v59, %v4018_v33  ;;  %vm588_vm6 = vcmp.eq.s32.totalorder %v3525_v11, %v4018_v33  ;;  %vm604_vm7 = vcmp.eq.s32.totalorder %v3573_v27, %v4018_v33 }
  0xda   : > { %2713 = vmatpush.xpose.msk.msra.mxu2 %vm623_vm8, %v3345_v49  ;;  %2729 = vmatpush.xpose.msk.msra.mxu3 %vm639_vm9, %v3345_v49  ;;  %vm619_vm8 = vcmp.eq.s32.totalorder %v3618_v42, %v4018_v33  ;;  %vm635_vm9 = vcmp.eq.s32.totalorder %v3666_v58, %v4018_v33 }
  0xdb   : > { %2681 = vmatpush.xpose.msk.msra.mxu0 %vm591_vm10, %v3345_v49  ;;  %2697 = vmatpush.xpose.msk.msra.mxu1 %vm607_vm11, %v3345_v49  ;;  %vm587_vm10 = vcmp.eq.s32.totalorder %v3522_v10, %v4018_v33  ;;  %vm603_vm11 = vcmp.eq.s32.totalorder %v3570_v26, %v4018_v33 }
  0xde   : > { %2714 = vmatpush.xpose.msk.msra.mxu2 %vm622_vm12, %v3345_v49  ;;  %2730 = vmatpush.xpose.msk.msra.mxu3 %vm638_vm13, %v3345_v49  ;;  %vm618_vm12 = vcmp.eq.s32.totalorder %v3615_v41, %v4018_v33  ;;  %vm634_vm13 = vcmp.eq.s32.totalorder %v3663_v57, %v4018_v33 }
  0xdf   : > { %2682 = vmatpush.xpose.msk.msra.mxu0 %vm590_vm14, %v3345_v49  ;;  %2698 = vmatpush.xpose.msk.msra.mxu1 %vm606_vm15, %v3345_v49  ;;  %vm586_vm14 = vcmp.eq.s32.totalorder %v3519_v9, %v4018_v33  ;;  %vm602_vm15 = vcmp.eq.s32.totalorder %v3567_v25, %v4018_v33 }
  0xe2   : > { %2715 = vmatpush.xpose.msk.msra.mxu2 %vm621_vm0, %v3345_v49  ;;  %2731 = vmatpush.xpose.msk.msra.mxu3 %vm637_vm1, %v3345_v49  ;;  %vm617_vm0 = vcmp.eq.s32.totalorder %v3612_v40, %v4018_v33  ;;  %vm633_vm1 = vcmp.eq.s32.totalorder %v3660_v56, %v4018_v33 }
  0xe3   : > { %2683 = vmatpush.xpose.msk.msra.mxu0 %vm589_vm2, %v3345_v49  ;;  %2699 = vmatpush.xpose.msk.msra.mxu1 %vm605_vm3, %v3345_v49  ;;  %vm585_vm2 = vcmp.eq.s32.totalorder %v3516_v8, %v4018_v33  ;;  %vm601_vm3 = vcmp.eq.s32.totalorder %v3564_v24, %v4018_v33 }
  0xe6   : > { %2716 = vmatpush.xpose.msk.msra.mxu2 %vm620_vm4, %v3345_v49  ;;  %2732 = vmatpush.xpose.msk.msra.mxu3 %vm636_vm5, %v3345_v49  ;;  %vm616_vm4 = vcmp.eq.s32.totalorder %v3609_v39, %v4018_v33  ;;  %vm632_vm5 = vcmp.eq.s32.totalorder %v3657_v55, %v4018_v33 }
  0xe7   : > { %2684 = vmatpush.xpose.msk.msra.mxu0 %vm588_vm6, %v3345_v49  ;;  %2700 = vmatpush.xpose.msk.msra.mxu1 %vm604_vm7, %v3345_v49  ;;  %vm584_vm6 = vcmp.eq.s32.totalorder %v3513_v7, %v4018_v33  ;;  %vm600_vm7 = vcmp.eq.s32.totalorder %v3561_v23, %v4018_v33 }
  0xea   : > { %2717 = vmatpush.xpose.msk.msra.mxu2 %vm619_vm8, %v3345_v49  ;;  %2733 = vmatpush.xpose.msk.msra.mxu3 %vm635_vm9, %v3345_v49  ;;  %vm615_vm8 = vcmp.eq.s32.totalorder %v3606_v38, %v4018_v33  ;;  %vm631_vm9 = vcmp.eq.s32.totalorder %v3654_v54, %v4018_v33 }
  0xeb   : > { %2685 = vmatpush.xpose.msk.msra.mxu0 %vm587_vm10, %v3345_v49  ;;  %2701 = vmatpush.xpose.msk.msra.mxu1 %vm603_vm11, %v3345_v49  ;;  %vm583_vm10 = vcmp.eq.s32.totalorder %v3510_v6, %v4018_v33  ;;  %vm599_vm11 = vcmp.eq.s32.totalorder %v3558_v22, %v4018_v33 }
  0xee   : > { %2718 = vmatpush.xpose.msk.msra.mxu2 %vm618_vm12, %v3345_v49  ;;  %2734 = vmatpush.xpose.msk.msra.mxu3 %vm634_vm13, %v3345_v49  ;;  %vm614_vm12 = vcmp.eq.s32.totalorder %v3603_v37, %v4018_v33  ;;  %vm630_vm13 = vcmp.eq.s32.totalorder %v3651_v53, %v4018_v33 }
  0xef   : > { %2686 = vmatpush.xpose.msk.msra.mxu0 %vm586_vm14, %v3345_v49  ;;  %2702 = vmatpush.xpose.msk.msra.mxu1 %vm602_vm15, %v3345_v49  ;;  %vm582_vm14 = vcmp.eq.s32.totalorder %v3507_v5, %v4018_v33  ;;  %vm598_vm15 = vcmp.eq.s32.totalorder %v3555_v21, %v4018_v33 }
  0xf2   : > { %2719 = vmatpush.xpose.msk.msra.mxu2 %vm617_vm0, %v3345_v49  ;;  %2735 = vmatpush.xpose.msk.msra.mxu3 %vm633_vm1, %v3345_v49  ;;  %vm613_vm0 = vcmp.eq.s32.totalorder %v3600_v36, %v4018_v33  ;;  %vm629_vm1 = vcmp.eq.s32.totalorder %v3648_v52, %v4018_v33 }
  0xf3   : > { %2687 = vmatpush.xpose.msk.msra.mxu0 %vm585_vm2, %v3345_v49  ;;  %2703 = vmatpush.xpose.msk.msra.mxu1 %vm601_vm3, %v3345_v49  ;;  %vm581_vm2 = vcmp.eq.s32.totalorder %v3504_v4, %v4018_v33  ;;  %vm597_vm3 = vcmp.eq.s32.totalorder %v3552_v20, %v4018_v33  ;;  %v5192_v20 = vld [vmem:[#allocation26_spill] sm:$0xff] }
  0xf4   : > { %v574_v4 = vld [vmem:[%s4206_s5 + $0x38] sm:$0xff] }
  0xf6   : > { %2720 = vmatpush.xpose.msk.msra.mxu2 %vm616_vm4, %v3345_v49  ;;  %2736 = vmatpush.xpose.msk.msra.mxu3 %vm632_vm5, %v3345_v49  ;;  %vm612_vm4 = vcmp.eq.s32.totalorder %v3597_v35, %v4018_v33  ;;  %vm628_vm5 = vcmp.eq.s32.totalorder %v3645_v51, %v4018_v33  ;;  %v5189_v35 = vld [vmem:[#allocation30_spill] sm:$0xff]  ;;  %v5190_v51 = vld [vmem:[#allocation33_spill] sm:$0xff] }
  0xf7   : > { %2688 = vmatpush.xpose.msk.msra.mxu0 %vm584_vm6, %v3345_v49  ;;  %2704 = vmatpush.xpose.msk.msra.mxu1 %vm600_vm7, %v3345_v49  ;;  %vm580_vm6 = vcmp.eq.s32.totalorder %v3501_v3, %v4018_v33  ;;  %vm596_vm7 = vcmp.eq.s32.totalorder %v3549_v19, %v4018_v33  ;;  %v5191_v3 = vld [vmem:[#allocation17_spill] sm:$0xff] }
  0xf8   : > { %v5193_v19 = vld [vmem:[#allocation29_spill] sm:$0xff] }
  0xfa   : > { %2721 = vmatpush.xpose.msk.msra.mxu2 %vm615_vm8, %v3345_v49  ;;  %2737 = vmatpush.xpose.msk.msra.mxu3 %vm631_vm9, %v3345_v49  ;;  %vm611_vm8 = vcmp.eq.s32.totalorder %v5189_v35, %v4018_v33  ;;  %vm627_vm9 = vcmp.eq.s32.totalorder %v5190_v51, %v4018_v33  ;;  %v5194_v35 = vld [vmem:[#allocation32_spill] sm:$0xff]  ;;  %v5197_v51 = vld [vmem:[#allocation51_spill] sm:$0xff] }
  0xfb   : > { %2689 = vmatpush.xpose.msk.msra.mxu0 %vm583_vm10, %v3345_v49  ;;  %2705 = vmatpush.xpose.msk.msra.mxu1 %vm599_vm11, %v3345_v49  ;;  %vm579_vm10 = vcmp.eq.s32.totalorder %v5191_v3, %v4018_v33  ;;  %vm595_vm11 = vcmp.eq.s32.totalorder %v5192_v20, %v4018_v33  ;;  %v5195_v3 = vld [vmem:[#allocation83_spill] sm:$0xff] }
  0xfc   : > { %v4219_v20 = vld [vmem:[%s4206_s5] sm:$0xff] }
  0xfe   : > { %2722 = vmatpush.xpose.msk.msra.mxu2 %vm614_vm12, %v3345_v49  ;;  %2738 = vmatpush.xpose.msk.msra.mxu3 %vm630_vm13, %v3345_v49  ;;  %vm610_vm12 = vcmp.eq.s32.totalorder %v5193_v19, %v4018_v33  ;;  %vm626_vm13 = vcmp.eq.s32.totalorder %v5194_v35, %v4018_v33  ;;  %v5196_v19 = vld [vmem:[#allocation25_spill] sm:$0xff]  ;;  %v5198_v35 = vld [vmem:[#allocation67_spill] sm:$0xff] }
  0xff   : > { %2690 = vmatpush.xpose.msk.msra.mxu0 %vm582_vm14, %v3345_v49  ;;  %2706 = vmatpush.xpose.msk.msra.mxu1 %vm598_vm15, %v3345_v49  ;;  %vm689_vm14 = vcmp.eq.s32.totalorder %v5195_v3, %v4018_v33  ;;  %vm705_vm15 = vcmp.eq.s32.totalorder %v3876_v17, %v4018_v33  ;;  %v5199_v3 = vld [vmem:[#allocation82_spill] sm:$0xff] }
 0x100   : > { %v4405_v17 = vld [vmem:[%s4206_s5 + $0x30] sm:$0xff] }
 0x102   : > { %2723 = vmatpush.xpose.msk.msra.mxu2 %vm613_vm0, %v3345_v49  ;;  %2739 = vmatpush.xpose.msk.msra.mxu3 %vm629_vm1, %v3345_v49  ;;  %vm578_vm0 = vcmp.eq.s32.totalorder %v3495_v1, %v4018_v33  ;;  %vm594_vm1 = vcmp.eq.s32.totalorder %v5196_v19, %v4018_v33  ;;  %v5200_v19 = vld [vmem:[#allocation50_spill] sm:$0xff]  ;;  %v4374_v1 = vld [vmem:[%s4206_s5 + $0x28] sm:$0xff] }
 0x103   : > { %2691 = vmatpush.xpose.msk.msra.mxu0 %vm581_vm2, %v3345_v49  ;;  %2707 = vmatpush.xpose.msk.msra.mxu1 %vm597_vm3, %v3345_v49  ;;  %vm657_vm2 = vcmp.eq.s32.totalorder %v5197_v51, %v4018_v33  ;;  %vm673_vm3 = vcmp.eq.s32.totalorder %v5198_v35, %v4018_v33  ;;  %v5201_v51 = vld [vmem:[#allocation66_spill] sm:$0xff]  ;;  %v5202_v35 = vld [vmem:[#allocation81_spill] sm:$0xff] }
 0x106   : > { %2724 = vmatpush.xpose.msk.msra.mxu2 %vm612_vm4, %v3345_v49  ;;  %2740 = vmatpush.xpose.msk.msra.mxu3 %vm628_vm5, %v3345_v49  ;;  %vm688_vm4 = vcmp.eq.s32.totalorder %v5199_v3, %v4018_v33  ;;  %vm704_vm5 = vcmp.eq.s32.totalorder %v3873_v34, %v4018_v33  ;;  %v4250_v3 = vld [vmem:[%s4206_s5 + $0x8] sm:$0xff]  ;;  %v4343_v34 = vld [vmem:[%s4206_s5 + $0x20] sm:$0xff] }
 0x107   : > { %2692 = vmatpush.xpose.msk.msra.mxu0 %vm580_vm6, %v3345_v49  ;;  %2708 = vmatpush.xpose.msk.msra.mxu1 %vm596_vm7, %v3345_v49  ;;  %vm656_vm6 = vcmp.eq.s32.totalorder %v5200_v19, %v4018_v33  ;;  %vm672_vm7 = vcmp.eq.s32.totalorder %v5201_v51, %v4018_v33  ;;  %v5203_v19 = vld [vmem:[#allocation49_spill] sm:$0xff] }
 0x108   : > { %v5204_v51 = vld [vmem:[#allocation65_spill] sm:$0xff] }
 0x10a   : > { %2725 = vmatpush.xpose.msk.msra.mxu2 %vm611_vm8, %v3345_v49  ;;  %2741 = vmatpush.xpose.msk.msra.mxu3 %vm627_vm9, %v3345_v49  ;;  %vm687_vm8 = vcmp.eq.s32.totalorder %v5202_v35, %v4018_v33  ;;  %vm703_vm9 = vcmp.eq.s32.totalorder %v3870_v50, %v4018_v33  ;;  %v5205_v35 = vld [vmem:[#allocation80_spill] sm:$0xff]  ;;  %v4312_v50 = vld [vmem:[%s4206_s5 + $0x18] sm:$0xff] }
 0x10b   : > { %2693 = vmatpush.xpose.msk.msra.mxu0 %vm579_vm10, %v3345_v49  ;;  %2709 = vmatpush.xpose.msk.msra.mxu1 %vm595_vm11, %v3345_v49  ;;  %vm655_vm10 = vcmp.eq.s32.totalorder %v5203_v19, %v4018_v33  ;;  %vm671_vm11 = vcmp.eq.s32.totalorder %v5204_v51, %v4018_v33  ;;  %v5206_v19 = vld [vmem:[#allocation48_spill] sm:$0xff] }
 0x10c   : > { %v5207_v51 = vld [vmem:[#allocation64_spill] sm:$0xff] }
 0x10e   : > { %2726 = vmatpush.xpose.msk.msra.mxu2 %vm610_vm12, %v3345_v49  ;;  %2742 = vmatpush.xpose.msk.msra.mxu3 %vm626_vm13, %v3345_v49  ;;  %vm686_vm12 = vcmp.eq.s32.totalorder %v5205_v35, %v4018_v33  ;;  %vm702_vm13 = vcmp.eq.s32.totalorder %v3867_v2, %v4018_v33  ;;  %v5208_v35 = vld [vmem:[#allocation79_spill] sm:$0xff]  ;;  %v4281_v2 = vld [vmem:[%s4206_s5 + $0x10] sm:$0xff] }
 0x10f   : > { %2694 = vmatpush.xpose.msk.msra.mxu0 %vm578_vm0, %v3345_v49  ;;  %2710 = vmatpush.xpose.msk.msra.mxu1 %vm594_vm1, %v3345_v49  ;;  %vm685_vm0 = vcmp.eq.s32.totalorder %v5208_v35, %v4018_v33  ;;  %vm701_vm1 = vcmp.eq.s32.totalorder %v3864_v18, %v4018_v33  ;;  %v5211_v35 = vld [vmem:[#allocation78_spill] sm:$0xff] }
 0x110   : > { %v5212_v18 = vld [vmem:[#allocation94_spill] sm:$0xff] }
 0x111   : > { %1060 = vmatmul.f32.vlgmr.msra.gmra.mxu2 %v4219_v20  ;;  %1101 = vmatmul.f32.vlgmr.msra.gmra.mxu3 %v4219_v20 }
 0x112   : > { %2775 = vmatpush.xpose.msk.msrb.mxu2 %vm689_vm14, %v3345_v49  ;;  %2791 = vmatpush.xpose.msk.msrb.mxu3 %vm705_vm15, %v3345_v49  ;;  %vm654_vm14 = vcmp.eq.s32.totalorder %v5206_v19, %v4018_v33  ;;  %vm670_vm15 = vcmp.eq.s32.totalorder %v5207_v51, %v4018_v33  ;;  %v5209_v19 = vld [vmem:[#allocation47_spill] sm:$0xff] }
 0x113   : > { %2743 = vmatpush.xpose.msk.msrb.mxu0 %vm657_vm2, %v3345_v49  ;;  %2759 = vmatpush.xpose.msk.msrb.mxu1 %vm673_vm3, %v3345_v49  ;;  %vm653_vm2 = vcmp.eq.s32.totalorder %v5209_v19, %v4018_v33  ;;  %v5210_v51 = vld [vmem:[#allocation63_spill] sm:$0xff]  ;;  %v5213_v19 = vld [vmem:[#allocation46_spill] sm:$0xff] }
 0x114   : > { %978 = vmatmul.f32.vlgmr.msra.gmra.mxu0 %v4219_v20  ;;  %1019 = vmatmul.f32.vlgmr.msra.gmra.mxu1 %v4219_v20  ;;  %vm669_vm3 = vcmp.eq.s32.totalorder %v5210_v51, %v4018_v33  ;;  %v5214_v51 = vld [vmem:[#allocation62_spill] sm:$0xff] }
 0x116   : > { %2776 = vmatpush.xpose.msk.msrb.mxu2 %vm688_vm4, %v3345_v49  ;;  %2792 = vmatpush.xpose.msk.msrb.mxu3 %vm704_vm5, %v3345_v49  ;;  %vm684_vm4 = vcmp.eq.s32.totalorder %v5211_v35, %v4018_v33  ;;  %vm700_vm5 = vcmp.eq.s32.totalorder %v5212_v18, %v4018_v33  ;;  %v5215_v18 = vld [vmem:[#allocation77_spill] sm:$0xff] }
 0x117   : > { %2744 = vmatpush.xpose.msk.msrb.mxu0 %vm656_vm6, %v3345_v49  ;;  %2760 = vmatpush.xpose.msk.msrb.mxu1 %vm672_vm7, %v3345_v49  ;;  %vm652_vm6 = vcmp.eq.s32.totalorder %v5213_v19, %v4018_v33  ;;  %vm668_vm7 = vcmp.eq.s32.totalorder %v5214_v51, %v4018_v33  ;;  %v5216_v35 = vld [vmem:[#allocation93_spill] sm:$0xff] }
 0x118   : > { %v5217_v19 = vld [vmem:[#allocation45_spill] sm:$0xff] }
 0x119   : > { %1063 = vmatmul.f32.gmra.mxu2 %v4250_v3  ;;  %1104 = vmatmul.f32.gmra.mxu3 %v4250_v3  ;;  %v5218_v51 = vld [vmem:[#allocation61_spill] sm:$0xff] }
 0x11a   : > { %2777 = vmatpush.xpose.msk.msrb.mxu2 %vm687_vm8, %v3345_v49  ;;  %2793 = vmatpush.xpose.msk.msrb.mxu3 %vm703_vm9, %v3345_v49  ;;  %vm683_vm8 = vcmp.eq.s32.totalorder %v5215_v18, %v4018_v33  ;;  %vm699_vm9 = vcmp.eq.s32.totalorder %v5216_v35, %v4018_v33  ;;  %v5219_v18 = vld [vmem:[#allocation76_spill] sm:$0xff] }
 0x11b   : > { %2745 = vmatpush.xpose.msk.msrb.mxu0 %vm655_vm10, %v3345_v49  ;;  %2761 = vmatpush.xpose.msk.msrb.mxu1 %vm671_vm11, %v3345_v49  ;;  %vm651_vm10 = vcmp.eq.s32.totalorder %v5217_v19, %v4018_v33  ;;  %vm667_vm11 = vcmp.eq.s32.totalorder %v5218_v51, %v4018_v33  ;;  %v5220_v35 = vld [vmem:[#allocation92_spill] sm:$0xff] }
 0x11c   : > { %981 = vmatmul.f32.gmra.mxu0 %v4250_v3  ;;  %1022 = vmatmul.f32.gmra.mxu1 %v4250_v3  ;;  %v5221_v19 = vld [vmem:[#allocation44_spill] sm:$0xff] }
 0x11d   : > { %v5222_v51 = vld [vmem:[#allocation60_spill] sm:$0xff] }
 0x11e   : > { %2778 = vmatpush.xpose.msk.msrb.mxu2 %vm686_vm12, %v3345_v49  ;;  %2794 = vmatpush.xpose.msk.msrb.mxu3 %vm702_vm13, %v3345_v49  ;;  %vm682_vm12 = vcmp.eq.s32.totalorder %v5219_v18, %v4018_v33  ;;  %vm698_vm13 = vcmp.eq.s32.totalorder %v5220_v35, %v4018_v33  ;;  %v5223_v18 = vld [vmem:[#allocation75_spill] sm:$0xff] }
 0x11f   : > { %2746 = vmatpush.xpose.msk.msrb.mxu0 %vm654_vm14, %v3345_v49  ;;  %2762 = vmatpush.xpose.msk.msrb.mxu1 %vm670_vm15, %v3345_v49  ;;  %vm650_vm14 = vcmp.eq.s32.totalorder %v5221_v19, %v4018_v33  ;;  %vm666_vm15 = vcmp.eq.s32.totalorder %v5222_v51, %v4018_v33  ;;  %v5224_v35 = vld [vmem:[#allocation91_spill] sm:$0xff] }
 0x120   : > { %v5225_v19 = vld [vmem:[#allocation43_spill] sm:$0xff] }
 0x121   : > { %1066 = vmatmul.f32.gmra.mxu2 %v4281_v2  ;;  %1107 = vmatmul.f32.gmra.mxu3 %v4281_v2  ;;  %v5226_v51 = vld [vmem:[#allocation59_spill] sm:$0xff] }
 0x122   : > { %2779 = vmatpush.xpose.msk.msrb.mxu2 %vm685_vm0, %v3345_v49  ;;  %2795 = vmatpush.xpose.msk.msrb.mxu3 %vm701_vm1, %v3345_v49  ;;  %vm681_vm0 = vcmp.eq.s32.totalorder %v5223_v18, %v4018_v33  ;;  %vm697_vm1 = vcmp.eq.s32.totalorder %v5224_v35, %v4018_v33  ;;  %v5227_v18 = vld [vmem:[#allocation74_spill] sm:$0xff] }
 0x123   : > { %2747 = vmatpush.xpose.msk.msrb.mxu0 %vm653_vm2, %v3345_v49  ;;  %2763 = vmatpush.xpose.msk.msrb.mxu1 %vm669_vm3, %v3345_v49  ;;  %vm649_vm2 = vcmp.eq.s32.totalorder %v5225_v19, %v4018_v33  ;;  %vm665_vm3 = vcmp.eq.s32.totalorder %v5226_v51, %v4018_v33  ;;  %v5228_v35 = vld [vmem:[#allocation90_spill] sm:$0xff] }
 0x124   : > { %984 = vmatmul.f32.gmra.mxu0 %v4281_v2  ;;  %1025 = vmatmul.f32.gmra.mxu1 %v4281_v2  ;;  %v5229_v19 = vld [vmem:[#allocation42_spill] sm:$0xff] }
 0x125   : > { %v5230_v51 = vld [vmem:[#allocation58_spill] sm:$0xff] }
 0x126   : > { %2780 = vmatpush.xpose.msk.msrb.mxu2 %vm684_vm4, %v3345_v49  ;;  %2796 = vmatpush.xpose.msk.msrb.mxu3 %vm700_vm5, %v3345_v49  ;;  %vm680_vm4 = vcmp.eq.s32.totalorder %v5227_v18, %v4018_v33  ;;  %vm696_vm5 = vcmp.eq.s32.totalorder %v5228_v35, %v4018_v33  ;;  %v5231_v18 = vld [vmem:[#allocation73_spill] sm:$0xff] }
 0x127   : > { %2748 = vmatpush.xpose.msk.msrb.mxu0 %vm652_vm6, %v3345_v49  ;;  %2764 = vmatpush.xpose.msk.msrb.mxu1 %vm668_vm7, %v3345_v49  ;;  %vm648_vm6 = vcmp.eq.s32.totalorder %v5229_v19, %v4018_v33  ;;  %vm664_vm7 = vcmp.eq.s32.totalorder %v5230_v51, %v4018_v33  ;;  %v5232_v35 = vld [vmem:[#allocation89_spill] sm:$0xff] }
 0x128   : > { %v5233_v19 = vld [vmem:[#allocation41_spill] sm:$0xff] }
 0x129   : > { %1069 = vmatmul.f32.gmra.mxu2 %v4312_v50  ;;  %1110 = vmatmul.f32.gmra.mxu3 %v4312_v50  ;;  %v5234_v51 = vld [vmem:[#allocation57_spill] sm:$0xff] }
 0x12a   : > { %2781 = vmatpush.xpose.msk.msrb.mxu2 %vm683_vm8, %v3345_v49  ;;  %2797 = vmatpush.xpose.msk.msrb.mxu3 %vm699_vm9, %v3345_v49  ;;  %vm679_vm8 = vcmp.eq.s32.totalorder %v5231_v18, %v4018_v33  ;;  %vm695_vm9 = vcmp.eq.s32.totalorder %v5232_v35, %v4018_v33  ;;  %v5235_v18 = vld [vmem:[#allocation72_spill] sm:$0xff] }
 0x12b   : > { %2749 = vmatpush.xpose.msk.msrb.mxu0 %vm651_vm10, %v3345_v49  ;;  %2765 = vmatpush.xpose.msk.msrb.mxu1 %vm667_vm11, %v3345_v49  ;;  %vm647_vm10 = vcmp.eq.s32.totalorder %v5233_v19, %v4018_v33  ;;  %vm663_vm11 = vcmp.eq.s32.totalorder %v5234_v51, %v4018_v33  ;;  %v5236_v35 = vld [vmem:[#allocation88_spill] sm:$0xff] }
 0x12c   : > { %987 = vmatmul.f32.gmra.mxu0 %v4312_v50  ;;  %1028 = vmatmul.f32.gmra.mxu1 %v4312_v50  ;;  %v5237_v19 = vld [vmem:[#allocation40_spill] sm:$0xff] }
 0x12d   : > { %v5238_v51 = vld [vmem:[#allocation56_spill] sm:$0xff] }
 0x12e   : > { %2782 = vmatpush.xpose.msk.msrb.mxu2 %vm682_vm12, %v3345_v49  ;;  %2798 = vmatpush.xpose.msk.msrb.mxu3 %vm698_vm13, %v3345_v49  ;;  %vm678_vm12 = vcmp.eq.s32.totalorder %v5235_v18, %v4018_v33  ;;  %vm694_vm13 = vcmp.eq.s32.totalorder %v5236_v35, %v4018_v33  ;;  %v5239_v18 = vld [vmem:[#allocation71_spill] sm:$0xff] }
 0x12f   : > { %2750 = vmatpush.xpose.msk.msrb.mxu0 %vm650_vm14, %v3345_v49  ;;  %2766 = vmatpush.xpose.msk.msrb.mxu1 %vm666_vm15, %v3345_v49  ;;  %vm646_vm14 = vcmp.eq.s32.totalorder %v5237_v19, %v4018_v33  ;;  %vm662_vm15 = vcmp.eq.s32.totalorder %v5238_v51, %v4018_v33  ;;  %v5240_v35 = vld [vmem:[#allocation87_spill] sm:$0xff] }
 0x130   : > { %v5241_v19 = vld [vmem:[#allocation39_spill] sm:$0xff] }
 0x131   : > { %1072 = vmatmul.f32.gmra.mxu2 %v4343_v34  ;;  %1113 = vmatmul.f32.gmra.mxu3 %v4343_v34  ;;  %v5242_v51 = vld [vmem:[#allocation55_spill] sm:$0xff] }
 0x132   : > { %2783 = vmatpush.xpose.msk.msrb.mxu2 %vm681_vm0, %v3345_v49  ;;  %2799 = vmatpush.xpose.msk.msrb.mxu3 %vm697_vm1, %v3345_v49  ;;  %vm677_vm0 = vcmp.eq.s32.totalorder %v5239_v18, %v4018_v33  ;;  %vm693_vm1 = vcmp.eq.s32.totalorder %v5240_v35, %v4018_v33  ;;  %v5243_v18 = vld [vmem:[#allocation70_spill] sm:$0xff] }
 0x133   : > { %2751 = vmatpush.xpose.msk.msrb.mxu0 %vm649_vm2, %v3345_v49  ;;  %2767 = vmatpush.xpose.msk.msrb.mxu1 %vm665_vm3, %v3345_v49  ;;  %vm645_vm2 = vcmp.eq.s32.totalorder %v5241_v19, %v4018_v33  ;;  %vm661_vm3 = vcmp.eq.s32.totalorder %v5242_v51, %v4018_v33  ;;  %v5244_v35 = vld [vmem:[#allocation86_spill] sm:$0xff] }
 0x134   : > { %990 = vmatmul.f32.gmra.mxu0 %v4343_v34  ;;  %1031 = vmatmul.f32.gmra.mxu1 %v4343_v34  ;;  %v5245_v19 = vld [vmem:[#allocation38_spill] sm:$0xff] }
 0x135   : > { %v5246_v51 = vld [vmem:[#allocation54_spill] sm:$0xff] }
 0x136   : > { %2784 = vmatpush.xpose.msk.msrb.mxu2 %vm680_vm4, %v3345_v49  ;;  %2800 = vmatpush.xpose.msk.msrb.mxu3 %vm696_vm5, %v3345_v49  ;;  %vm676_vm4 = vcmp.eq.s32.totalorder %v5243_v18, %v4018_v33  ;;  %vm692_vm5 = vcmp.eq.s32.totalorder %v5244_v35, %v4018_v33  ;;  %v5247_v18 = vld [vmem:[#allocation69_spill] sm:$0xff] }
 0x137   : > { %2752 = vmatpush.xpose.msk.msrb.mxu0 %vm648_vm6, %v3345_v49  ;;  %2768 = vmatpush.xpose.msk.msrb.mxu1 %vm664_vm7, %v3345_v49  ;;  %vm644_vm6 = vcmp.eq.s32.totalorder %v5245_v19, %v4018_v33  ;;  %vm660_vm7 = vcmp.eq.s32.totalorder %v5246_v51, %v4018_v33  ;;  %v5248_v35 = vld [vmem:[#allocation85_spill] sm:$0xff] }
 0x138   : > { %v5249_v19 = vld [vmem:[#allocation37_spill] sm:$0xff] }
 0x139   : > { %1075 = vmatmul.f32.gmra.mxu2 %v4374_v1  ;;  %1116 = vmatmul.f32.gmra.mxu3 %v4374_v1  ;;  %v5250_v51 = vld [vmem:[#allocation53_spill] sm:$0xff] }
 0x13a   : > { %2785 = vmatpush.xpose.msk.msrb.mxu2 %vm679_vm8, %v3345_v49  ;;  %2801 = vmatpush.xpose.msk.msrb.mxu3 %vm695_vm9, %v3345_v49  ;;  %vm675_vm8 = vcmp.eq.s32.totalorder %v5247_v18, %v4018_v33  ;;  %vm691_vm9 = vcmp.eq.s32.totalorder %v5248_v35, %v4018_v33  ;;  %v5251_v18 = vld [vmem:[#allocation68_spill] sm:$0xff] }
 0x13b   : > { %2753 = vmatpush.xpose.msk.msrb.mxu0 %vm647_vm10, %v3345_v49  ;;  %2769 = vmatpush.xpose.msk.msrb.mxu1 %vm663_vm11, %v3345_v49  ;;  %vm643_vm10 = vcmp.eq.s32.totalorder %v5249_v19, %v4018_v33  ;;  %vm659_vm11 = vcmp.eq.s32.totalorder %v5250_v51, %v4018_v33  ;;  %v5252_v35 = vld [vmem:[#allocation84_spill] sm:$0xff] }
 0x13c   : > { %993 = vmatmul.f32.gmra.mxu0 %v4374_v1  ;;  %1034 = vmatmul.f32.gmra.mxu1 %v4374_v1  ;;  %v5253_v19 = vld [vmem:[#allocation36_spill] sm:$0xff] }
 0x13d   : > { %v5254_v51 = vld [vmem:[#allocation52_spill] sm:$0xff] }
 0x13e   : > { %2786 = vmatpush.xpose.msk.msrb.mxu2 %vm678_vm12, %v3345_v49  ;;  %2802 = vmatpush.xpose.msk.msrb.mxu3 %vm694_vm13, %v3345_v49  ;;  %vm674_vm12 = vcmp.eq.s32.totalorder %v5251_v18, %v4018_v33  ;;  %vm690_vm13 = vcmp.eq.s32.totalorder %v5252_v35, %v4018_v33 }
 0x13f   : > { %2754 = vmatpush.xpose.msk.msrb.mxu0 %vm646_vm14, %v3345_v49  ;;  %2770 = vmatpush.xpose.msk.msrb.mxu1 %vm662_vm15, %v3345_v49  ;;  %vm642_vm14 = vcmp.eq.s32.totalorder %v5253_v19, %v4018_v33  ;;  %vm658_vm15 = vcmp.eq.s32.totalorder %v5254_v51, %v4018_v33 }
 0x141   : > { %1078 = vmatmul.f32.gmra.mxu2 %v4405_v17  ;;  %1119 = vmatmul.f32.gmra.mxu3 %v4405_v17 }
 0x142   : > { %2787 = vmatpush.xpose.msk.msrb.mxu2 %vm677_vm0, %v3345_v49  ;;  %2803 = vmatpush.xpose.msk.msrb.mxu3 %vm693_vm1, %v3345_v49 }
 0x143   : > { %2755 = vmatpush.xpose.msk.msrb.mxu0 %vm645_vm2, %v3345_v49  ;;  %2771 = vmatpush.xpose.msk.msrb.mxu1 %vm661_vm3, %v3345_v49 }
 0x144   : > { %996 = vmatmul.f32.gmra.mxu0 %v4405_v17  ;;  %1037 = vmatmul.f32.gmra.mxu1 %v4405_v17 }
 0x146   : > { %2788 = vmatpush.xpose.msk.msrb.mxu2 %vm676_vm4, %v3345_v49  ;;  %2804 = vmatpush.xpose.msk.msrb.mxu3 %vm692_vm5, %v3345_v49 }
 0x147   : > { %2756 = vmatpush.xpose.msk.msrb.mxu0 %vm644_vm6, %v3345_v49  ;;  %2772 = vmatpush.xpose.msk.msrb.mxu1 %vm660_vm7, %v3345_v49 }
 0x149   : > { %1081 = vmatmul.f32.gmra.mxu2 %v574_v4  ;;  %1122 = vmatmul.f32.gmra.mxu3 %v574_v4 }
 0x14a   : > { %2789 = vmatpush.xpose.msk.msrb.mxu2 %vm675_vm8, %v3345_v49  ;;  %2805 = vmatpush.xpose.msk.msrb.mxu3 %vm691_vm9, %v3345_v49 }
 0x14b   : > { %2757 = vmatpush.xpose.msk.msrb.mxu0 %vm643_vm10, %v3345_v49  ;;  %2773 = vmatpush.xpose.msk.msrb.mxu1 %vm659_vm11, %v3345_v49 }
 0x14c   : > { %999 = vmatmul.f32.gmra.mxu0 %v574_v4  ;;  %1040 = vmatmul.f32.gmra.mxu1 %v574_v4 }
 0x14e   : > { %2790 = vmatpush.xpose.msk.msrb.mxu2 %vm674_vm12, %v3345_v49  ;;  %2806 = vmatpush.xpose.msk.msrb.mxu3 %vm690_vm13, %v3345_v49 }
 0x14f   : > { %2758 = vmatpush.xpose.msk.msrb.mxu0 %vm642_vm14, %v3345_v49  ;;  %2774 = vmatpush.xpose.msk.msrb.mxu1 %vm658_vm15, %v3345_v49 }
 0x151   : > { %1224 = vmatmul.f32.vlgmr.msrb.gmra.mxu2 %v4219_v20  ;;  %1265 = vmatmul.f32.vlgmr.msrb.gmra.mxu3 %v4219_v20 }
 0x154   : > { %1142 = vmatmul.f32.vlgmr.msrb.gmra.mxu0 %v4219_v20  ;;  %1183 = vmatmul.f32.vlgmr.msrb.gmra.mxu1 %v4219_v20 }
 0x159   : > { %1227 = vmatmul.f32.gmra.mxu2 %v4250_v3  ;;  %1268 = vmatmul.f32.gmra.mxu3 %v4250_v3 }
 0x15c   : > { %1145 = vmatmul.f32.gmra.mxu0 %v4250_v3  ;;  %1186 = vmatmul.f32.gmra.mxu1 %v4250_v3 }
 0x161   : > { %1230 = vmatmul.f32.gmra.mxu2 %v4281_v2  ;;  %1271 = vmatmul.f32.gmra.mxu3 %v4281_v2 }
 0x164   : > { %1148 = vmatmul.f32.gmra.mxu0 %v4281_v2  ;;  %1189 = vmatmul.f32.gmra.mxu1 %v4281_v2 }
 0x169   : > { %1233 = vmatmul.f32.gmra.mxu2 %v4312_v50  ;;  %1274 = vmatmul.f32.gmra.mxu3 %v4312_v50 }
 0x16c   : > { %1151 = vmatmul.f32.gmra.mxu0 %v4312_v50  ;;  %1192 = vmatmul.f32.gmra.mxu1 %v4312_v50 }
 0x171   : > { %1236 = vmatmul.f32.gmra.mxu2 %v4343_v34  ;;  %1277 = vmatmul.f32.gmra.mxu3 %v4343_v34 }
 0x174   : > { %1154 = vmatmul.f32.gmra.mxu0 %v4343_v34  ;;  %1195 = vmatmul.f32.gmra.mxu1 %v4343_v34 }
 0x179   : > { %1239 = vmatmul.f32.gmra.mxu2 %v4374_v1  ;;  %1280 = vmatmul.f32.gmra.mxu3 %v4374_v1 }
 0x17c   : > { %1157 = vmatmul.f32.gmra.mxu0 %v4374_v1  ;;  %1198 = vmatmul.f32.gmra.mxu1 %v4374_v1 }
 0x181   : > { %1242 = vmatmul.f32.gmra.mxu2 %v4405_v17  ;;  %1283 = vmatmul.f32.gmra.mxu3 %v4405_v17 }
 0x184   : > { %1160 = vmatmul.f32.gmra.mxu0 %v4405_v17  ;;  %1201 = vmatmul.f32.gmra.mxu1 %v4405_v17 }
 0x189   : > { %1245 = vmatmul.f32.gmra.mxu2 %v574_v4  ;;  %1286 = vmatmul.f32.gmra.mxu3 %v574_v4 }
 0x18c   : > { %1163 = vmatmul.f32.gmra.mxu0 %v574_v4  ;;  %1204 = vmatmul.f32.gmra.mxu1 %v574_v4 }
 0x191   : > { %v979_v2 = vpop.f32.mrf.mxu0  ;;  %v1020_v33 = vpop.f32.mrf.mxu1 }
 0x192   : > { %1290 = vst [vmem:[#allocation2 + $0xb0] sm:$0xff] %v979_v2 }
 0x193   : > { %1291 = vst [vmem:[#allocation2 + $0x1b0] sm:$0xff] %v1020_v33 }
 0x194   : > { %v1061_v34 = vpop.f32.mrf.mxu2  ;;  %v1102_v50 = vpop.f32.mrf.mxu3 }
 0x195   : > { %1292 = vst [vmem:[#allocation2 + $0xd8] sm:$0xff] %v1061_v34 }
 0x196   : > { %1293 = vst [vmem:[#allocation2 + $0x18] sm:$0xff] %v1102_v50 }
 0x199   : > { %v982_v1 = vpop.f32.mrf.mxu0  ;;  %v1023_v49 = vpop.f32.mrf.mxu1 }
 0x19a   : > { %1298 = vst [vmem:[#allocation2 + $0x180] sm:$0xff] %v982_v1 }
 0x19b   : > { %1299 = vst [vmem:[#allocation2 + $0x110] sm:$0xff] %v1023_v49 }
 0x19c   : > { %v1064_v20 = vpop.f32.mrf.mxu2  ;;  %v1105_v3 = vpop.f32.mrf.mxu3 }
 0x19d   : > { %1300 = vst [vmem:[#allocation2 + $0x118] sm:$0xff] %v1064_v20 }
 0x19e   : > { %1301 = vst [vmem:[#allocation2 + $0x98] sm:$0xff] %v1105_v3 }
 0x1a1   : > { %v985_v17 = vpop.f32.mrf.mxu0  ;;  %v1026_v18 = vpop.f32.mrf.mxu1 }
 0x1a2   : > { %1306 = vst [vmem:[#allocation2 + $0xe0] sm:$0xff] %v985_v17 }
 0x1a3   : > { %1307 = vst [vmem:[#allocation2 + $0x188] sm:$0xff] %v1026_v18 }
 0x1a4   : > { %v1067_v4 = vpop.f32.mrf.mxu2  ;;  %v1108_v35 = vpop.f32.mrf.mxu3 }
 0x1a5   : > { %1308 = vst [vmem:[#allocation2 + $0x138] sm:$0xff] %v1067_v4 }
 0x1a6   : > { %1309 = vst [vmem:[#allocation2 + $0x140] sm:$0xff] %v1108_v35 }
 0x1a9   : > { %v988_v19 = vpop.f32.mrf.mxu0  ;;  %v1029_v51 = vpop.f32.mrf.mxu1 }
 0x1aa   : > { %1314 = vst [vmem:[#allocation2 + $0x1e8] sm:$0xff] %v988_v19 }
 0x1ab   : > { %1315 = vst [vmem:[#allocation2 + $0xf8] sm:$0xff] %v1029_v51 }
 0x1ac   : > { %v1070_v2 = vpop.f32.mrf.mxu2  ;;  %v1111_v33 = vpop.f32.mrf.mxu3 }
 0x1ad   : > { %1316 = vst [vmem:[#allocation2 + $0x160] sm:$0xff] %v1070_v2 }
 0x1ae   : > { %1317 = vst [vmem:[#allocation2 + $0x30] sm:$0xff] %v1111_v33 }
 0x1b1   : > { %v991_v34 = vpop.f32.mrf.mxu0  ;;  %v1032_v50 = vpop.f32.mrf.mxu1 }
 0x1b2   : > { %1322 = vst [vmem:[#allocation2 + $0x148] sm:$0xff] %v991_v34 }
 0x1b3   : > { %1323 = vst [vmem:[#allocation2 + $0x1d0] sm:$0xff] %v1032_v50 }
 0x1b4   : > { %v1073_v1 = vpop.f32.mrf.mxu2  ;;  %v1114_v49 = vpop.f32.mrf.mxu3 }
 0x1b5   : > { %1324 = vst [vmem:[#allocation2 + $0x100] sm:$0xff] %v1073_v1 }
 0x1b6   : > { %1325 = vst [vmem:[#allocation2 + $0xc8] sm:$0xff] %v1114_v49 }
 0x1b9   : > { %v994_v20 = vpop.f32.mrf.mxu0  ;;  %v1035_v3 = vpop.f32.mrf.mxu1 }
 0x1ba   : > { %1330 = vst [vmem:[#allocation2 + $0x1a0] sm:$0xff] %v994_v20 }
 0x1bb   : > { %1331 = vst [vmem:[#allocation2 + $0x1f0] sm:$0xff] %v1035_v3 }
 0x1bc   : > { %v1076_v17 = vpop.f32.mrf.mxu2  ;;  %v1117_v18 = vpop.f32.mrf.mxu3 }
 0x1bd   : > { %1332 = vst [vmem:[#allocation2 + $0xe8] sm:$0xff] %v1076_v17 }
 0x1be   : > { %1333 = vst [vmem:[#allocation2 + $0x78] sm:$0xff] %v1117_v18 }
 0x1c1   : > { %v997_v4 = vpop.f32.mrf.mxu0  ;;  %v1038_v35 = vpop.f32.mrf.mxu1 }
 0x1c2   : > { %1338 = vst [vmem:[#allocation2 + $0xb8] sm:$0xff] %v997_v4 }
 0x1c3   : > { %1339 = vst [vmem:[#allocation2 + $0x88] sm:$0xff] %v1038_v35 }
 0x1c4   : > { %v1079_v19 = vpop.f32.mrf.mxu2  ;;  %v1120_v51 = vpop.f32.mrf.mxu3 }
 0x1c5   : > { %1340 = vst [vmem:[#allocation2 + $0xa8] sm:$0xff] %v1079_v19 }
 0x1c6   : > { %1341 = vst [vmem:[#allocation2 + $0x1c8] sm:$0xff] %v1120_v51 }
 0x1c9   : > { %v1000_v2 = vpop.f32.mrf.mxu0  ;;  %v1041_v33 = vpop.f32.mrf.mxu1 }
 0x1ca   : > { %1346 = vst [vmem:[#allocation2 + $0x198] sm:$0xff] %v1000_v2 }
 0x1cb   : > { %1347 = vst [vmem:[#allocation2 + $0x38] sm:$0xff] %v1041_v33 }
 0x1cc   : > { %v1082_v34 = vpop.f32.mrf.mxu2  ;;  %v1123_v50 = vpop.f32.mrf.mxu3 }
 0x1cd   : > { %1348 = vst [vmem:[#allocation2 + $0xc0] sm:$0xff] %v1082_v34 }
 0x1ce   : > { %1349 = vst [vmem:[#allocation2 + $0x1c0] sm:$0xff] %v1123_v50 }
 0x1d1   : > { %v1143_v1 = vpop.f32.mrf.mxu0  ;;  %v1184_v49 = vpop.f32.mrf.mxu1 }
 0x1d2   : > { %1294 = vst [vmem:[#allocation2 + $0x50] sm:$0xff] %v1143_v1 }
 0x1d3   : > { %1295 = vst [vmem:[#allocation2 + $0x168] sm:$0xff] %v1184_v49 }
 0x1d4   : > { %v1225_v20 = vpop.f32.mrf.mxu2  ;;  %v1266_v3 = vpop.f32.mrf.mxu3 }
 0x1d5   : > { %1296 = vst [vmem:[#allocation2 + $0x130] sm:$0xff] %v1225_v20 }
 0x1d6   : > { %1297 = vst [vmem:[#allocation2 + $0x48] sm:$0xff] %v1266_v3 }
 0x1d9   : > { %v1146_v17 = vpop.f32.mrf.mxu0  ;;  %v1187_v18 = vpop.f32.mrf.mxu1 }
 0x1da   : > { %1302 = vst [vmem:[#allocation2 + $0x120] sm:$0xff] %v1146_v17 }
 0x1db   : > { %1303 = vst [vmem:[#allocation2 + $0x150] sm:$0xff] %v1187_v18 }
 0x1dc   : > { %v1228_v4 = vpop.f32.mrf.mxu2  ;;  %v1269_v35 = vpop.f32.mrf.mxu3 }
 0x1dd   : > { %1304 = vst [vmem:[#allocation2 + $0x108] sm:$0xff] %v1228_v4 }
 0x1de   : > { %1305 = vst [vmem:[#allocation2 + $0x60] sm:$0xff] %v1269_v35 }
 0x1e1   : > { %v1149_v19 = vpop.f32.mrf.mxu0  ;;  %v1190_v51 = vpop.f32.mrf.mxu1 }
 0x1e2   : > { %1310 = vst [vmem:[#allocation2 + $0x80] sm:$0xff] %v1149_v19 }
 0x1e3   : > { %1311 = vst [vmem:[#allocation2 + $0x1a8] sm:$0xff] %v1190_v51 }
 0x1e4   : > { %v1231_v2 = vpop.f32.mrf.mxu2  ;;  %v1272_v33 = vpop.f32.mrf.mxu3 }
 0x1e5   : > { %1312 = vst [vmem:[#allocation2 + $0x1b8] sm:$0xff] %v1231_v2 }
 0x1e6   : > { %1313 = vst [vmem:[#allocation2 + $0x28] sm:$0xff] %v1272_v33 }
 0x1e9   : > { %v1152_v34 = vpop.f32.mrf.mxu0  ;;  %v1193_v50 = vpop.f32.mrf.mxu1 }
 0x1ea   : > { %1318 = vst [vmem:[#allocation2 + $0x1e0] sm:$0xff] %v1152_v34 }
 0x1eb   : > { %1319 = vst [vmem:[#allocation2] sm:$0xff] %v1193_v50 }
 0x1ec   : > { %v1234_v1 = vpop.f32.mrf.mxu2  ;;  %v1275_v49 = vpop.f32.mrf.mxu3 }
 0x1ed   : > { %1320 = vst [vmem:[#allocation2 + $0xf0] sm:$0xff] %v1234_v1 }
 0x1ee   : > { %1321 = vst [vmem:[#allocation2 + $0x8] sm:$0xff] %v1275_v49 }
 0x1f1   : > { %v1155_v20 = vpop.f32.mrf.mxu0  ;;  %v1196_v3 = vpop.f32.mrf.mxu1 }
 0x1f2   : > { %1326 = vst [vmem:[#allocation2 + $0x40] sm:$0xff] %v1155_v20 }
 0x1f3   : > { %1327 = vst [vmem:[#allocation2 + $0x1f8] sm:$0xff] %v1196_v3 }
 0x1f4   : > { %v1237_v17 = vpop.f32.mrf.mxu2  ;;  %v1278_v18 = vpop.f32.mrf.mxu3 }
 0x1f5   : > { %1328 = vst [vmem:[#allocation2 + $0x20] sm:$0xff] %v1237_v17 }
 0x1f6   : > { %1329 = vst [vmem:[#allocation2 + $0x128] sm:$0xff] %v1278_v18 }
 0x1f9   : > { %v1158_v4 = vpop.f32.mrf.mxu0  ;;  %v1199_v35 = vpop.f32.mrf.mxu1 }
 0x1fa   : > { %1334 = vst [vmem:[#allocation2 + $0x70] sm:$0xff] %v1158_v4 }
 0x1fb   : > { %1335 = vst [vmem:[#allocation2 + $0x90] sm:$0xff] %v1199_v35 }
 0x1fc   : > { %v1240_v19 = vpop.f32.mrf.mxu2  ;;  %v1281_v51 = vpop.f32.mrf.mxu3 }
 0x1fd   : > { %1336 = vst [vmem:[#allocation2 + $0x1d8] sm:$0xff] %v1240_v19 }
 0x1fe   : > { %1337 = vst [vmem:[#allocation2 + $0xd0] sm:$0xff] %v1281_v51 }
 0x201   : > { %v1161_v2 = vpop.f32.mrf.mxu0  ;;  %v1202_v33 = vpop.f32.mrf.mxu1 }
 0x202   : > { %1342 = vst [vmem:[#allocation2 + $0x170] sm:$0xff] %v1161_v2 }
 0x203   : > { %1343 = vst [vmem:[#allocation2 + $0x178] sm:$0xff] %v1202_v33 }
 0x204   : > { %v1243_v34 = vpop.f32.mrf.mxu2  ;;  %v1284_v50 = vpop.f32.mrf.mxu3 }
 0x205   : > { %1344 = vst [vmem:[#allocation2 + $0x68] sm:$0xff] %v1243_v34 }
 0x206   : > { %1345 = vst [vmem:[#allocation2 + $0x190] sm:$0xff] %v1284_v50 }
 0x209   : > { %v1164_v1 = vpop.f32.mrf.mxu0  ;;  %v1205_v49 = vpop.f32.mrf.mxu1 }
 0x20a   : > { %1350 = vst [vmem:[#allocation2 + $0x158] sm:$0xff] %v1164_v1  ;;  %2494 = sbr.rel (%p2807_p6) target bundleno = 852 (0x354), region = 99 }
 0x20b   : > { %1351 = vst [vmem:[#allocation2 + $0x10] sm:$0xff] %v1205_v49 }
 0x20c   : > { %v1246_v20 = vpop.f32.mrf.mxu2  ;;  %v1287_v3 = vpop.f32.mrf.mxu3 }
 0x20d   : > { %1352 = vst [vmem:[#allocation2 + $0x58] sm:$0xff] %v1246_v20 }
 0x20e   : > { %1353 = vst [vmem:[#allocation2 + $0xa0] sm:$0xff] %v1287_v3 }
 0x20f LB: >> { %s1424_s12 = sadd.s32 %s3338_s6, %s3490_s21  ;;  %v5255_v0 = vld [vmem:[#allocation35_spill] sm:$0xff]  ;;  %v3346_v18 = vmov 1.0   ;;  %v5256_v9 = vld [vmem:[#allocation24_spill] sm:$0xff]  ;;  %v5258_v7 = vld [vmem:[#allocation22_spill] sm:$0xff]  ;;  %s1357_s6 = sadd.s32 1, %s3338_s6   ;;  %s3338_s6 = sphi %s4487_s6, %s1357_s6  }
 0x210   : >> { %s4494_s13 = sshll.u32 %s1424_s12, 7  ;;  %v5257_v8 = vld [vmem:[#allocation23_spill] sm:$0xff]  ;;  %v5259_v6 = vld [vmem:[#allocation21_spill] sm:$0xff]  ;;  %v5260_v5 = vld [vmem:[#allocation20_spill] sm:$0xff]  ;;  %p1356_p7 = scmp.ge.s32.totalorder %s1357_s6, %s3493_s22 }
 0x211   : >> { %s1426_s14 = sshra.s32 %s4494_s13, 7  ;;  %v5261_v4 = vld [vmem:[#allocation19_spill] sm:$0xff]  ;;  %v5262_v35 = vld [vmem:[#allocation28_spill] sm:$0xff]  ;;  %v5264_v51 = vld [vmem:[#allocation34_spill] sm:$0xff] }
 0x212   : >> { %s1437_s16 = scalar_lea.vmem %s192_s17, %s1426_s14 [#allocation6]  ;;  %v5263_v19 = vld [vmem:[#allocation31_spill] sm:$0xff]  ;;  %v5265_v2 = vld [vmem:[#allocation18_spill] sm:$0xff]  ;;  %v5268_v50 = vld [vmem:[#allocation33_spill] sm:$0xff]  ;;  %s4690_s11 = scalar_lea.vmem %s3482_s19, %s1426_s14 [#allocation9] }
 0x213   : >> { %v4501_v17 = vld [vmem:[%s1437_s16] ss:$0 sm:$0xff]  ;;  %v5267_v34 = vld [vmem:[#allocation30_spill] sm:$0xff]  ;;  %v5269_v1 = vld [vmem:[#allocation17_spill] sm:$0xff] }
 0x214   : >> { %vm1487_vm0 = vcmp.eq.s32.totalorder %v3636_v48, %v4501_v17  ;;  %vm1503_vm1 = vcmp.eq.s32.totalorder %v5255_v0, %v4501_v17  ;;  %vm1455_vm2 = vcmp.eq.s32.totalorder %v3540_v16, %v4501_v17  ;;  %vm1471_vm3 = vcmp.eq.s32.totalorder %v3588_v32, %v4501_v17  ;;  %v5266_v33 = vld [vmem:[#allocation27_spill] sm:$0xff]  ;;  %v5270_v49 = vld [vmem:[#allocation26_spill] sm:$0xff]  ;;  %v5271_v20 = vld [vmem:[#allocation29_spill] sm:$0xff] }
 0x215   : >> { %2969 = vmatpush.xpose.msk.msra.mxu2 %vm1487_vm0, %v3346_v18  ;;  %2985 = vmatpush.xpose.msk.msra.mxu3 %vm1503_vm1, %v3346_v18  ;;  %vm1486_vm4 = vcmp.eq.s32.totalorder %v3633_v47, %v4501_v17  ;;  %vm1502_vm5 = vcmp.eq.s32.totalorder %v3681_v63, %v4501_v17  ;;  %vm1454_vm6 = vcmp.eq.s32.totalorder %v3537_v15, %v4501_v17  ;;  %v5272_v3 = vld [vmem:[#allocation32_spill] sm:$0xff]  ;;  %v1369_v0 = vld [vmem:[#allocation2 + $0x110] sm:$0xff] }
 0x216   : >> { %2937 = vmatpush.xpose.msk.msra.mxu0 %vm1455_vm2, %v3346_v18  ;;  %2953 = vmatpush.xpose.msk.msra.mxu1 %vm1471_vm3, %v3346_v18  ;;  %vm1470_vm7 = vcmp.eq.s32.totalorder %v3585_v31, %v4501_v17  ;;  %vm1485_vm8 = vcmp.eq.s32.totalorder %v3630_v46, %v4501_v17  ;;  %vm1501_vm9 = vcmp.eq.s32.totalorder %v3678_v62, %v4501_v17 }
 0x217   : >> { %vm1453_vm10 = vcmp.eq.s32.totalorder %v3534_v14, %v4501_v17  ;;  %vm1469_vm11 = vcmp.eq.s32.totalorder %v3582_v30, %v4501_v17  ;;  %vm1484_vm12 = vcmp.eq.s32.totalorder %v3627_v45, %v4501_v17  ;;  %vm1500_vm13 = vcmp.eq.s32.totalorder %v3675_v61, %v4501_v17 }
 0x218   : >> { %vm1452_vm14 = vcmp.eq.s32.totalorder %v3531_v13, %v4501_v17  ;;  %vm1468_vm15 = vcmp.eq.s32.totalorder %v3579_v29, %v4501_v17  ;;  %vm1483_vm0 = vcmp.eq.s32.totalorder %v3624_v44, %v4501_v17  ;;  %vm1499_vm1 = vcmp.eq.s32.totalorder %v3672_v60, %v4501_v17 }
 0x219   : >> { %2970 = vmatpush.xpose.msk.msra.mxu2 %vm1486_vm4, %v3346_v18  ;;  %2986 = vmatpush.xpose.msk.msra.mxu3 %vm1502_vm5, %v3346_v18  ;;  %vm1451_vm2 = vcmp.eq.s32.totalorder %v3528_v12, %v4501_v17  ;;  %vm1467_vm3 = vcmp.eq.s32.totalorder %v3576_v28, %v4501_v17  ;;  %vm1482_vm4 = vcmp.eq.s32.totalorder %v3621_v43, %v4501_v17 }
 0x21a   : >> { %2938 = vmatpush.xpose.msk.msra.mxu0 %vm1454_vm6, %v3346_v18  ;;  %2954 = vmatpush.xpose.msk.msra.mxu1 %vm1470_vm7, %v3346_v18  ;;  %vm1498_vm5 = vcmp.eq.s32.totalorder %v3669_v59, %v4501_v17  ;;  %vm1450_vm6 = vcmp.eq.s32.totalorder %v3525_v11, %v4501_v17  ;;  %vm1466_vm7 = vcmp.eq.s32.totalorder %v3573_v27, %v4501_v17 }
 0x21d   : >> { %2971 = vmatpush.xpose.msk.msra.mxu2 %vm1485_vm8, %v3346_v18  ;;  %2987 = vmatpush.xpose.msk.msra.mxu3 %vm1501_vm9, %v3346_v18  ;;  %vm1481_vm8 = vcmp.eq.s32.totalorder %v3618_v42, %v4501_v17  ;;  %vm1497_vm9 = vcmp.eq.s32.totalorder %v3666_v58, %v4501_v17 }
 0x21e   : >> { %2939 = vmatpush.xpose.msk.msra.mxu0 %vm1453_vm10, %v3346_v18  ;;  %2955 = vmatpush.xpose.msk.msra.mxu1 %vm1469_vm11, %v3346_v18  ;;  %vm1449_vm10 = vcmp.eq.s32.totalorder %v3522_v10, %v4501_v17  ;;  %vm1465_vm11 = vcmp.eq.s32.totalorder %v3570_v26, %v4501_v17 }
 0x221   : >> { %2972 = vmatpush.xpose.msk.msra.mxu2 %vm1484_vm12, %v3346_v18  ;;  %2988 = vmatpush.xpose.msk.msra.mxu3 %vm1500_vm13, %v3346_v18  ;;  %vm1480_vm12 = vcmp.eq.s32.totalorder %v3615_v41, %v4501_v17  ;;  %vm1496_vm13 = vcmp.eq.s32.totalorder %v3663_v57, %v4501_v17 }
 0x222   : >> { %2940 = vmatpush.xpose.msk.msra.mxu0 %vm1452_vm14, %v3346_v18  ;;  %2956 = vmatpush.xpose.msk.msra.mxu1 %vm1468_vm15, %v3346_v18  ;;  %vm1448_vm14 = vcmp.eq.s32.totalorder %v5256_v9, %v4501_v17  ;;  %vm1464_vm15 = vcmp.eq.s32.totalorder %v3567_v25, %v4501_v17  ;;  %v1371_v9 = vld [vmem:[#allocation2 + $0x98] sm:$0xff] }
 0x225   : >> { %2973 = vmatpush.xpose.msk.msra.mxu2 %vm1483_vm0, %v3346_v18  ;;  %2989 = vmatpush.xpose.msk.msra.mxu3 %vm1499_vm1, %v3346_v18  ;;  %vm1479_vm0 = vcmp.eq.s32.totalorder %v3612_v40, %v4501_v17  ;;  %vm1495_vm1 = vcmp.eq.s32.totalorder %v3660_v56, %v4501_v17 }
 0x226   : >> { %2941 = vmatpush.xpose.msk.msra.mxu0 %vm1451_vm2, %v3346_v18  ;;  %2957 = vmatpush.xpose.msk.msra.mxu1 %vm1467_vm3, %v3346_v18  ;;  %vm1447_vm2 = vcmp.eq.s32.totalorder %v5257_v8, %v4501_v17  ;;  %vm1463_vm3 = vcmp.eq.s32.totalorder %v3564_v24, %v4501_v17  ;;  %v1370_v8 = vld [vmem:[#allocation2 + $0x118] sm:$0xff] }
 0x229   : >> { %2974 = vmatpush.xpose.msk.msra.mxu2 %vm1482_vm4, %v3346_v18  ;;  %2990 = vmatpush.xpose.msk.msra.mxu3 %vm1498_vm5, %v3346_v18  ;;  %vm1478_vm4 = vcmp.eq.s32.totalorder %v3609_v39, %v4501_v17  ;;  %vm1494_vm5 = vcmp.eq.s32.totalorder %v3657_v55, %v4501_v17 }
 0x22a   : >> { %2942 = vmatpush.xpose.msk.msra.mxu0 %vm1450_vm6, %v3346_v18  ;;  %2958 = vmatpush.xpose.msk.msra.mxu1 %vm1466_vm7, %v3346_v18  ;;  %vm1446_vm6 = vcmp.eq.s32.totalorder %v5258_v7, %v4501_v17  ;;  %vm1462_vm7 = vcmp.eq.s32.totalorder %v3561_v23, %v4501_v17 }
 0x22d   : >> { %2975 = vmatpush.xpose.msk.msra.mxu2 %vm1481_vm8, %v3346_v18  ;;  %2991 = vmatpush.xpose.msk.msra.mxu3 %vm1497_vm9, %v3346_v18  ;;  %vm1477_vm8 = vcmp.eq.s32.totalorder %v3606_v38, %v4501_v17  ;;  %vm1493_vm9 = vcmp.eq.s32.totalorder %v3654_v54, %v4501_v17 }
 0x22e   : >> { %2943 = vmatpush.xpose.msk.msra.mxu0 %vm1449_vm10, %v3346_v18  ;;  %2959 = vmatpush.xpose.msk.msra.mxu1 %vm1465_vm11, %v3346_v18  ;;  %vm1445_vm10 = vcmp.eq.s32.totalorder %v5259_v6, %v4501_v17  ;;  %vm1461_vm11 = vcmp.eq.s32.totalorder %v3558_v22, %v4501_v17 }
 0x231   : >> { %2976 = vmatpush.xpose.msk.msra.mxu2 %vm1480_vm12, %v3346_v18  ;;  %2992 = vmatpush.xpose.msk.msra.mxu3 %vm1496_vm13, %v3346_v18  ;;  %vm1476_vm12 = vcmp.eq.s32.totalorder %v3603_v37, %v4501_v17  ;;  %vm1492_vm13 = vcmp.eq.s32.totalorder %v3651_v53, %v4501_v17 }
 0x232   : >> { %2944 = vmatpush.xpose.msk.msra.mxu0 %vm1448_vm14, %v3346_v18  ;;  %2960 = vmatpush.xpose.msk.msra.mxu1 %vm1464_vm15, %v3346_v18  ;;  %vm1444_vm14 = vcmp.eq.s32.totalorder %v5260_v5, %v4501_v17  ;;  %vm1460_vm15 = vcmp.eq.s32.totalorder %v3555_v21, %v4501_v17 }
 0x235   : >> { %2977 = vmatpush.xpose.msk.msra.mxu2 %vm1479_vm0, %v3346_v18  ;;  %2993 = vmatpush.xpose.msk.msra.mxu3 %vm1495_vm1, %v3346_v18  ;;  %vm1475_vm0 = vcmp.eq.s32.totalorder %v3600_v36, %v4501_v17  ;;  %vm1491_vm1 = vcmp.eq.s32.totalorder %v3648_v52, %v4501_v17 }
 0x236   : >> { %2945 = vmatpush.xpose.msk.msra.mxu0 %vm1447_vm2, %v3346_v18  ;;  %2961 = vmatpush.xpose.msk.msra.mxu1 %vm1463_vm3, %v3346_v18  ;;  %vm1443_vm2 = vcmp.eq.s32.totalorder %v5261_v4, %v4501_v17  ;;  %vm1459_vm3 = vcmp.eq.s32.totalorder %v5262_v35, %v4501_v17  ;;  %v5273_v4 = vld [vmem:[#allocation83_spill] sm:$0xff] }
 0x237   : >> { %v5274_v35 = vld [vmem:[#allocation99_spill] sm:$0xff] }
 0x239   : >> { %2978 = vmatpush.xpose.msk.msra.mxu2 %vm1478_vm4, %v3346_v18  ;;  %2994 = vmatpush.xpose.msk.msra.mxu3 %vm1494_vm5, %v3346_v18  ;;  %vm1474_vm4 = vcmp.eq.s32.totalorder %v5263_v19, %v4501_v17  ;;  %vm1490_vm5 = vcmp.eq.s32.totalorder %v5264_v51, %v4501_v17  ;;  %v5275_v19 = vld [vmem:[#allocation16_spill] sm:$0xff]  ;;  %v5276_v51 = vld [vmem:[#allocation25_spill] sm:$0xff] }
 0x23a   : >> { %2946 = vmatpush.xpose.msk.msra.mxu0 %vm1446_vm6, %v3346_v18  ;;  %2962 = vmatpush.xpose.msk.msra.mxu1 %vm1462_vm7, %v3346_v18  ;;  %vm1442_vm6 = vcmp.eq.s32.totalorder %v5265_v2, %v4501_v17  ;;  %vm1458_vm7 = vcmp.eq.s32.totalorder %v5266_v33, %v4501_v17  ;;  %v4703_v2 = vld [vmem:[%s4690_s11] sm:$0xff] }
 0x23b   : >> { %v5277_v33 = vld [vmem:[#allocation51_spill] sm:$0xff] }
 0x23d   : >> { %2979 = vmatpush.xpose.msk.msra.mxu2 %vm1477_vm8, %v3346_v18  ;;  %2995 = vmatpush.xpose.msk.msra.mxu3 %vm1493_vm9, %v3346_v18  ;;  %vm1473_vm8 = vcmp.eq.s32.totalorder %v5267_v34, %v4501_v17  ;;  %vm1489_vm9 = vcmp.eq.s32.totalorder %v5268_v50, %v4501_v17  ;;  %v5278_v34 = vld [vmem:[#allocation67_spill] sm:$0xff]  ;;  %v5279_v50 = vld [vmem:[#allocation82_spill] sm:$0xff] }
 0x23e   : >> { %2947 = vmatpush.xpose.msk.msra.mxu0 %vm1445_vm10, %v3346_v18  ;;  %2963 = vmatpush.xpose.msk.msra.mxu1 %vm1461_vm11, %v3346_v18  ;;  %vm1441_vm10 = vcmp.eq.s32.totalorder %v5269_v1, %v4501_v17  ;;  %vm1457_vm11 = vcmp.eq.s32.totalorder %v5270_v49, %v4501_v17  ;;  %v5280_v1 = vld [vmem:[#allocation98_spill] sm:$0xff] }
 0x23f   : >> { %v5281_v49 = vld [vmem:[#allocation50_spill] sm:$0xff] }
 0x241   : >> { %2980 = vmatpush.xpose.msk.msra.mxu2 %vm1476_vm12, %v3346_v18  ;;  %2996 = vmatpush.xpose.msk.msra.mxu3 %vm1492_vm13, %v3346_v18  ;;  %vm1472_vm12 = vcmp.eq.s32.totalorder %v5271_v20, %v4501_v17  ;;  %vm1488_vm13 = vcmp.eq.s32.totalorder %v5272_v3, %v4501_v17  ;;  %v5282_v20 = vld [vmem:[#allocation66_spill] sm:$0xff]  ;;  %v5283_v3 = vld [vmem:[#allocation81_spill] sm:$0xff] }
 0x242   : >> { %2948 = vmatpush.xpose.msk.msra.mxu0 %vm1444_vm14, %v3346_v18  ;;  %2964 = vmatpush.xpose.msk.msra.mxu1 %vm1460_vm15, %v3346_v18  ;;  %vm1551_vm14 = vcmp.eq.s32.totalorder %v5273_v4, %v4501_v17  ;;  %vm1567_vm15 = vcmp.eq.s32.totalorder %v5274_v35, %v4501_v17  ;;  %v5284_v4 = vld [vmem:[#allocation97_spill] sm:$0xff] }
 0x243   : >> { %v4734_v35 = vld [vmem:[%s4690_s11 + $0x8] sm:$0xff] }
 0x245   : >> { %2981 = vmatpush.xpose.msk.msra.mxu2 %vm1475_vm0, %v3346_v18  ;;  %2997 = vmatpush.xpose.msk.msra.mxu3 %vm1491_vm1, %v3346_v18  ;;  %vm1440_vm0 = vcmp.eq.s32.totalorder %v5275_v19, %v4501_v17  ;;  %vm1456_vm1 = vcmp.eq.s32.totalorder %v5276_v51, %v4501_v17  ;;  %v5285_v19 = vld [vmem:[#allocation49_spill] sm:$0xff] }
 0x246   : >> { %2949 = vmatpush.xpose.msk.msra.mxu0 %vm1443_vm2, %v3346_v18  ;;  %2965 = vmatpush.xpose.msk.msra.mxu1 %vm1459_vm3, %v3346_v18  ;;  %vm1519_vm2 = vcmp.eq.s32.totalorder %v5277_v33, %v4501_v17  ;;  %vm1535_vm3 = vcmp.eq.s32.totalorder %v5278_v34, %v4501_v17  ;;  %v5286_v51 = vld [vmem:[#allocation65_spill] sm:$0xff]  ;;  %v5287_v33 = vld [vmem:[#allocation80_spill] sm:$0xff] }
 0x247   : >> { %v5288_v34 = vld [vmem:[#allocation96_spill] sm:$0xff] }
 0x249   : >> { %2982 = vmatpush.xpose.msk.msra.mxu2 %vm1474_vm4, %v3346_v18  ;;  %2998 = vmatpush.xpose.msk.msra.mxu3 %vm1490_vm5, %v3346_v18  ;;  %vm1550_vm4 = vcmp.eq.s32.totalorder %v5279_v50, %v4501_v17  ;;  %vm1566_vm5 = vcmp.eq.s32.totalorder %v5280_v1, %v4501_v17  ;;  %v5289_v50 = vld [vmem:[#allocation48_spill] sm:$0xff] }
 0x24a   : >> { %2950 = vmatpush.xpose.msk.msra.mxu0 %vm1442_vm6, %v3346_v18  ;;  %2966 = vmatpush.xpose.msk.msra.mxu1 %vm1458_vm7, %v3346_v18  ;;  %vm1518_vm6 = vcmp.eq.s32.totalorder %v5281_v49, %v4501_v17  ;;  %vm1534_vm7 = vcmp.eq.s32.totalorder %v5282_v20, %v4501_v17  ;;  %v5290_v1 = vld [vmem:[#allocation64_spill] sm:$0xff]  ;;  %v5291_v49 = vld [vmem:[#allocation79_spill] sm:$0xff] }
 0x24b   : >> { %v5292_v20 = vld [vmem:[#allocation95_spill] sm:$0xff] }
 0x24d   : >> { %2983 = vmatpush.xpose.msk.msra.mxu2 %vm1473_vm8, %v3346_v18  ;;  %2999 = vmatpush.xpose.msk.msra.mxu3 %vm1489_vm9, %v3346_v18  ;;  %vm1549_vm8 = vcmp.eq.s32.totalorder %v5283_v3, %v4501_v17  ;;  %vm1565_vm9 = vcmp.eq.s32.totalorder %v5284_v4, %v4501_v17  ;;  %v4765_v3 = vld [vmem:[%s4690_s11 + $0x10] sm:$0xff]  ;;  %v5293_v4 = vld [vmem:[#allocation47_spill] sm:$0xff] }
 0x24e   : >> { %2951 = vmatpush.xpose.msk.msra.mxu0 %vm1441_vm10, %v3346_v18  ;;  %2967 = vmatpush.xpose.msk.msra.mxu1 %vm1457_vm11, %v3346_v18  ;;  %vm1517_vm10 = vcmp.eq.s32.totalorder %v5285_v19, %v4501_v17  ;;  %vm1533_vm11 = vcmp.eq.s32.totalorder %v5286_v51, %v4501_v17  ;;  %v5294_v19 = vld [vmem:[#allocation63_spill] sm:$0xff]  ;;  %v5295_v51 = vld [vmem:[#allocation78_spill] sm:$0xff] }
 0x251   : >> { %2984 = vmatpush.xpose.msk.msra.mxu2 %vm1472_vm12, %v3346_v18  ;;  %3000 = vmatpush.xpose.msk.msra.mxu3 %vm1488_vm13, %v3346_v18  ;;  %vm1548_vm12 = vcmp.eq.s32.totalorder %v5287_v33, %v4501_v17  ;;  %vm1564_vm13 = vcmp.eq.s32.totalorder %v5288_v34, %v4501_v17  ;;  %v5296_v33 = vld [vmem:[#allocation94_spill] sm:$0xff] }
 0x252   : >> { %2952 = vmatpush.xpose.msk.msra.mxu0 %vm1440_vm0, %v3346_v18  ;;  %2968 = vmatpush.xpose.msk.msra.mxu1 %vm1456_vm1, %v3346_v18  ;;  %vm1547_vm0 = vcmp.eq.s32.totalorder %v5291_v49, %v4501_v17  ;;  %vm1563_vm1 = vcmp.eq.s32.totalorder %v5292_v20, %v4501_v17  ;;  %v5297_v34 = vld [vmem:[#allocation46_spill] sm:$0xff]  ;;  %v5300_v49 = vld [vmem:[#allocation93_spill] sm:$0xff] }
 0x253   : >> { %v4796_v20 = vld [vmem:[%s4690_s11 + $0x18] sm:$0xff] }
 0x254   : >> { %1922 = vmatmul.f32.vlgmr.msra.gmra.mxu2 %v4703_v2  ;;  %1963 = vmatmul.f32.vlgmr.msra.gmra.mxu3 %v4703_v2 }
 0x255   : >> { %3033 = vmatpush.xpose.msk.msrb.mxu2 %vm1551_vm14, %v3346_v18  ;;  %3049 = vmatpush.xpose.msk.msrb.mxu3 %vm1567_vm15, %v3346_v18  ;;  %vm1516_vm14 = vcmp.eq.s32.totalorder %v5289_v50, %v4501_v17  ;;  %vm1532_vm15 = vcmp.eq.s32.totalorder %v5290_v1, %v4501_v17  ;;  %v5298_v50 = vld [vmem:[#allocation62_spill] sm:$0xff]  ;;  %v5299_v1 = vld [vmem:[#allocation77_spill] sm:$0xff] }
 0x256   : >> { %3001 = vmatpush.xpose.msk.msrb.mxu0 %vm1519_vm2, %v3346_v18  ;;  %3017 = vmatpush.xpose.msk.msrb.mxu1 %vm1535_vm3, %v3346_v18  ;;  %vm1515_vm2 = vcmp.eq.s32.totalorder %v5293_v4, %v4501_v17  ;;  %vm1531_vm3 = vcmp.eq.s32.totalorder %v5294_v19, %v4501_v17  ;;  %v5301_v4 = vld [vmem:[#allocation45_spill] sm:$0xff] }
 0x257   : >> { %1840 = vmatmul.f32.vlgmr.msra.gmra.mxu0 %v4703_v2  ;;  %1881 = vmatmul.f32.vlgmr.msra.gmra.mxu1 %v4703_v2  ;;  %v5302_v19 = vld [vmem:[#allocation61_spill] sm:$0xff] }
 0x259   : >> { %3034 = vmatpush.xpose.msk.msrb.mxu2 %vm1550_vm4, %v3346_v18  ;;  %3050 = vmatpush.xpose.msk.msrb.mxu3 %vm1566_vm5, %v3346_v18  ;;  %vm1546_vm4 = vcmp.eq.s32.totalorder %v5295_v51, %v4501_v17  ;;  %vm1562_vm5 = vcmp.eq.s32.totalorder %v5296_v33, %v4501_v17  ;;  %v5303_v51 = vld [vmem:[#allocation76_spill] sm:$0xff] }
 0x25a   : >> { %3002 = vmatpush.xpose.msk.msrb.mxu0 %vm1518_vm6, %v3346_v18  ;;  %3018 = vmatpush.xpose.msk.msrb.mxu1 %vm1534_vm7, %v3346_v18  ;;  %vm1514_vm6 = vcmp.eq.s32.totalorder %v5297_v34, %v4501_v17  ;;  %vm1530_vm7 = vcmp.eq.s32.totalorder %v5298_v50, %v4501_v17  ;;  %v5304_v33 = vld [vmem:[#allocation92_spill] sm:$0xff] }
 0x25b   : >> { %v5305_v34 = vld [vmem:[#allocation44_spill] sm:$0xff] }
 0x25c   : >> { %1925 = vmatmul.f32.gmra.mxu2 %v4734_v35  ;;  %1966 = vmatmul.f32.gmra.mxu3 %v4734_v35  ;;  %v5306_v50 = vld [vmem:[#allocation60_spill] sm:$0xff] }
 0x25d   : >> { %3035 = vmatpush.xpose.msk.msrb.mxu2 %vm1549_vm8, %v3346_v18  ;;  %3051 = vmatpush.xpose.msk.msrb.mxu3 %vm1565_vm9, %v3346_v18  ;;  %vm1545_vm8 = vcmp.eq.s32.totalorder %v5299_v1, %v4501_v17  ;;  %vm1561_vm9 = vcmp.eq.s32.totalorder %v5300_v49, %v4501_v17  ;;  %v5307_v1 = vld [vmem:[#allocation75_spill] sm:$0xff] }
 0x25e   : >> { %3003 = vmatpush.xpose.msk.msrb.mxu0 %vm1517_vm10, %v3346_v18  ;;  %3019 = vmatpush.xpose.msk.msrb.mxu1 %vm1533_vm11, %v3346_v18  ;;  %vm1513_vm10 = vcmp.eq.s32.totalorder %v5301_v4, %v4501_v17  ;;  %vm1529_vm11 = vcmp.eq.s32.totalorder %v5302_v19, %v4501_v17  ;;  %v5308_v49 = vld [vmem:[#allocation91_spill] sm:$0xff] }
 0x25f   : >> { %1843 = vmatmul.f32.gmra.mxu0 %v4734_v35  ;;  %1884 = vmatmul.f32.gmra.mxu1 %v4734_v35  ;;  %v4827_v4 = vld [vmem:[%s4690_s11 + $0x20] sm:$0xff] }
 0x260   : >> { %v5309_v19 = vld [vmem:[#allocation43_spill] sm:$0xff] }
 0x261   : >> { %3036 = vmatpush.xpose.msk.msrb.mxu2 %vm1548_vm12, %v3346_v18  ;;  %3052 = vmatpush.xpose.msk.msrb.mxu3 %vm1564_vm13, %v3346_v18  ;;  %vm1544_vm12 = vcmp.eq.s32.totalorder %v5303_v51, %v4501_v17  ;;  %vm1560_vm13 = vcmp.eq.s32.totalorder %v5304_v33, %v4501_v17  ;;  %v5310_v51 = vld [vmem:[#allocation59_spill] sm:$0xff]  ;;  %v5311_v33 = vld [vmem:[#allocation74_spill] sm:$0xff] }
 0x262   : >> { %3004 = vmatpush.xpose.msk.msrb.mxu0 %vm1516_vm14, %v3346_v18  ;;  %3020 = vmatpush.xpose.msk.msrb.mxu1 %vm1532_vm15, %v3346_v18  ;;  %vm1512_vm14 = vcmp.eq.s32.totalorder %v5305_v34, %v4501_v17  ;;  %vm1528_vm15 = vcmp.eq.s32.totalorder %v5306_v50, %v4501_v17  ;;  %v5312_v34 = vld [vmem:[#allocation90_spill] sm:$0xff] }
 0x263   : >> { %v5313_v50 = vld [vmem:[#allocation42_spill] sm:$0xff] }
 0x264   : >> { %1928 = vmatmul.f32.gmra.mxu2 %v4765_v3  ;;  %1969 = vmatmul.f32.gmra.mxu3 %v4765_v3 }
 0x265   : >> { %3037 = vmatpush.xpose.msk.msrb.mxu2 %vm1547_vm0, %v3346_v18  ;;  %3053 = vmatpush.xpose.msk.msrb.mxu3 %vm1563_vm1, %v3346_v18  ;;  %vm1543_vm0 = vcmp.eq.s32.totalorder %v5307_v1, %v4501_v17  ;;  %vm1559_vm1 = vcmp.eq.s32.totalorder %v5308_v49, %v4501_v17  ;;  %v5314_v1 = vld [vmem:[#allocation58_spill] sm:$0xff]  ;;  %v5315_v49 = vld [vmem:[#allocation73_spill] sm:$0xff] }
 0x266   : >> { %3005 = vmatpush.xpose.msk.msrb.mxu0 %vm1515_vm2, %v3346_v18  ;;  %3021 = vmatpush.xpose.msk.msrb.mxu1 %vm1531_vm3, %v3346_v18  ;;  %vm1511_vm2 = vcmp.eq.s32.totalorder %v5309_v19, %v4501_v17  ;;  %vm1527_vm3 = vcmp.eq.s32.totalorder %v5310_v51, %v4501_v17  ;;  %v5316_v19 = vld [vmem:[#allocation89_spill] sm:$0xff] }
 0x267   : >> { %1846 = vmatmul.f32.gmra.mxu0 %v4765_v3  ;;  %1887 = vmatmul.f32.gmra.mxu1 %v4765_v3  ;;  %v4858_v51 = vld [vmem:[%s4690_s11 + $0x28] sm:$0xff] }
 0x269   : >> { %3038 = vmatpush.xpose.msk.msrb.mxu2 %vm1546_vm4, %v3346_v18  ;;  %3054 = vmatpush.xpose.msk.msrb.mxu3 %vm1562_vm5, %v3346_v18  ;;  %vm1542_vm4 = vcmp.eq.s32.totalorder %v5311_v33, %v4501_v17  ;;  %vm1558_vm5 = vcmp.eq.s32.totalorder %v5312_v34, %v4501_v17  ;;  %v5317_v33 = vld [vmem:[#allocation41_spill] sm:$0xff] }
 0x26a   : >> { %3006 = vmatpush.xpose.msk.msrb.mxu0 %vm1514_vm6, %v3346_v18  ;;  %3022 = vmatpush.xpose.msk.msrb.mxu1 %vm1530_vm7, %v3346_v18  ;;  %vm1510_vm6 = vcmp.eq.s32.totalorder %v5313_v50, %v4501_v17  ;;  %vm1526_vm7 = vcmp.eq.s32.totalorder %v5314_v1, %v4501_v17  ;;  %v5318_v34 = vld [vmem:[#allocation57_spill] sm:$0xff]  ;;  %v5319_v50 = vld [vmem:[#allocation72_spill] sm:$0xff] }
 0x26b   : >> { %v5320_v1 = vld [vmem:[#allocation88_spill] sm:$0xff] }
 0x26c   : >> { %1931 = vmatmul.f32.gmra.mxu2 %v4796_v20  ;;  %1972 = vmatmul.f32.gmra.mxu3 %v4796_v20 }
 0x26d   : >> { %3039 = vmatpush.xpose.msk.msrb.mxu2 %vm1545_vm8, %v3346_v18  ;;  %3055 = vmatpush.xpose.msk.msrb.mxu3 %vm1561_vm9, %v3346_v18  ;;  %vm1541_vm8 = vcmp.eq.s32.totalorder %v5315_v49, %v4501_v17  ;;  %vm1557_vm9 = vcmp.eq.s32.totalorder %v5316_v19, %v4501_v17  ;;  %v5321_v49 = vld [vmem:[#allocation40_spill] sm:$0xff] }
 0x26e   : >> { %3007 = vmatpush.xpose.msk.msrb.mxu0 %vm1513_vm10, %v3346_v18  ;;  %3023 = vmatpush.xpose.msk.msrb.mxu1 %vm1529_vm11, %v3346_v18  ;;  %vm1509_vm10 = vcmp.eq.s32.totalorder %v5317_v33, %v4501_v17  ;;  %vm1525_vm11 = vcmp.eq.s32.totalorder %v5318_v34, %v4501_v17  ;;  %v5322_v19 = vld [vmem:[#allocation56_spill] sm:$0xff]  ;;  %v5323_v33 = vld [vmem:[#allocation71_spill] sm:$0xff] }
 0x26f   : >> { %1849 = vmatmul.f32.gmra.mxu0 %v4796_v20  ;;  %1890 = vmatmul.f32.gmra.mxu1 %v4796_v20  ;;  %v5324_v34 = vld [vmem:[#allocation87_spill] sm:$0xff] }
 0x271   : >> { %3040 = vmatpush.xpose.msk.msrb.mxu2 %vm1544_vm12, %v3346_v18  ;;  %3056 = vmatpush.xpose.msk.msrb.mxu3 %vm1560_vm13, %v3346_v18  ;;  %vm1540_vm12 = vcmp.eq.s32.totalorder %v5319_v50, %v4501_v17  ;;  %vm1556_vm13 = vcmp.eq.s32.totalorder %v5320_v1, %v4501_v17  ;;  %v4889_v50 = vld [vmem:[%s4690_s11 + $0x30] sm:$0xff]  ;;  %v5325_v1 = vld [vmem:[#allocation39_spill] sm:$0xff] }
 0x272   : >> { %3008 = vmatpush.xpose.msk.msrb.mxu0 %vm1512_vm14, %v3346_v18  ;;  %3024 = vmatpush.xpose.msk.msrb.mxu1 %vm1528_vm15, %v3346_v18  ;;  %vm1508_vm14 = vcmp.eq.s32.totalorder %v5321_v49, %v4501_v17  ;;  %vm1524_vm15 = vcmp.eq.s32.totalorder %v5322_v19, %v4501_v17  ;;  %v5326_v49 = vld [vmem:[#allocation55_spill] sm:$0xff]  ;;  %v5327_v19 = vld [vmem:[#allocation70_spill] sm:$0xff] }
 0x274   : >> { %1934 = vmatmul.f32.gmra.mxu2 %v4827_v4  ;;  %1975 = vmatmul.f32.gmra.mxu3 %v4827_v4 }
 0x275   : >> { %3041 = vmatpush.xpose.msk.msrb.mxu2 %vm1543_vm0, %v3346_v18  ;;  %3057 = vmatpush.xpose.msk.msrb.mxu3 %vm1559_vm1, %v3346_v18  ;;  %vm1539_vm0 = vcmp.eq.s32.totalorder %v5323_v33, %v4501_v17  ;;  %vm1555_vm1 = vcmp.eq.s32.totalorder %v5324_v34, %v4501_v17  ;;  %v5328_v33 = vld [vmem:[#allocation86_spill] sm:$0xff] }
 0x276   : >> { %3009 = vmatpush.xpose.msk.msrb.mxu0 %vm1511_vm2, %v3346_v18  ;;  %3025 = vmatpush.xpose.msk.msrb.mxu1 %vm1527_vm3, %v3346_v18  ;;  %vm1507_vm2 = vcmp.eq.s32.totalorder %v5325_v1, %v4501_v17  ;;  %vm1523_vm3 = vcmp.eq.s32.totalorder %v5326_v49, %v4501_v17  ;;  %v5329_v34 = vld [vmem:[#allocation38_spill] sm:$0xff]  ;;  %v5331_v49 = vld [vmem:[#allocation69_spill] sm:$0xff] }
 0x277   : >> { %1852 = vmatmul.f32.gmra.mxu0 %v4827_v4  ;;  %1893 = vmatmul.f32.gmra.mxu1 %v4827_v4  ;;  %v5330_v1 = vld [vmem:[#allocation54_spill] sm:$0xff] }
 0x279   : >> { %3042 = vmatpush.xpose.msk.msrb.mxu2 %vm1542_vm4, %v3346_v18  ;;  %3058 = vmatpush.xpose.msk.msrb.mxu3 %vm1558_vm5, %v3346_v18  ;;  %vm1538_vm4 = vcmp.eq.s32.totalorder %v5327_v19, %v4501_v17  ;;  %vm1554_vm5 = vcmp.eq.s32.totalorder %v5328_v33, %v4501_v17  ;;  %v5332_v19 = vld [vmem:[#allocation85_spill] sm:$0xff]  ;;  %v1436_v33 = vld [vmem:[%s4690_s11 + $0x38] sm:$0xff] }
 0x27a   : >> { %3010 = vmatpush.xpose.msk.msrb.mxu0 %vm1510_vm6, %v3346_v18  ;;  %3026 = vmatpush.xpose.msk.msrb.mxu1 %vm1526_vm7, %v3346_v18  ;;  %vm1506_vm6 = vcmp.eq.s32.totalorder %v5329_v34, %v4501_v17  ;;  %vm1522_vm7 = vcmp.eq.s32.totalorder %v5330_v1, %v4501_v17  ;;  %v5333_v34 = vld [vmem:[#allocation37_spill] sm:$0xff] }
 0x27b   : >> { %v5334_v1 = vld [vmem:[#allocation53_spill] sm:$0xff] }
 0x27c   : >> { %1937 = vmatmul.f32.gmra.mxu2 %v4858_v51  ;;  %1978 = vmatmul.f32.gmra.mxu3 %v4858_v51 }
 0x27d   : >> { %3043 = vmatpush.xpose.msk.msrb.mxu2 %vm1541_vm8, %v3346_v18  ;;  %3059 = vmatpush.xpose.msk.msrb.mxu3 %vm1557_vm9, %v3346_v18  ;;  %vm1537_vm8 = vcmp.eq.s32.totalorder %v5331_v49, %v4501_v17  ;;  %vm1553_vm9 = vcmp.eq.s32.totalorder %v5332_v19, %v4501_v17  ;;  %v5335_v49 = vld [vmem:[#allocation68_spill] sm:$0xff] }
 0x27e   : >> { %3011 = vmatpush.xpose.msk.msrb.mxu0 %vm1509_vm10, %v3346_v18  ;;  %3027 = vmatpush.xpose.msk.msrb.mxu1 %vm1525_vm11, %v3346_v18  ;;  %vm1505_vm10 = vcmp.eq.s32.totalorder %v5333_v34, %v4501_v17  ;;  %vm1521_vm11 = vcmp.eq.s32.totalorder %v5334_v1, %v4501_v17  ;;  %v5336_v19 = vld [vmem:[#allocation84_spill] sm:$0xff] }
 0x27f   : >> { %1855 = vmatmul.f32.gmra.mxu0 %v4858_v51  ;;  %1896 = vmatmul.f32.gmra.mxu1 %v4858_v51  ;;  %v5337_v34 = vld [vmem:[#allocation36_spill] sm:$0xff] }
 0x280   : >> { %v5338_v1 = vld [vmem:[#allocation52_spill] sm:$0xff] }
 0x281   : >> { %3044 = vmatpush.xpose.msk.msrb.mxu2 %vm1540_vm12, %v3346_v18  ;;  %3060 = vmatpush.xpose.msk.msrb.mxu3 %vm1556_vm13, %v3346_v18  ;;  %vm1536_vm12 = vcmp.eq.s32.totalorder %v5335_v49, %v4501_v17  ;;  %vm1552_vm13 = vcmp.eq.s32.totalorder %v5336_v19, %v4501_v17 }
 0x282   : >> { %3012 = vmatpush.xpose.msk.msrb.mxu0 %vm1508_vm14, %v3346_v18  ;;  %3028 = vmatpush.xpose.msk.msrb.mxu1 %vm1524_vm15, %v3346_v18  ;;  %vm1504_vm14 = vcmp.eq.s32.totalorder %v5337_v34, %v4501_v17  ;;  %vm1520_vm15 = vcmp.eq.s32.totalorder %v5338_v1, %v4501_v17  ;;  %v1360_v17 = vld [vmem:[#allocation2 + $0xb0] sm:$0xff] }
 0x284   : >> { %1940 = vmatmul.f32.gmra.mxu2 %v4889_v50  ;;  %1981 = vmatmul.f32.gmra.mxu3 %v4889_v50 }
 0x285   : >> { %3045 = vmatpush.xpose.msk.msrb.mxu2 %vm1539_vm0, %v3346_v18  ;;  %3061 = vmatpush.xpose.msk.msrb.mxu3 %vm1555_vm1, %v3346_v18 }
 0x286   : >> { %3013 = vmatpush.xpose.msk.msrb.mxu0 %vm1507_vm2, %v3346_v18  ;;  %3029 = vmatpush.xpose.msk.msrb.mxu1 %vm1523_vm3, %v3346_v18 }
 0x287   : >> { %1858 = vmatmul.f32.gmra.mxu0 %v4889_v50  ;;  %1899 = vmatmul.f32.gmra.mxu1 %v4889_v50 }
 0x289   : >> { %3046 = vmatpush.xpose.msk.msrb.mxu2 %vm1538_vm4, %v3346_v18  ;;  %3062 = vmatpush.xpose.msk.msrb.mxu3 %vm1554_vm5, %v3346_v18 }
 0x28a   : >> { %3014 = vmatpush.xpose.msk.msrb.mxu0 %vm1506_vm6, %v3346_v18  ;;  %3030 = vmatpush.xpose.msk.msrb.mxu1 %vm1522_vm7, %v3346_v18 }
 0x28c   : >> { %1943 = vmatmul.f32.gmra.mxu2 %v1436_v33  ;;  %1984 = vmatmul.f32.gmra.mxu3 %v1436_v33 }
 0x28d   : >> { %3047 = vmatpush.xpose.msk.msrb.mxu2 %vm1537_vm8, %v3346_v18  ;;  %3063 = vmatpush.xpose.msk.msrb.mxu3 %vm1553_vm9, %v3346_v18 }
 0x28e   : >> { %3015 = vmatpush.xpose.msk.msrb.mxu0 %vm1505_vm10, %v3346_v18  ;;  %3031 = vmatpush.xpose.msk.msrb.mxu1 %vm1521_vm11, %v3346_v18 }
 0x28f   : >> { %1861 = vmatmul.f32.gmra.mxu0 %v1436_v33  ;;  %1902 = vmatmul.f32.gmra.mxu1 %v1436_v33 }
 0x291   : >> { %3048 = vmatpush.xpose.msk.msrb.mxu2 %vm1536_vm12, %v3346_v18  ;;  %3064 = vmatpush.xpose.msk.msrb.mxu3 %vm1552_vm13, %v3346_v18 }
 0x292   : >> { %3016 = vmatpush.xpose.msk.msrb.mxu0 %vm1504_vm14, %v3346_v18  ;;  %3032 = vmatpush.xpose.msk.msrb.mxu1 %vm1520_vm15, %v3346_v18  ;;  %v1361_v18 = vld [vmem:[#allocation2 + $0x1b0] sm:$0xff] }
 0x294   : >> { %2086 = vmatmul.f32.vlgmr.msrb.gmra.mxu2 %v4703_v2  ;;  %2127 = vmatmul.f32.vlgmr.msrb.gmra.mxu3 %v4703_v2 }
 0x297   : >> { %2004 = vmatmul.f32.vlgmr.msrb.gmra.mxu0 %v4703_v2  ;;  %2045 = vmatmul.f32.vlgmr.msrb.gmra.mxu1 %v4703_v2 }
 0x29c   : >> { %2089 = vmatmul.f32.gmra.mxu2 %v4734_v35  ;;  %2130 = vmatmul.f32.gmra.mxu3 %v4734_v35 }
 0x29f   : >> { %2007 = vmatmul.f32.gmra.mxu0 %v4734_v35  ;;  %2048 = vmatmul.f32.gmra.mxu1 %v4734_v35 }
 0x2a4   : >> { %2092 = vmatmul.f32.gmra.mxu2 %v4765_v3  ;;  %2133 = vmatmul.f32.gmra.mxu3 %v4765_v3 }
 0x2a7   : >> { %2010 = vmatmul.f32.gmra.mxu0 %v4765_v3  ;;  %2051 = vmatmul.f32.gmra.mxu1 %v4765_v3 }
 0x2ac   : >> { %2095 = vmatmul.f32.gmra.mxu2 %v4796_v20  ;;  %2136 = vmatmul.f32.gmra.mxu3 %v4796_v20 }
 0x2af   : >> { %2013 = vmatmul.f32.gmra.mxu0 %v4796_v20  ;;  %2054 = vmatmul.f32.gmra.mxu1 %v4796_v20 }
 0x2b4   : >> { %2098 = vmatmul.f32.gmra.mxu2 %v4827_v4  ;;  %2139 = vmatmul.f32.gmra.mxu3 %v4827_v4 }
 0x2b7   : >> { %2016 = vmatmul.f32.gmra.mxu0 %v4827_v4  ;;  %2057 = vmatmul.f32.gmra.mxu1 %v4827_v4  ;;  %v1362_v4 = vld [vmem:[#allocation2 + $0xd8] sm:$0xff] }
 0x2bc   : >> { %2101 = vmatmul.f32.gmra.mxu2 %v4858_v51  ;;  %2142 = vmatmul.f32.gmra.mxu3 %v4858_v51 }
 0x2bf   : >> { %2019 = vmatmul.f32.gmra.mxu0 %v4858_v51  ;;  %2060 = vmatmul.f32.gmra.mxu1 %v4858_v51  ;;  %v1363_v51 = vld [vmem:[#allocation2 + $0x18] sm:$0xff] }
 0x2c4   : >> { %2104 = vmatmul.f32.gmra.mxu2 %v4889_v50  ;;  %2145 = vmatmul.f32.gmra.mxu3 %v4889_v50 }
 0x2c7   : >> { %2022 = vmatmul.f32.gmra.mxu0 %v4889_v50  ;;  %2063 = vmatmul.f32.gmra.mxu1 %v4889_v50  ;;  %v1368_v50 = vld [vmem:[#allocation2 + $0x180] sm:$0xff] }
 0x2cc   : >> { %2107 = vmatmul.f32.gmra.mxu2 %v1436_v33  ;;  %2148 = vmatmul.f32.gmra.mxu3 %v1436_v33 }
 0x2cf   : >> { %2025 = vmatmul.f32.gmra.mxu0 %v1436_v33  ;;  %2066 = vmatmul.f32.gmra.mxu1 %v1436_v33 }
 0x2d4   : >> { %v1841_v2 = vpop.f32.mrf.mxu0  ;;  %v1882_v35 = vpop.f32.mrf.mxu1 }
 0x2d5   : >> { %v2152_v3 = vadd.f32 %v1841_v2, %v1360_v17  ;;  %v2153_v20 = vadd.f32 %v1882_v35, %v1361_v18 }
 0x2d7   : >> { %2216 = vst [vmem:[#allocation2 + $0xb0] sm:$0xff] %v2152_v3  ;;  %v1923_v49 = vpop.f32.mrf.mxu2  ;;  %v1964_v19 = vpop.f32.mrf.mxu3  ;;  %v1376_v3 = vld [vmem:[#allocation2 + $0xe0] sm:$0xff] }
 0x2d8   : >> { %2217 = vst [vmem:[#allocation2 + $0x1b0] sm:$0xff] %v2153_v20  ;;  %v2154_v34 = vadd.f32 %v1923_v49, %v1362_v4  ;;  %v2155_v1 = vadd.f32 %v1964_v19, %v1363_v51  ;;  %v1377_v20 = vld [vmem:[#allocation2 + $0x188] sm:$0xff] }
 0x2da   : >> { %2218 = vst [vmem:[#allocation2 + $0xd8] sm:$0xff] %v2154_v34  ;;  %v1378_v34 = vld [vmem:[#allocation2 + $0x138] sm:$0xff] }
 0x2db   : >> { %2219 = vst [vmem:[#allocation2 + $0x18] sm:$0xff] %v2155_v1  ;;  %v1379_v1 = vld [vmem:[#allocation2 + $0x140] sm:$0xff] }
 0x2dc   : >> { %v1844_v5 = vpop.f32.mrf.mxu0  ;;  %v1885_v33 = vpop.f32.mrf.mxu1 }
 0x2dd   : >> { %v2160_v6 = vadd.f32 %v1844_v5, %v1368_v50  ;;  %v2161_v7 = vadd.f32 %v1885_v33, %v1369_v0 }
 0x2df   : >> { %2224 = vst [vmem:[#allocation2 + $0x180] sm:$0xff] %v2160_v6  ;;  %v1926_v17 = vpop.f32.mrf.mxu2  ;;  %v1967_v18 = vpop.f32.mrf.mxu3 }
 0x2e0   : >> { %2225 = vst [vmem:[#allocation2 + $0x110] sm:$0xff] %v2161_v7  ;;  %v2162_v2 = vadd.f32 %v1926_v17, %v1370_v8  ;;  %v2163_v35 = vadd.f32 %v1967_v18, %v1371_v9  ;;  %v1384_v7 = vld [vmem:[#allocation2 + $0x1e8] sm:$0xff]  ;;  %v1385_v8 = vld [vmem:[#allocation2 + $0xf8] sm:$0xff] }
 0x2e2   : >> { %2226 = vst [vmem:[#allocation2 + $0x118] sm:$0xff] %v2162_v2  ;;  %v1386_v2 = vld [vmem:[#allocation2 + $0x160] sm:$0xff] }
 0x2e3   : >> { %2227 = vst [vmem:[#allocation2 + $0x98] sm:$0xff] %v2163_v35  ;;  %v1387_v35 = vld [vmem:[#allocation2 + $0x30] sm:$0xff] }
 0x2e4   : >> { %v1847_v4 = vpop.f32.mrf.mxu0  ;;  %v1888_v51 = vpop.f32.mrf.mxu1 }
 0x2e5   : >> { %v2168_v49 = vadd.f32 %v1847_v4, %v1376_v3  ;;  %v2169_v19 = vadd.f32 %v1888_v51, %v1377_v20 }
 0x2e7   : >> { %2232 = vst [vmem:[#allocation2 + $0xe0] sm:$0xff] %v2168_v49  ;;  %v1929_v5 = vpop.f32.mrf.mxu2  ;;  %v1970_v0 = vpop.f32.mrf.mxu3  ;;  %v1392_v49 = vld [vmem:[#allocation2 + $0x148] sm:$0xff] }
 0x2e8   : >> { %2233 = vst [vmem:[#allocation2 + $0x188] sm:$0xff] %v2169_v19  ;;  %v2170_v6 = vadd.f32 %v1929_v5, %v1378_v34  ;;  %v2171_v50 = vadd.f32 %v1970_v0, %v1379_v1  ;;  %v1393_v19 = vld [vmem:[#allocation2 + $0x1d0] sm:$0xff] }
 0x2ea   : >> { %2234 = vst [vmem:[#allocation2 + $0x138] sm:$0xff] %v2170_v6  ;;  %v1394_v6 = vld [vmem:[#allocation2 + $0x100] sm:$0xff] }
 0x2eb   : >> { %2235 = vst [vmem:[#allocation2 + $0x140] sm:$0xff] %v2171_v50  ;;  %v1395_v50 = vld [vmem:[#allocation2 + $0xc8] sm:$0xff] }
 0x2ec   : >> { %v1850_v9 = vpop.f32.mrf.mxu0  ;;  %v1891_v33 = vpop.f32.mrf.mxu1 }
 0x2ed   : >> { %v2176_v17 = vadd.f32 %v1850_v9, %v1384_v7  ;;  %v2177_v18 = vadd.f32 %v1891_v33, %v1385_v8 }
 0x2ef   : >> { %2240 = vst [vmem:[#allocation2 + $0x1e8] sm:$0xff] %v2176_v17  ;;  %v1932_v3 = vpop.f32.mrf.mxu2  ;;  %v1973_v20 = vpop.f32.mrf.mxu3  ;;  %v1400_v17 = vld [vmem:[#allocation2 + $0x1a0] sm:$0xff] }
 0x2f0   : >> { %2241 = vst [vmem:[#allocation2 + $0xf8] sm:$0xff] %v2177_v18  ;;  %v2178_v4 = vadd.f32 %v1932_v3, %v1386_v2  ;;  %v2179_v51 = vadd.f32 %v1973_v20, %v1387_v35  ;;  %v1401_v18 = vld [vmem:[#allocation2 + $0x1f0] sm:$0xff] }
 0x2f2   : >> { %2242 = vst [vmem:[#allocation2 + $0x160] sm:$0xff] %v2178_v4  ;;  %v1402_v4 = vld [vmem:[#allocation2 + $0xe8] sm:$0xff] }
 0x2f3   : >> { %2243 = vst [vmem:[#allocation2 + $0x30] sm:$0xff] %v2179_v51  ;;  %v1403_v51 = vld [vmem:[#allocation2 + $0x78] sm:$0xff] }
 0x2f4   : >> { %v1853_v34 = vpop.f32.mrf.mxu0  ;;  %v1894_v1 = vpop.f32.mrf.mxu1 }
 0x2f5   : >> { %v2184_v5 = vadd.f32 %v1853_v34, %v1392_v49  ;;  %v2185_v0 = vadd.f32 %v1894_v1, %v1393_v19 }
 0x2f7   : >> { %2248 = vst [vmem:[#allocation2 + $0x148] sm:$0xff] %v2184_v5  ;;  %v1935_v7 = vpop.f32.mrf.mxu2  ;;  %v1976_v8 = vpop.f32.mrf.mxu3  ;;  %v1408_v5 = vld [vmem:[#allocation2 + $0xb8] sm:$0xff] }
 0x2f8   : >> { %2249 = vst [vmem:[#allocation2 + $0x1d0] sm:$0xff] %v2185_v0  ;;  %v2186_v9 = vadd.f32 %v1935_v7, %v1394_v6  ;;  %v2187_v33 = vadd.f32 %v1976_v8, %v1395_v50  ;;  %v1409_v0 = vld [vmem:[#allocation2 + $0x88] sm:$0xff] }
 0x2fa   : >> { %2250 = vst [vmem:[#allocation2 + $0x100] sm:$0xff] %v2186_v9  ;;  %v1410_v9 = vld [vmem:[#allocation2 + $0xa8] sm:$0xff] }
 0x2fb   : >> { %2251 = vst [vmem:[#allocation2 + $0xc8] sm:$0xff] %v2187_v33  ;;  %v1411_v33 = vld [vmem:[#allocation2 + $0x1c8] sm:$0xff] }
 0x2fc   : >> { %v1856_v2 = vpop.f32.mrf.mxu0  ;;  %v1897_v35 = vpop.f32.mrf.mxu1 }
 0x2fd   : >> { %v2192_v3 = vadd.f32 %v1856_v2, %v1400_v17  ;;  %v2193_v20 = vadd.f32 %v1897_v35, %v1401_v18 }
 0x2ff   : >> { %2256 = vst [vmem:[#allocation2 + $0x1a0] sm:$0xff] %v2192_v3  ;;  %v1938_v49 = vpop.f32.mrf.mxu2  ;;  %v1979_v19 = vpop.f32.mrf.mxu3  ;;  %v1416_v3 = vld [vmem:[#allocation2 + $0x198] sm:$0xff] }
 0x300   : >> { %2257 = vst [vmem:[#allocation2 + $0x1f0] sm:$0xff] %v2193_v20  ;;  %v2194_v34 = vadd.f32 %v1938_v49, %v1402_v4  ;;  %v2195_v1 = vadd.f32 %v1979_v19, %v1403_v51  ;;  %v1417_v20 = vld [vmem:[#allocation2 + $0x38] sm:$0xff] }
 0x302   : >> { %2258 = vst [vmem:[#allocation2 + $0xe8] sm:$0xff] %v2194_v34  ;;  %v1418_v34 = vld [vmem:[#allocation2 + $0xc0] sm:$0xff] }
 0x303   : >> { %2259 = vst [vmem:[#allocation2 + $0x78] sm:$0xff] %v2195_v1  ;;  %v1419_v1 = vld [vmem:[#allocation2 + $0x1c0] sm:$0xff] }
 0x304   : >> { %v1859_v6 = vpop.f32.mrf.mxu0  ;;  %v1900_v50 = vpop.f32.mrf.mxu1 }
 0x305   : >> { %v2200_v7 = vadd.f32 %v1859_v6, %v1408_v5  ;;  %v2201_v8 = vadd.f32 %v1900_v50, %v1409_v0 }
 0x307   : >> { %2264 = vst [vmem:[#allocation2 + $0xb8] sm:$0xff] %v2200_v7  ;;  %v1941_v17 = vpop.f32.mrf.mxu2  ;;  %v1982_v18 = vpop.f32.mrf.mxu3  ;;  %v1364_v7 = vld [vmem:[#allocation2 + $0x50] sm:$0xff] }
 0x308   : >> { %2265 = vst [vmem:[#allocation2 + $0x88] sm:$0xff] %v2201_v8  ;;  %v2202_v2 = vadd.f32 %v1941_v17, %v1410_v9  ;;  %v2203_v35 = vadd.f32 %v1982_v18, %v1411_v33  ;;  %v1365_v8 = vld [vmem:[#allocation2 + $0x168] sm:$0xff] }
 0x30a   : >> { %2266 = vst [vmem:[#allocation2 + $0xa8] sm:$0xff] %v2202_v2  ;;  %v1366_v2 = vld [vmem:[#allocation2 + $0x130] sm:$0xff] }
 0x30b   : >> { %2267 = vst [vmem:[#allocation2 + $0x1c8] sm:$0xff] %v2203_v35  ;;  %v1367_v35 = vld [vmem:[#allocation2 + $0x48] sm:$0xff] }
 0x30c   : >> { %v1862_v4 = vpop.f32.mrf.mxu0  ;;  %v1903_v51 = vpop.f32.mrf.mxu1 }
 0x30d   : >> { %v2208_v49 = vadd.f32 %v1862_v4, %v1416_v3  ;;  %v2209_v19 = vadd.f32 %v1903_v51, %v1417_v20 }
 0x30f   : >> { %2272 = vst [vmem:[#allocation2 + $0x198] sm:$0xff] %v2208_v49  ;;  %v1944_v5 = vpop.f32.mrf.mxu2  ;;  %v1985_v0 = vpop.f32.mrf.mxu3  ;;  %v1372_v49 = vld [vmem:[#allocation2 + $0x120] sm:$0xff] }
 0x310   : >> { %2273 = vst [vmem:[#allocation2 + $0x38] sm:$0xff] %v2209_v19  ;;  %v2210_v6 = vadd.f32 %v1944_v5, %v1418_v34  ;;  %v2211_v50 = vadd.f32 %v1985_v0, %v1419_v1  ;;  %v1373_v19 = vld [vmem:[#allocation2 + $0x150] sm:$0xff] }
 0x312   : >> { %2274 = vst [vmem:[#allocation2 + $0xc0] sm:$0xff] %v2210_v6  ;;  %v1374_v6 = vld [vmem:[#allocation2 + $0x108] sm:$0xff] }
 0x313   : >> { %2275 = vst [vmem:[#allocation2 + $0x1c0] sm:$0xff] %v2211_v50  ;;  %v1375_v50 = vld [vmem:[#allocation2 + $0x60] sm:$0xff] }
 0x314   : >> { %v2005_v9 = vpop.f32.mrf.mxu0  ;;  %v2046_v33 = vpop.f32.mrf.mxu1 }
 0x315   : >> { %v2156_v17 = vadd.f32 %v2005_v9, %v1364_v7  ;;  %v2157_v18 = vadd.f32 %v2046_v33, %v1365_v8 }
 0x317   : >> { %2220 = vst [vmem:[#allocation2 + $0x50] sm:$0xff] %v2156_v17  ;;  %v2087_v3 = vpop.f32.mrf.mxu2  ;;  %v2128_v20 = vpop.f32.mrf.mxu3  ;;  %v1380_v17 = vld [vmem:[#allocation2 + $0x80] sm:$0xff] }
 0x318   : >> { %2221 = vst [vmem:[#allocation2 + $0x168] sm:$0xff] %v2157_v18  ;;  %v2158_v4 = vadd.f32 %v2087_v3, %v1366_v2  ;;  %v2159_v51 = vadd.f32 %v2128_v20, %v1367_v35  ;;  %v1381_v18 = vld [vmem:[#allocation2 + $0x1a8] sm:$0xff] }
 0x31a   : >> { %2222 = vst [vmem:[#allocation2 + $0x130] sm:$0xff] %v2158_v4  ;;  %v1382_v4 = vld [vmem:[#allocation2 + $0x1b8] sm:$0xff] }
 0x31b   : >> { %2223 = vst [vmem:[#allocation2 + $0x48] sm:$0xff] %v2159_v51  ;;  %v1383_v51 = vld [vmem:[#allocation2 + $0x28] sm:$0xff] }
 0x31c   : >> { %v2008_v34 = vpop.f32.mrf.mxu0  ;;  %v2049_v1 = vpop.f32.mrf.mxu1 }
 0x31d   : >> { %v2164_v5 = vadd.f32 %v2008_v34, %v1372_v49  ;;  %v2165_v0 = vadd.f32 %v2049_v1, %v1373_v19 }
 0x31f   : >> { %2228 = vst [vmem:[#allocation2 + $0x120] sm:$0xff] %v2164_v5  ;;  %v2090_v7 = vpop.f32.mrf.mxu2  ;;  %v2131_v8 = vpop.f32.mrf.mxu3  ;;  %v1388_v5 = vld [vmem:[#allocation2 + $0x1e0] sm:$0xff] }
 0x320   : >> { %2229 = vst [vmem:[#allocation2 + $0x150] sm:$0xff] %v2165_v0  ;;  %v2166_v9 = vadd.f32 %v2090_v7, %v1374_v6  ;;  %v2167_v33 = vadd.f32 %v2131_v8, %v1375_v50  ;;  %v1389_v0 = vld [vmem:[#allocation2] sm:$0xff] }
 0x322   : >> { %2230 = vst [vmem:[#allocation2 + $0x108] sm:$0xff] %v2166_v9  ;;  %v1390_v9 = vld [vmem:[#allocation2 + $0xf0] sm:$0xff] }
 0x323   : >> { %2231 = vst [vmem:[#allocation2 + $0x60] sm:$0xff] %v2167_v33  ;;  %v1391_v33 = vld [vmem:[#allocation2 + $0x8] sm:$0xff] }
 0x324   : >> { %v2011_v2 = vpop.f32.mrf.mxu0  ;;  %v2052_v35 = vpop.f32.mrf.mxu1 }
 0x325   : >> { %v2172_v3 = vadd.f32 %v2011_v2, %v1380_v17  ;;  %v2173_v20 = vadd.f32 %v2052_v35, %v1381_v18 }
 0x327   : >> { %2236 = vst [vmem:[#allocation2 + $0x80] sm:$0xff] %v2172_v3  ;;  %v2093_v49 = vpop.f32.mrf.mxu2  ;;  %v2134_v19 = vpop.f32.mrf.mxu3  ;;  %v1396_v3 = vld [vmem:[#allocation2 + $0x40] sm:$0xff] }
 0x328   : >> { %2237 = vst [vmem:[#allocation2 + $0x1a8] sm:$0xff] %v2173_v20  ;;  %v2174_v34 = vadd.f32 %v2093_v49, %v1382_v4  ;;  %v2175_v1 = vadd.f32 %v2134_v19, %v1383_v51  ;;  %v1397_v20 = vld [vmem:[#allocation2 + $0x1f8] sm:$0xff] }
 0x32a   : >> { %2238 = vst [vmem:[#allocation2 + $0x1b8] sm:$0xff] %v2174_v34  ;;  %v1398_v34 = vld [vmem:[#allocation2 + $0x20] sm:$0xff] }
 0x32b   : >> { %2239 = vst [vmem:[#allocation2 + $0x28] sm:$0xff] %v2175_v1  ;;  %v1399_v1 = vld [vmem:[#allocation2 + $0x128] sm:$0xff] }
 0x32c   : >> { %v2014_v6 = vpop.f32.mrf.mxu0  ;;  %v2055_v50 = vpop.f32.mrf.mxu1 }
 0x32d   : >> { %v2180_v7 = vadd.f32 %v2014_v6, %v1388_v5  ;;  %v2181_v8 = vadd.f32 %v2055_v50, %v1389_v0 }
 0x32f   : >> { %2244 = vst [vmem:[#allocation2 + $0x1e0] sm:$0xff] %v2180_v7  ;;  %v2096_v17 = vpop.f32.mrf.mxu2  ;;  %v2137_v18 = vpop.f32.mrf.mxu3  ;;  %v1404_v7 = vld [vmem:[#allocation2 + $0x70] sm:$0xff] }
 0x330   : >> { %2245 = vst [vmem:[#allocation2] sm:$0xff] %v2181_v8  ;;  %v2182_v2 = vadd.f32 %v2096_v17, %v1390_v9  ;;  %v2183_v35 = vadd.f32 %v2137_v18, %v1391_v33  ;;  %v1405_v8 = vld [vmem:[#allocation2 + $0x90] sm:$0xff] }
 0x332   : >> { %2246 = vst [vmem:[#allocation2 + $0xf0] sm:$0xff] %v2182_v2  ;;  %v1406_v2 = vld [vmem:[#allocation2 + $0x1d8] sm:$0xff] }
 0x333   : >> { %2247 = vst [vmem:[#allocation2 + $0x8] sm:$0xff] %v2183_v35  ;;  %v1407_v35 = vld [vmem:[#allocation2 + $0xd0] sm:$0xff] }
 0x334   : >> { %v2017_v4 = vpop.f32.mrf.mxu0  ;;  %v2058_v51 = vpop.f32.mrf.mxu1 }
 0x335   : >> { %v2188_v49 = vadd.f32 %v2017_v4, %v1396_v3  ;;  %v2189_v19 = vadd.f32 %v2058_v51, %v1397_v20 }
 0x337   : >> { %2252 = vst [vmem:[#allocation2 + $0x40] sm:$0xff] %v2188_v49  ;;  %v2099_v5 = vpop.f32.mrf.mxu2  ;;  %v2140_v0 = vpop.f32.mrf.mxu3  ;;  %v1412_v49 = vld [vmem:[#allocation2 + $0x170] sm:$0xff] }
 0x338   : >> { %2253 = vst [vmem:[#allocation2 + $0x1f8] sm:$0xff] %v2189_v19  ;;  %v2190_v6 = vadd.f32 %v2099_v5, %v1398_v34  ;;  %v2191_v50 = vadd.f32 %v2140_v0, %v1399_v1  ;;  %v1413_v19 = vld [vmem:[#allocation2 + $0x178] sm:$0xff] }
 0x33a   : >> { %2254 = vst [vmem:[#allocation2 + $0x20] sm:$0xff] %v2190_v6  ;;  %v1414_v6 = vld [vmem:[#allocation2 + $0x68] sm:$0xff] }
 0x33b   : >> { %2255 = vst [vmem:[#allocation2 + $0x128] sm:$0xff] %v2191_v50  ;;  %v1415_v50 = vld [vmem:[#allocation2 + $0x190] sm:$0xff] }
 0x33c   : >> { %v2020_v9 = vpop.f32.mrf.mxu0  ;;  %v2061_v33 = vpop.f32.mrf.mxu1 }
 0x33d   : >> { %v2196_v17 = vadd.f32 %v2020_v9, %v1404_v7  ;;  %v2197_v18 = vadd.f32 %v2061_v33, %v1405_v8 }
 0x33f   : >> { %2260 = vst [vmem:[#allocation2 + $0x70] sm:$0xff] %v2196_v17  ;;  %v2102_v3 = vpop.f32.mrf.mxu2  ;;  %v2143_v20 = vpop.f32.mrf.mxu3  ;;  %v1420_v17 = vld [vmem:[#allocation2 + $0x158] sm:$0xff] }
 0x340   : >> { %2261 = vst [vmem:[#allocation2 + $0x90] sm:$0xff] %v2197_v18  ;;  %v2198_v4 = vadd.f32 %v2102_v3, %v1406_v2  ;;  %v2199_v51 = vadd.f32 %v2143_v20, %v1407_v35  ;;  %v1421_v18 = vld [vmem:[#allocation2 + $0x10] sm:$0xff] }
 0x342   : >> { %2262 = vst [vmem:[#allocation2 + $0x1d8] sm:$0xff] %v2198_v4  ;;  %v1422_v4 = vld [vmem:[#allocation2 + $0x58] sm:$0xff] }
 0x343   : >> { %2263 = vst [vmem:[#allocation2 + $0xd0] sm:$0xff] %v2199_v51  ;;  %v1423_v51 = vld [vmem:[#allocation2 + $0xa0] sm:$0xff] }
 0x344   : >> { %v2023_v34 = vpop.f32.mrf.mxu0  ;;  %v2064_v1 = vpop.f32.mrf.mxu1 }
 0x345   : >> { %v2204_v5 = vadd.f32 %v2023_v34, %v1412_v49  ;;  %v2205_v0 = vadd.f32 %v2064_v1, %v1413_v19 }
 0x347   : >> { %2268 = vst [vmem:[#allocation2 + $0x170] sm:$0xff] %v2204_v5  ;;  %v2105_v7 = vpop.f32.mrf.mxu2  ;;  %v2146_v8 = vpop.f32.mrf.mxu3 }
 0x348   : >> { %2269 = vst [vmem:[#allocation2 + $0x178] sm:$0xff] %v2205_v0  ;;  %v2206_v9 = vadd.f32 %v2105_v7, %v1414_v6  ;;  %v2207_v33 = vadd.f32 %v2146_v8, %v1415_v50 }
 0x34a   : >> { %2270 = vst [vmem:[#allocation2 + $0x68] sm:$0xff] %v2206_v9 }
 0x34b   : >> { %2271 = vst [vmem:[#allocation2 + $0x190] sm:$0xff] %v2207_v33 }
 0x34c   : >> { %v2026_v2 = vpop.f32.mrf.mxu0  ;;  %v2067_v35 = vpop.f32.mrf.mxu1 }
 0x34d   : >> { %v2212_v3 = vadd.f32 %v2026_v2, %v1420_v17  ;;  %v2213_v20 = vadd.f32 %v2067_v35, %v1421_v18 }
 0x34f   : >> { %2276 = vst [vmem:[#allocation2 + $0x158] sm:$0xff] %v2212_v3  ;;  %v2108_v49 = vpop.f32.mrf.mxu2  ;;  %v2149_v19 = vpop.f32.mrf.mxu3  ;;  %1359 = sbr.rel (!%p1356_p7) target bundleno = 527 (0x20f), region = 105 }
 0x350   : >> { %2277 = vst [vmem:[#allocation2 + $0x10] sm:$0xff] %v2213_v20  ;;  %v2214_v34 = vadd.f32 %v2108_v49, %v1422_v4  ;;  %v2215_v1 = vadd.f32 %v2149_v19, %v1423_v51 }
 0x352   : >> { %2278 = vst [vmem:[#allocation2 + $0x58] sm:$0xff] %v2214_v34 }
 0x353   : >> { %2279 = vst [vmem:[#allocation2 + $0xa0] sm:$0xff] %v2215_v1 }
 0x354 PF: > { %v2280_v5 = vld [vmem:[#allocation2 + $0xb0] sm:$0xff]  ;;  %v2282_v6 = vld [vmem:[#allocation2 + $0xd8] sm:$0xff]  ;;  %v2285_v10 = vld [vmem:[#allocation2 + $0x168] sm:$0xff] }
 0x355   : > { %v2281_v0 = vld [vmem:[#allocation2 + $0x1b0] sm:$0xff]  ;;  %2344 = vst [vmem:[%s3880_s7] sm:$0xff] %v2280_v5  ;;  %v2283_v50 = vld [vmem:[#allocation2 + $0x18] sm:$0xff]  ;;  %v2287_v12 = vld [vmem:[#allocation2 + $0x48] sm:$0xff] }
 0x356   : > { %2345 = vst [vmem:[%s3880_s7 + $0x8] sm:$0xff] %v2281_v0  ;;  %v2284_v7 = vld [vmem:[#allocation2 + $0x50] sm:$0xff]  ;;  %v2288_v13 = vld [vmem:[#allocation2 + $0x180] sm:$0xff]  ;;  %v2290_v15 = vld [vmem:[#allocation2 + $0x118] sm:$0xff] }
 0x357   : > { %2346 = vst [vmem:[%s3880_s7 + $0x10] sm:$0xff] %v2282_v6  ;;  %v2286_v11 = vld [vmem:[#allocation2 + $0x130] sm:$0xff]  ;;  %v2291_v16 = vld [vmem:[#allocation2 + $0x98] sm:$0xff]  ;;  %v2292_v21 = vld [vmem:[#allocation2 + $0x120] sm:$0xff] }
 0x358   : > { %2347 = vst [vmem:[%s3880_s7 + $0x18] sm:$0xff] %v2283_v50  ;;  %v2289_v14 = vld [vmem:[#allocation2 + $0x110] sm:$0xff]  ;;  %v2294_v23 = vld [vmem:[#allocation2 + $0x108] sm:$0xff]  ;;  %v2295_v24 = vld [vmem:[#allocation2 + $0x60] sm:$0xff] }
 0x359   : > { %2348 = vst [vmem:[%s3880_s7 + $0x20] sm:$0xff] %v2284_v7  ;;  %v2293_v22 = vld [vmem:[#allocation2 + $0x150] sm:$0xff]  ;;  %v2296_v25 = vld [vmem:[#allocation2 + $0xe0] sm:$0xff]  ;;  %v2297_v26 = vld [vmem:[#allocation2 + $0x188] sm:$0xff] }
 0x35a   : > { %2349 = vst [vmem:[%s3880_s7 + $0x28] sm:$0xff] %v2285_v10  ;;  %v2298_v27 = vld [vmem:[#allocation2 + $0x138] sm:$0xff]  ;;  %v2299_v28 = vld [vmem:[#allocation2 + $0x140] sm:$0xff]  ;;  %v2301_v30 = vld [vmem:[#allocation2 + $0x1a8] sm:$0xff] }
 0x35b   : > { %2350 = vst [vmem:[%s3880_s7 + $0x30] sm:$0xff] %v2286_v11  ;;  %v2300_v29 = vld [vmem:[#allocation2 + $0x80] sm:$0xff]  ;;  %v2302_v31 = vld [vmem:[#allocation2 + $0x1b8] sm:$0xff]  ;;  %v2303_v32 = vld [vmem:[#allocation2 + $0x28] sm:$0xff] }
 0x35c   : > { %2351 = vst [vmem:[%s3880_s7 + $0x38] sm:$0xff] %v2287_v12  ;;  %v2304_v36 = vld [vmem:[#allocation2 + $0x1e8] sm:$0xff]  ;;  %v2305_v37 = vld [vmem:[#allocation2 + $0xf8] sm:$0xff]  ;;  %v2306_v38 = vld [vmem:[#allocation2 + $0x160] sm:$0xff] }
 0x35d   : > { %2352 = vst [vmem:[%s3880_s7 + $0x40] sm:$0xff] %v2288_v13  ;;  %v2307_v39 = vld [vmem:[#allocation2 + $0x30] sm:$0xff]  ;;  %v2308_v40 = vld [vmem:[#allocation2 + $0x1e0] sm:$0xff]  ;;  %v2311_v43 = vld [vmem:[#allocation2 + $0x8] sm:$0xff] }
 0x35e   : > { %2353 = vst [vmem:[%s3880_s7 + $0x48] sm:$0xff] %v2289_v14  ;;  %v2309_v41 = vld [vmem:[#allocation2] sm:$0xff]  ;;  %v2310_v42 = vld [vmem:[#allocation2 + $0xf0] sm:$0xff]  ;;  %v2312_v44 = vld [vmem:[#allocation2 + $0x148] sm:$0xff] }
 0x35f   : > { %2354 = vst [vmem:[%s3880_s7 + $0x50] sm:$0xff] %v2290_v15  ;;  %v2313_v45 = vld [vmem:[#allocation2 + $0x1d0] sm:$0xff]  ;;  %v2314_v46 = vld [vmem:[#allocation2 + $0x100] sm:$0xff]  ;;  %v2315_v47 = vld [vmem:[#allocation2 + $0xc8] sm:$0xff] }
 0x360   : > { %2355 = vst [vmem:[%s3880_s7 + $0x58] sm:$0xff] %v2291_v16  ;;  %v2316_v48 = vld [vmem:[#allocation2 + $0x40] sm:$0xff]  ;;  %v2317_v52 = vld [vmem:[#allocation2 + $0x1f8] sm:$0xff]  ;;  %v2319_v54 = vld [vmem:[#allocation2 + $0x128] sm:$0xff] }
 0x361   : > { %2356 = vst [vmem:[%s3880_s7 + $0x60] sm:$0xff] %v2292_v21  ;;  %v2318_v53 = vld [vmem:[#allocation2 + $0x20] sm:$0xff]  ;;  %v2321_v56 = vld [vmem:[#allocation2 + $0x1f0] sm:$0xff]  ;;  %v2322_v57 = vld [vmem:[#allocation2 + $0xe8] sm:$0xff] }
 0x362   : > { %2357 = vst [vmem:[%s3880_s7 + $0x68] sm:$0xff] %v2293_v22  ;;  %v2320_v55 = vld [vmem:[#allocation2 + $0x1a0] sm:$0xff]  ;;  %v2323_v58 = vld [vmem:[#allocation2 + $0x78] sm:$0xff]  ;;  %v2324_v59 = vld [vmem:[#allocation2 + $0x70] sm:$0xff] }
 0x363   : > { %2358 = vst [vmem:[%s3880_s7 + $0x70] sm:$0xff] %v2294_v23  ;;  %v2325_v60 = vld [vmem:[#allocation2 + $0x90] sm:$0xff]  ;;  %v2326_v61 = vld [vmem:[#allocation2 + $0x1d8] sm:$0xff]  ;;  %v2329_v8 = vld [vmem:[#allocation2 + $0x88] sm:$0xff] }
 0x364   : > { %2359 = vst [vmem:[%s3880_s7 + $0x78] sm:$0xff] %v2295_v24  ;;  %v2327_v62 = vld [vmem:[#allocation2 + $0xd0] sm:$0xff]  ;;  %v2328_v63 = vld [vmem:[#allocation2 + $0xb8] sm:$0xff]  ;;  %v2330_v9 = vld [vmem:[#allocation2 + $0xa8] sm:$0xff] }
 0x365   : > { %2360 = vst [vmem:[%s3880_s7 + $0x80] sm:$0xff] %v2296_v25  ;;  %v2331_v33 = vld [vmem:[#allocation2 + $0x1c8] sm:$0xff]  ;;  %v2332_v17 = vld [vmem:[#allocation2 + $0x170] sm:$0xff]  ;;  %v2333_v18 = vld [vmem:[#allocation2 + $0x178] sm:$0xff] }
 0x366   : > { %2361 = vst [vmem:[%s3880_s7 + $0x88] sm:$0xff] %v2297_v26  ;;  %v2334_v2 = vld [vmem:[#allocation2 + $0x68] sm:$0xff]  ;;  %v2335_v35 = vld [vmem:[#allocation2 + $0x190] sm:$0xff]  ;;  %v2336_v3 = vld [vmem:[#allocation2 + $0x198] sm:$0xff] }
 0x367   : > { %2362 = vst [vmem:[%s3880_s7 + $0x90] sm:$0xff] %v2298_v27  ;;  %v2337_v20 = vld [vmem:[#allocation2 + $0x38] sm:$0xff]  ;;  %v2338_v4 = vld [vmem:[#allocation2 + $0xc0] sm:$0xff]  ;;  %v2341_v19 = vld [vmem:[#allocation2 + $0x10] sm:$0xff] }
 0x368   : > { %2363 = vst [vmem:[%s3880_s7 + $0x98] sm:$0xff] %v2299_v28  ;;  %v2339_v51 = vld [vmem:[#allocation2 + $0x1c0] sm:$0xff]  ;;  %v2340_v49 = vld [vmem:[#allocation2 + $0x158] sm:$0xff] }
 0x369   : > { %2364 = vst [vmem:[%s3880_s7 + $0xa0] sm:$0xff] %v2300_v29  ;;  %v2342_v34 = vld [vmem:[#allocation2 + $0x58] sm:$0xff]  ;;  %v2343_v1 = vld [vmem:[#allocation2 + $0xa0] sm:$0xff] }
 0x36a   : > { %2365 = vst [vmem:[%s3880_s7 + $0xa8] sm:$0xff] %v2301_v30 }
 0x36b   : > { %2366 = vst [vmem:[%s3880_s7 + $0xb0] sm:$0xff] %v2302_v31 }
 0x36c   : > { %2367 = vst [vmem:[%s3880_s7 + $0xb8] sm:$0xff] %v2303_v32 }
 0x36d   : > { %2368 = vst [vmem:[%s3880_s7 + $0xc0] sm:$0xff] %v2304_v36 }
 0x36e   : > { %2369 = vst [vmem:[%s3880_s7 + $0xc8] sm:$0xff] %v2305_v37 }
 0x36f   : > { %2370 = vst [vmem:[%s3880_s7 + $0xd0] sm:$0xff] %v2306_v38 }
 0x370   : > { %2371 = vst [vmem:[%s3880_s7 + $0xd8] sm:$0xff] %v2307_v39 }
 0x371   : > { %2372 = vst [vmem:[%s3880_s7 + $0xe0] sm:$0xff] %v2308_v40 }
 0x372   : > { %2373 = vst [vmem:[%s3880_s7 + $0xe8] sm:$0xff] %v2309_v41 }
 0x373   : > { %2374 = vst [vmem:[%s3880_s7 + $0xf0] sm:$0xff] %v2310_v42 }
 0x374   : > { %2375 = vst [vmem:[%s3880_s7 + $0xf8] sm:$0xff] %v2311_v43 }
 0x375   : > { %2376 = vst [vmem:[%s3880_s7 + $0x100] sm:$0xff] %v2312_v44 }
 0x376   : > { %2377 = vst [vmem:[%s3880_s7 + $0x108] sm:$0xff] %v2313_v45 }
 0x377   : > { %2378 = vst [vmem:[%s3880_s7 + $0x110] sm:$0xff] %v2314_v46 }
 0x378   : > { %2379 = vst [vmem:[%s3880_s7 + $0x118] sm:$0xff] %v2315_v47 }
 0x379   : > { %2380 = vst [vmem:[%s3880_s7 + $0x120] sm:$0xff] %v2316_v48 }
 0x37a   : > { %2381 = vst [vmem:[%s3880_s7 + $0x128] sm:$0xff] %v2317_v52 }
 0x37b   : > { %2382 = vst [vmem:[%s3880_s7 + $0x130] sm:$0xff] %v2318_v53 }
 0x37c   : > { %2383 = vst [vmem:[%s3880_s7 + $0x138] sm:$0xff] %v2319_v54 }
 0x37d   : > { %2384 = vst [vmem:[%s3880_s7 + $0x140] sm:$0xff] %v2320_v55 }
 0x37e   : > { %2385 = vst [vmem:[%s3880_s7 + $0x148] sm:$0xff] %v2321_v56 }
 0x37f   : > { %2386 = vst [vmem:[%s3880_s7 + $0x150] sm:$0xff] %v2322_v57 }
 0x380   : > { %2387 = vst [vmem:[%s3880_s7 + $0x158] sm:$0xff] %v2323_v58 }
 0x381   : > { %2388 = vst [vmem:[%s3880_s7 + $0x160] sm:$0xff] %v2324_v59 }
 0x382   : > { %2389 = vst [vmem:[%s3880_s7 + $0x168] sm:$0xff] %v2325_v60 }
 0x383   : > { %2390 = vst [vmem:[%s3880_s7 + $0x170] sm:$0xff] %v2326_v61 }
 0x384   : > { %2391 = vst [vmem:[%s3880_s7 + $0x178] sm:$0xff] %v2327_v62 }
 0x385   : > { %2392 = vst [vmem:[%s3880_s7 + $0x180] sm:$0xff] %v2328_v63 }
 0x386   : > { %2393 = vst [vmem:[%s3880_s7 + $0x188] sm:$0xff] %v2329_v8 }
 0x387   : > { %2394 = vst [vmem:[%s3880_s7 + $0x190] sm:$0xff] %v2330_v9 }
 0x388   : > { %2395 = vst [vmem:[%s3880_s7 + $0x198] sm:$0xff] %v2331_v33 }
 0x389   : > { %2396 = vst [vmem:[%s3880_s7 + $0x1a0] sm:$0xff] %v2332_v17 }
 0x38a   : > { %2397 = vst [vmem:[%s3880_s7 + $0x1a8] sm:$0xff] %v2333_v18 }
 0x38b   : > { %2398 = vst [vmem:[%s3880_s7 + $0x1b0] sm:$0xff] %v2334_v2 }
 0x38c   : > { %2399 = vst [vmem:[%s3880_s7 + $0x1b8] sm:$0xff] %v2335_v35 }
 0x38d   : > { %2400 = vst [vmem:[%s3880_s7 + $0x1c0] sm:$0xff] %v2336_v3 }
 0x38e   : > { %2401 = vst [vmem:[%s3880_s7 + $0x1c8] sm:$0xff] %v2337_v20 }
 0x38f   : > { %2402 = vst [vmem:[%s3880_s7 + $0x1d0] sm:$0xff] %v2338_v4 }
 0x390   : > { %2403 = vst [vmem:[%s3880_s7 + $0x1d8] sm:$0xff] %v2339_v51 }
 0x391   : > { %2404 = vst [vmem:[%s3880_s7 + $0x1e0] sm:$0xff] %v2340_v49 }
 0x392   : > { %2405 = vst [vmem:[%s3880_s7 + $0x1e8] sm:$0xff] %v2341_v19 }
 0x393   : > { %2406 = vst [vmem:[%s3880_s7 + $0x1f0] sm:$0xff] %v2342_v34 }
 0x394   : > { %2407 = vst [vmem:[%s3880_s7 + $0x1f8] sm:$0xff] %v2343_v1 }
 0x395 PF: > { %s3071_s17 = sshll.u32 %s3326_s24, 9  ;;  %s2423_s21 = sshll.u32 %s3880_s7, 4  ;;  %s2424_s21 = int_to_ptr.vmem [resolvable:$true] %s2423_s21 }
 0x396   : > { %s2422_s20 = scalar_lea.hbm %s5080_s4, %s3071_s17  ;;  %s2409_s27 = scalar_lea.sflag [#allocation8], %s3472_s15 }
 0x397   : > { %s2425_s22 = sshll.u32 %s2422_s20, 4  ;;  %s3262_s24 = scalar_lea.hbm %s5080_s4, 1024  ;;  %s2426_s22 = int_to_ptr.hbm [resolvable:$true] %s2425_s22 }
 0x398   : > { %s3256_s28 = sshra.s32 %s2426_s22, 4  ;;  %s3257_s28 = int_to_ptr.hbm [resolvable:$true] %s3256_s28 }
 0x399   : > { %s3258_s30 = scalar_lea.hbm %s3257_s28, 512  ;;  %p3263_p0 = scmp.lt.s32.totalorder %s3257_s28, %s5080_s4 }
 0x39a   : > { %p3259_p8 = scmp.ne.s32.totalorder %s3257_s28, %s3258_s30  ;;  %p3264_p1 = scmp.lt.s32.totalorder %s3262_s24, %s3258_s30 }
 0x39c   : > { %p3260_p10 = pnand %p3259_p8, %p3431_p9  ;;  %p3265_p2 = por %p3264_p1, %p3263_p0 }
 0x39e   : > { %p3261_p13 = pneg %p3260_p10 }
 0x3a0   : > { %p3266_p3 = pnand %p3265_p2, %p3261_p13 }
 0x3a2   : > { %3269 = shalt.err (!%p3266_p3)
}
 0x3a3   : > { %s3347_s15 = smov 1024   ;;  %s3348_s7 = smov 64  }
 0x3a4   : > { %3076 = dma.vmem_to_hbm [thread:$0]  (%p3431_p9), %s2424_s21, 8192, %s2426_s22, %s2409_s27, %s3347_s15, %s3347_s15, %s3348_s7  }
 0x3a5 PF: > { %s2440_s14 = sand.u32 1, %s3314_s0   ;;  %p3086_p4 = pnand %p2541_p12, %p3438_p11 }
 0x3a6   : > { %s2441_s16 = scalar_lea.sflag [#allocation8], %s2440_s14 }
 0x3a7   : > { %p3087_p5 = pneg %p3086_p4 }
 0x3a9   : > { %3309 = dma.done.wait (%p3087_p5), %s2441_s16, 8192  }
 0x3aa   : > { %3311 = vsyncadd (%p3087_p5), %s2441_s16, 4294959104  ;;  %s36_s26 = sadd.s32 1, %s3334_s26   ;;  %s5339_s0 = smov %s3318_s23 }
 0x3ab   : > { %p33_p6 = scmp.ge.s32.totalorder %s36_s26, 4   ;;  %s5340_s23 = smov %s3322_s1 }
 0x3ac   : > { %s5341_s1 = smov %s3436_s9  ;;  %s5342_s24 = smov %s3330_s25 }
 0x3ad   : > { %s5343_s25 = smov %s5345_s29  ;;  %35 = sbr.rel (!%p33_p6) target bundleno = 15 (0xf), region = 116 }
 0x3b2   :  { %2447 = vsyncpa [#allocation7], 1 }
 0x3b3   :  { %2449 = vsyncpa [#allocation7 + $0x1], 1 }
 0x3b4   :  { %2450 = vsyncpa [#allocation10], 1 }
 0x3b5   :  { %2452 = vsyncpa [#allocation10 + $0x1], 1 }
 0x3b6   :  { %2453 = vsyncpa [#allocation8], 1 }
 0x3b7   :  { %2455 = vsyncpa [#allocation8 + $0x1], 1 }

</bundles_post_ra>
